<compile_context>
chip_gen: v6e
topology: v6e:2x2x1
jax: 0.10.0
libtpu: 0.0.40
codegen_flags: <defaults>
</compile_context>

<pallas_src>
import functools
import math

import jax
import jax.numpy as jnp
from jax.experimental import pallas as pl
from jax.experimental.pallas import tpu as pltpu


# ---------------------------------------------------------------------------
# helpers (pure jnp -> usable inside the kernel and in the reference)
# ---------------------------------------------------------------------------
def _layer_norm(x, gamma, beta, eps=1e-5):
    mu = jnp.mean(x, axis=-1, keepdims=True)
    var = jnp.mean((x - mu) ** 2, axis=-1, keepdims=True)
    return (x - mu) * jax.lax.rsqrt(var + eps) * gamma + beta


# ---------------------------------------------------------------------------
# fused QueryLayer kernel: one grid step processes Bt batch elements
# ---------------------------------------------------------------------------
def _query_layer_kernel(*refs, h, d_k, d_v,
                        has_pos_enc, has_pos_emb, has_mask, has_wts,
                        mxu_dtype, batched_heads):
    it = iter(refs)
    q_ref, k_ref, v_ref = next(it), next(it), next(it)
    pe_ref = next(it) if has_pos_enc else None
    pm_ref = next(it) if has_pos_emb else None
    mask_ref = next(it) if has_mask else None
    aw_ref = next(it) if has_wts else None
    (wq_ref, bq_ref, wk_ref, bk_ref, wv_ref, bv_ref, wo_ref, bo_ref,
     g1_ref, be1_ref, w1_ref, c1_ref, w2_ref, c2_ref, g2_ref, be2_ref) = [
        next(it) for _ in range(16)]
    out_ref = next(it)

    f32 = jnp.float32
    Bt, Nq, D = q_ref.shape
    Nk = k_ref.shape[1]
    Mq, Mk = Bt * Nq, Bt * Nk

    # ---- load inputs; fold positional adds in-kernel (free VPU work) -------
    q_in = q_ref[...].astype(f32)
    k_in = k_ref[...].astype(f32)
    v_in = v_ref[...].astype(f32)
    if has_pos_enc:
        q_in = q_in + pe_ref[...].astype(f32)
    if has_pos_emb:
        pe = pm_ref[...].astype(f32)
        k_in = k_in + pe
        v_in = v_in + pe

    q2 = q_in.reshape(Mq, D)                      # lane-dense (rows, D)
    k2 = k_in.reshape(Mk, D)
    v2 = v_in.reshape(Mk, D)

    def mm(x, w_ref, b_ref):                      # bf16 MXU, f32 accumulate
        return (jnp.dot(x.astype(mxu_dtype), w_ref[...].astype(mxu_dtype),
                        preferred_element_type=f32)
                + b_ref[...].astype(f32))

    qp = mm(q2, wq_ref, bq_ref)                   # (Mq, h*d_k)
    kp = mm(k2, wk_ref, bk_ref)                   # (Mk, h*d_k)
    vp = mm(v2, wv_ref, bv_ref)                   # (Mk, h*d_v)
    scale = 1.0 / math.sqrt(d_k)

    if batched_heads:
        # ---- one head-major relayout, then fully batched attention --------
        def to_heads(x, n, d):                    # (Bt*n, h*d) -> (h*Bt, n, d)
            x = x.reshape(Bt * n, h, d)
            x = pltpu.einshape("mhd->hmd", x)     # (h, Bt*n, d)
            return x.reshape(h * Bt, n, d)

        qh = to_heads(qp, Nq, d_k)
        kh = to_heads(kp, Nk, d_k)
        vh = to_heads(vp, Nk, d_v)

        att = jnp.einsum("gqd,gkd->gqk",          # no kh.T transpose needed
                         qh.astype(mxu_dtype), kh.astype(mxu_dtype),
                         preferred_element_type=f32) * scale  # (h*Bt, Nq, Nk)

        if has_wts or has_mask:
            att4 = att.reshape(h, Bt, Nq, Nk)     # leading-dim split: free
            if has_wts:
                att4 = att4 * aw_ref[...].astype(f32)         # (h,Bt,Nq,Nk)
            if has_mask:
                att4 = att4 + mask_ref[...].astype(f32)       # (1,Bt,Nq,Nk)
            att = att4.reshape(h * Bt, Nq, Nk)

        att = att - jnp.max(att, axis=-1, keepdims=True)
        p = jnp.exp(att)
        p = p * pl.reciprocal(jnp.sum(p, axis=-1, keepdims=True), approx=True)

        o = jnp.einsum("gqk,gkd->gqd",
                       p.astype(mxu_dtype), vh.astype(mxu_dtype),
                       preferred_element_type=f32)            # (h*Bt, Nq, d_v)
        o = pltpu.einshape("hmd->mhd", o.reshape(h, Mq, d_v))  # (Mq, h, d_v)
        o = o.reshape(Mq, h * d_v)                             # lane-dense
        attn_out = (jnp.dot(o.astype(mxu_dtype), wo_ref[...].astype(mxu_dtype),
                            preferred_element_type=f32)
                    + bo_ref[...].astype(f32))                 # (Mq, D)
    else:
        # ---- fallback: static per-head loop (only used if the head relayout
        #      above fails to lower on this jax/libtpu build) ---------------
        qp3 = qp.reshape(Bt, Nq, h * d_k)
        kp3 = kp.reshape(Bt, Nk, h * d_k)
        vp3 = vp.reshape(Bt, Nk, h * d_v)
        wo_all = wo_ref[...].astype(mxu_dtype)
        aw_all = aw_ref[...].astype(f32) if has_wts else None
        mask_all = mask_ref[...].astype(f32) if has_mask else None
        acc = jnp.zeros((Mq, D), f32)
        for hd in range(h):
            qh = qp3[:, :, hd * d_k:(hd + 1) * d_k]
            kh = kp3[:, :, hd * d_k:(hd + 1) * d_k]
            vh = vp3[:, :, hd * d_v:(hd + 1) * d_v]
            att = jnp.einsum("bqd,bkd->bqk",
                             qh.astype(mxu_dtype), kh.astype(mxu_dtype),
                             preferred_element_type=f32) * scale
            if has_wts:
                att = att * aw_all[hd]
            if has_mask:
                att = att + mask_all[0]
            att = att - jnp.max(att, axis=-1, keepdims=True)
            p = jnp.exp(att)
            p = p * pl.reciprocal(jnp.sum(p, axis=-1, keepdims=True),
                                  approx=True)
            oh = jnp.einsum("bqk,bkd->bqd",
                            p.astype(mxu_dtype), vh.astype(mxu_dtype),
                            preferred_element_type=f32).reshape(Mq, d_v)
            acc = acc + jnp.dot(oh.astype(mxu_dtype),
                                wo_all[hd * d_v:(hd + 1) * d_v, :],
                                preferred_element_type=f32)
        attn_out = acc + bo_ref[...].astype(f32)

    # ---- residual + LayerNorm 1 (f32) ----
    x = _layer_norm(q2 + attn_out,
                    g1_ref[...].astype(f32), be1_ref[...].astype(f32))

    # ---- fused position-wise FFN (no HBM round-trip of the intermediate) ---
    hdn = (jnp.dot(x.astype(mxu_dtype), w1_ref[...].astype(mxu_dtype),
                   preferred_element_type=f32) + c1_ref[...].astype(f32))
    hdn = jnp.maximum(hdn, 0.0)
    ff = (jnp.dot(hdn.astype(mxu_dtype), w2_ref[...].astype(mxu_dtype),
                  preferred_element_type=f32) + c2_ref[...].astype(f32))

    y = _layer_norm(x + ff, g2_ref[...].astype(f32), be2_ref[...].astype(f32))
    out_ref[...] = y.reshape(Bt, Nq, D).astype(out_ref.dtype)


# ---------------------------------------------------------------------------
# wrapper
# ---------------------------------------------------------------------------
def _full_spec(shape):
    n = len(shape)
    return pl.BlockSpec(shape, lambda b: (0,) * n)


def query_layer(queries, keys, values, params, *, h, d_k, d_v,
                attention_mask=None, attention_weights=None,
                pos_enc=None, pos_emb=None,
                mxu_dtype=jnp.bfloat16, target_rows=128):
    """Forward pass of QueryLayer (eval mode: dropout == identity)."""
    B, Nq, D = queries.shape
    Nk = keys.shape[1]
    f32 = jnp.float32

    # pack batches per grid step so each matmul sees >= target_rows rows
    bt = min(B, max(1, pl.cdiv(target_rows, Nq)))
    while B % bt:
        bt -= 1

    args, in_specs = [], []

    def add(x, spec):
        args.append(x)
        in_specs.append(spec)

    add(queries, pl.BlockSpec((bt, Nq, D), lambda b: (b, 0, 0)))
    add(keys,    pl.BlockSpec((bt, Nk, D), lambda b: (b, 0, 0)))
    add(values,  pl.BlockSpec((bt, Nk, D), lambda b: (b, 0, 0)))

    has_pos_enc = pos_enc is not None
    has_pos_emb = pos_emb is not None
    if has_pos_enc:
        add(jnp.broadcast_to(pos_enc, (B, Nq, D)).astype(queries.dtype),
            pl.BlockSpec((bt, Nq, D), lambda b: (b, 0, 0)))
    if has_pos_emb:
        add(jnp.broadcast_to(pos_emb, (B, Nk, D)).astype(keys.dtype),
            pl.BlockSpec((bt, Nk, D), lambda b: (b, 0, 0)))

    has_mask = attention_mask is not None
    if has_mask:
        # torch semantics: True = masked.  Padding / causal masks broadcastable
        # to (B, 1, Nq, Nk) are supported; converted to an additive bias.
        # TODO(synk): per-head masks (B, h, Nq, Nk) are not plumbed through.
        m = jnp.broadcast_to(attention_mask, (B, 1, Nq, Nk))
        bias = jnp.where(m, -1e30, 0.0).astype(f32)
        bias = jnp.transpose(bias, (1, 0, 2, 3))           # (1, B, Nq, Nk)
        add(bias, pl.BlockSpec((1, bt, Nq, Nk), lambda b: (0, b, 0, 0)))
    has_wts = attention_weights is not None
    if has_wts:
        aw = jnp.broadcast_to(attention_weights, (B, h, Nq, Nk)).astype(f32)
        aw = jnp.transpose(aw, (1, 0, 2, 3))               # (h, B, Nq, Nk)
        add(aw, pl.BlockSpec((h, bt, Nq, Nk), lambda b: (0, b, 0, 0)))

    # parameters: weight matrices in bf16 (half the HBM traffic, MXU operands),
    # biases / layernorm params stay f32.
    wcast = lambda w: w.astype(mxu_dtype)
    for name, cast in [("wq", wcast), ("bq", None), ("wk", wcast), ("bk", None),
                       ("wv", wcast), ("bv", None), ("wo", wcast), ("bo", None),
                       ("ln1_g", None), ("ln1_b", None),
                       ("w1", wcast), ("b1", None), ("w2", wcast), ("b2", None),
                       ("ln2_g", None), ("ln2_b", None)]:
        x = params[name]
        x = cast(x) if cast is not None else x
        add(x, _full_spec(x.shape))

    out_spec = pl.BlockSpec((bt, Nq, D), lambda b: (b, 0, 0))
    grid = (B // bt,)

    def build(batched_heads):
        kern = functools.partial(
            _query_layer_kernel, h=h, d_k=d_k, d_v=d_v,
            has_pos_enc=has_pos_enc, has_pos_emb=has_pos_emb,
            has_mask=has_mask, has_wts=has_wts,
            mxu_dtype=mxu_dtype, batched_heads=batched_heads)
        return pl.pallas_call(
            kern,
            out_shape=jax.ShapeDtypeStruct((B, Nq, D), queries.dtype),
            grid=grid,
            in_specs=in_specs,
            out_specs=out_spec,
            compiler_params=pltpu.CompilerParams(
                dimension_semantics=("parallel",)),
        )

    try:
        return build(batched_heads=True)(*args)
    except Exception:
        # Defensive fallback: per-head loop variant (still fused / bf16 /
        # batch-packed) in case the head-major relayout is unsupported on this
        # jax / libtpu build.  Only triggers when called eagerly.
        return build(batched_heads=False)(*args)


# ---------------------------------------------------------------------------
# pure-JAX reference (mirrors the PyTorch module, f32)
# ---------------------------------------------------------------------------
def _reference(queries, keys, values, p, *, h, d_k, d_v,
               attention_mask=None, attention_weights=None,
               pos_enc=None, pos_emb=None):
    if pos_emb is not None:
        keys = keys + pos_emb
        values = values + pos_emb
    if pos_enc is not None:
        queries = queries + pos_enc
    B, Nq, _ = queries.shape
    Nk = keys.shape[1]
    q = (queries @ p["wq"] + p["bq"]).reshape(B, Nq, h, d_k).transpose(0, 2, 1, 3)
    k = (keys @ p["wk"] + p["bk"]).reshape(B, Nk, h, d_k).transpose(0, 2, 1, 3)
    v = (values @ p["wv"] + p["bv"]).reshape(B, Nk, h, d_v).transpose(0, 2, 1, 3)
    att = jnp.einsum("bhqd,bhkd->bhqk", q, k) / math.sqrt(d_k)
    if attention_weights is not None:
        att = att * attention_weights
    if attention_mask is not None:
        att = jnp.where(jnp.broadcast_to(attention_mask, att.shape), -1e30, att)
    att = jax.nn.softmax(att, axis=-1)
    o = jnp.einsum("bhqk,bhkd->bhqd", att, v).transpose(0, 2, 1, 3)
    o = o.reshape(B, Nq, h * d_v) @ p["wo"] + p["bo"]
    x = _layer_norm(queries + o, p["ln1_g"], p["ln1_b"])
    ff = jnp.maximum(x @ p["w1"] + p["b1"], 0.0) @ p["w2"] + p["b2"]
    return _layer_norm(x + ff, p["ln2_g"], p["ln2_b"])


# ---------------------------------------------------------------------------
# deterministic parameter construction (synthetic init, no checkpoint)
# ---------------------------------------------------------------------------
def make_params(key, d_model, d_k, d_v, h, d_ff, scale=0.2):
    ks = jax.random.split(key, 6)
    s = scale
    return {
        "wq": s * jax.random.normal(ks[0], (d_model, h * d_k), jnp.float32),
        "bq": jnp.zeros((1, h * d_k), jnp.float32),
        "wk": s * jax.random.normal(ks[1], (d_model, h * d_k), jnp.float32),
        "bk": jnp.zeros((1, h * d_k), jnp.float32),
        "wv": s * jax.random.normal(ks[2], (d_model, h * d_v), jnp.float32),
        "bv": jnp.zeros((1, h * d_v), jnp.float32),
        "wo": s * jax.random.normal(ks[3], (h * d_v, d_model), jnp.float32),
        "bo": jnp.zeros((1, d_model), jnp.float32),
        "ln1_g": jnp.ones((1, d_model), jnp.float32),
        "ln1_b": jnp.zeros((1, d_model), jnp.float32),
        "w1": s * jax.random.normal(ks[4], (d_model, d_ff), jnp.float32),
        "b1": jnp.zeros((1, d_ff), jnp.float32),
        "w2": s * jax.random.normal(ks[5], (d_ff, d_model), jnp.float32),
        "b2": jnp.zeros((1, d_model), jnp.float32),
        "ln2_g": jnp.ones((1, d_model), jnp.float32),
        "ln2_b": jnp.zeros((1, d_model), jnp.float32),
    }


if __name__ == "__main__":
    # small shapes consistent with the module's forward (toy-scaled QueryLayer)
    B, Nq, Nk = 2, 8, 16
    d_model, d_k, d_v, h, d_ff = 32, 8, 8, 4, 64

    key = jax.random.PRNGKey(0)
    kq, kk, kv, kpe, kpm, kw, kp = jax.random.split(key, 7)
    queries = jax.random.normal(kq, (B, Nq, d_model), jnp.float32)
    keys = jax.random.normal(kk, (B, Nk, d_model), jnp.float32)
    values = jax.random.normal(kv, (B, Nk, d_model), jnp.float32)
    pos_enc = 0.1 * jax.random.normal(kpe, (B, Nq, d_model), jnp.float32)
    pos_emb = 0.1 * jax.random.normal(kpm, (B, Nk, d_model), jnp.float32)
    params = make_params(kp, d_model, d_k, d_v, h, d_ff)

    # padding-style mask (True = blocked) + multiplicative attention priors
    attention_mask = jnp.zeros((B, 1, 1, Nk), bool).at[1, :, :, Nk - 4:].set(True)
    attention_weights = 1.0 + 0.05 * jax.random.normal(
        kw, (B, h, Nq, Nk), jnp.float32)

    run = functools.partial(query_layer, h=h, d_k=d_k, d_v=d_v)

    # 1) default path (bf16 MXU operands, f32 accumulation), no mask
    out = jax.block_until_ready(run(queries, keys, values, params,
                                    pos_enc=pos_enc, pos_emb=pos_emb))
    ref = _reference(queries, keys, values, params, h=h, d_k=d_k, d_v=d_v,
                     pos_enc=pos_enc, pos_emb=pos_emb)
    assert out.shape == (B, Nq, d_model)
    # bf16 operands give a few-% drift vs the all-f32 reference
    assert float(jnp.max(jnp.abs(out - ref))) < 0.15, "unmasked path mismatch"

    # 2) masked + weighted path
    out_m = jax.block_until_ready(run(queries, keys, values, params,
                                      attention_mask=attention_mask,
                                      attention_weights=attention_weights,
                                      pos_enc=pos_enc, pos_emb=pos_emb))
    ref_m = _reference(queries, keys, values, params, h=h, d_k=d_k, d_v=d_v,
                       attention_mask=attention_mask,
                       attention_weights=attention_weights,
                       pos_enc=pos_enc, pos_emb=pos_emb)
    assert out_m.shape == (B, Nq, d_model)
    assert float(jnp.max(jnp.abs(out_m - ref_m))) < 0.15, "masked path mismatch"

    print("KERNEL_OK")
</pallas_src>

<mosaic_0001>
module attributes {stable_mosaic.version = 11 : i64} {
  func.func @_query_layer_kernel(%arg0: i32, %arg1: memref<2x8x32xf32, #tpu.memory_space<vmem>>, %arg2: memref<2x16x32xf32, #tpu.memory_space<vmem>>, %arg3: memref<2x16x32xf32, #tpu.memory_space<vmem>>, %arg4: memref<2x8x32xf32, #tpu.memory_space<vmem>>, %arg5: memref<2x16x32xf32, #tpu.memory_space<vmem>>, %arg6: memref<32x32xbf16, #tpu.memory_space<vmem>>, %arg7: memref<1x32xf32, #tpu.memory_space<vmem>>, %arg8: memref<32x32xbf16, #tpu.memory_space<vmem>>, %arg9: memref<1x32xf32, #tpu.memory_space<vmem>>, %arg10: memref<32x32xbf16, #tpu.memory_space<vmem>>, %arg11: memref<1x32xf32, #tpu.memory_space<vmem>>, %arg12: memref<32x32xbf16, #tpu.memory_space<vmem>>, %arg13: memref<1x32xf32, #tpu.memory_space<vmem>>, %arg14: memref<1x32xf32, #tpu.memory_space<vmem>>, %arg15: memref<1x32xf32, #tpu.memory_space<vmem>>, %arg16: memref<32x64xbf16, #tpu.memory_space<vmem>>, %arg17: memref<1x64xf32, #tpu.memory_space<vmem>>, %arg18: memref<64x32xbf16, #tpu.memory_space<vmem>>, %arg19: memref<1x32xf32, #tpu.memory_space<vmem>>, %arg20: memref<1x32xf32, #tpu.memory_space<vmem>>, %arg21: memref<1x32xf32, #tpu.memory_space<vmem>>, %arg22: memref<2x8x32xf32, #tpu.memory_space<vmem>>) attributes {dimension_semantics = [#tpu.dimension_semantics<parallel>], iteration_bounds = array<i64: 1>, scalar_prefetch = 0 : i64, scratch_operands = 0 : i64, tpu.core_type = #tpu.core_type<tc>, window_params = [{transform_indices = @transform_0, window_bounds = array<i64: 2, 8, 32>}, {transform_indices = @transform_1, window_bounds = array<i64: 2, 16, 32>}, {transform_indices = @transform_2, window_bounds = array<i64: 2, 16, 32>}, {transform_indices = @transform_3, window_bounds = array<i64: 2, 8, 32>}, {transform_indices = @transform_4, window_bounds = array<i64: 2, 16, 32>}, {pipeline_mode = #tpu.pipeline_mode<synchronous>, transform_indices = @transform_5, window_bounds = array<i64: 32, 32>}, {pipeline_mode = #tpu.pipeline_mode<synchronous>, transform_indices = @transform_6, window_bounds = array<i64: 1, 32>}, {pipeline_mode = #tpu.pipeline_mode<synchronous>, transform_indices = @transform_7, window_bounds = array<i64: 32, 32>}, {pipeline_mode = #tpu.pipeline_mode<synchronous>, transform_indices = @transform_8, window_bounds = array<i64: 1, 32>}, {pipeline_mode = #tpu.pipeline_mode<synchronous>, transform_indices = @transform_9, window_bounds = array<i64: 32, 32>}, {pipeline_mode = #tpu.pipeline_mode<synchronous>, transform_indices = @transform_10, window_bounds = array<i64: 1, 32>}, {pipeline_mode = #tpu.pipeline_mode<synchronous>, transform_indices = @transform_11, window_bounds = array<i64: 32, 32>}, {pipeline_mode = #tpu.pipeline_mode<synchronous>, transform_indices = @transform_12, window_bounds = array<i64: 1, 32>}, {pipeline_mode = #tpu.pipeline_mode<synchronous>, transform_indices = @transform_13, window_bounds = array<i64: 1, 32>}, {pipeline_mode = #tpu.pipeline_mode<synchronous>, transform_indices = @transform_14, window_bounds = array<i64: 1, 32>}, {pipeline_mode = #tpu.pipeline_mode<synchronous>, transform_indices = @transform_15, window_bounds = array<i64: 32, 64>}, {pipeline_mode = #tpu.pipeline_mode<synchronous>, transform_indices = @transform_16, window_bounds = array<i64: 1, 64>}, {pipeline_mode = #tpu.pipeline_mode<synchronous>, transform_indices = @transform_17, window_bounds = array<i64: 64, 32>}, {pipeline_mode = #tpu.pipeline_mode<synchronous>, transform_indices = @transform_18, window_bounds = array<i64: 1, 32>}, {pipeline_mode = #tpu.pipeline_mode<synchronous>, transform_indices = @transform_19, window_bounds = array<i64: 1, 32>}, {pipeline_mode = #tpu.pipeline_mode<synchronous>, transform_indices = @transform_20, window_bounds = array<i64: 1, 32>}, {transform_indices = @transform_21, window_bounds = array<i64: 2, 8, 32>}]} {
    %c0 = arith.constant 0 : index
    %c0_0 = arith.constant 0 : index
    %c0_1 = arith.constant 0 : index
    %0 = vector.load %arg1[%c0, %c0_0, %c0_1] : memref<2x8x32xf32, #tpu.memory_space<vmem>>, vector<2x8x32xf32>
    %c0_2 = arith.constant 0 : index
    %c0_3 = arith.constant 0 : index
    %c0_4 = arith.constant 0 : index
    %1 = vector.load %arg2[%c0_2, %c0_3, %c0_4] : memref<2x16x32xf32, #tpu.memory_space<vmem>>, vector<2x16x32xf32>
    %c0_5 = arith.constant 0 : index
    %c0_6 = arith.constant 0 : index
    %c0_7 = arith.constant 0 : index
    %2 = vector.load %arg3[%c0_5, %c0_6, %c0_7] : memref<2x16x32xf32, #tpu.memory_space<vmem>>, vector<2x16x32xf32>
    %c0_8 = arith.constant 0 : index
    %c0_9 = arith.constant 0 : index
    %c0_10 = arith.constant 0 : index
    %3 = vector.load %arg4[%c0_8, %c0_9, %c0_10] : memref<2x8x32xf32, #tpu.memory_space<vmem>>, vector<2x8x32xf32>
    %4 = arith.addf %0, %3 : vector<2x8x32xf32>
    %c0_11 = arith.constant 0 : index
    %c0_12 = arith.constant 0 : index
    %c0_13 = arith.constant 0 : index
    %5 = vector.load %arg5[%c0_11, %c0_12, %c0_13] : memref<2x16x32xf32, #tpu.memory_space<vmem>>, vector<2x16x32xf32>
    %6 = arith.addf %1, %5 : vector<2x16x32xf32>
    %7 = arith.addf %2, %5 : vector<2x16x32xf32>
    %8 = vector.shape_cast %4 : vector<2x8x32xf32> to vector<16x32xf32>
    %9 = vector.shape_cast %6 : vector<2x16x32xf32> to vector<32x32xf32>
    %10 = vector.shape_cast %7 : vector<2x16x32xf32> to vector<32x32xf32>
    %11 = arith.truncf %8 : vector<16x32xf32> to vector<16x32xbf16>
    %c0_14 = arith.constant 0 : index
    %c0_15 = arith.constant 0 : index
    %12 = vector.load %arg6[%c0_14, %c0_15] : memref<32x32xbf16, #tpu.memory_space<vmem>>, vector<32x32xbf16>
    %cst = arith.constant dense<0.000000e+00> : vector<16x32xf32>
    %13 = tpu.matmul %11, %12, %cst {dimension_numbers = #tpu.dot_dimension_numbers<[1], [0], [0], [1], [0, 0, 1, 1], [], []>} : vector<16x32xbf16>, vector<32x32xbf16>, vector<16x32xf32> -> vector<16x32xf32>
    %c0_16 = arith.constant 0 : index
    %c0_17 = arith.constant 0 : index
    %14 = vector.load %arg7[%c0_16, %c0_17] : memref<1x32xf32, #tpu.memory_space<vmem>>, vector<1x32xf32>
    %15 = vector.broadcast %14 : vector<1x32xf32> to vector<16x32xf32>
    %16 = arith.addf %13, %15 : vector<16x32xf32>
    %17 = arith.truncf %9 : vector<32x32xf32> to vector<32x32xbf16>
    %c0_18 = arith.constant 0 : index
    %c0_19 = arith.constant 0 : index
    %18 = vector.load %arg8[%c0_18, %c0_19] : memref<32x32xbf16, #tpu.memory_space<vmem>>, vector<32x32xbf16>
    %cst_20 = arith.constant dense<0.000000e+00> : vector<32x32xf32>
    %19 = tpu.matmul %17, %18, %cst_20 {dimension_numbers = #tpu.dot_dimension_numbers<[1], [0], [0], [1], [0, 0, 1, 1], [], []>} : vector<32x32xbf16>, vector<32x32xbf16>, vector<32x32xf32> -> vector<32x32xf32>
    %c0_21 = arith.constant 0 : index
    %c0_22 = arith.constant 0 : index
    %20 = vector.load %arg9[%c0_21, %c0_22] : memref<1x32xf32, #tpu.memory_space<vmem>>, vector<1x32xf32>
    %21 = vector.broadcast %20 : vector<1x32xf32> to vector<32x32xf32>
    %22 = arith.addf %19, %21 : vector<32x32xf32>
    %23 = arith.truncf %10 : vector<32x32xf32> to vector<32x32xbf16>
    %c0_23 = arith.constant 0 : index
    %c0_24 = arith.constant 0 : index
    %24 = vector.load %arg10[%c0_23, %c0_24] : memref<32x32xbf16, #tpu.memory_space<vmem>>, vector<32x32xbf16>
    %cst_25 = arith.constant dense<0.000000e+00> : vector<32x32xf32>
    %25 = tpu.matmul %23, %24, %cst_25 {dimension_numbers = #tpu.dot_dimension_numbers<[1], [0], [0], [1], [0, 0, 1, 1], [], []>} : vector<32x32xbf16>, vector<32x32xbf16>, vector<32x32xf32> -> vector<32x32xf32>
    %c0_26 = arith.constant 0 : index
    %c0_27 = arith.constant 0 : index
    %26 = vector.load %arg11[%c0_26, %c0_27] : memref<1x32xf32, #tpu.memory_space<vmem>>, vector<1x32xf32>
    %27 = vector.broadcast %26 : vector<1x32xf32> to vector<32x32xf32>
    %28 = arith.addf %25, %27 : vector<32x32xf32>
    %29 = vector.shape_cast %16 : vector<16x32xf32> to vector<16x4x8xf32>
    %30 = tpu.transpose %29, [1, 0, 2] : vector<16x4x8xf32> -> vector<4x16x8xf32>
    %31 = vector.shape_cast %30 : vector<4x16x8xf32> to vector<8x8x8xf32>
    %32 = vector.shape_cast %22 : vector<32x32xf32> to vector<32x4x8xf32>
    %33 = tpu.transpose %32, [1, 0, 2] : vector<32x4x8xf32> -> vector<4x32x8xf32>
    %34 = vector.shape_cast %33 : vector<4x32x8xf32> to vector<8x16x8xf32>
    %35 = vector.shape_cast %28 : vector<32x32xf32> to vector<32x4x8xf32>
    %36 = tpu.transpose %35, [1, 0, 2] : vector<32x4x8xf32> -> vector<4x32x8xf32>
    %37 = vector.shape_cast %36 : vector<4x32x8xf32> to vector<8x16x8xf32>
    %38 = arith.truncf %31 : vector<8x8x8xf32> to vector<8x8x8xbf16>
    %39 = arith.truncf %34 : vector<8x16x8xf32> to vector<8x16x8xbf16>
    "tpu.trace_start"() <{level = 10 : i32, message = "gqd,gkd->gqk"}> : () -> ()
    %cst_28 = arith.constant dense<0.000000e+00> : vector<8x8x16xf32>
    %40 = tpu.matmul %38, %39, %cst_28 {dimension_numbers = #tpu.dot_dimension_numbers<[2], [2], [1], [1], [0, 0, 0, 1, 1, 1], [0], [0]>} : vector<8x8x8xbf16>, vector<8x16x8xbf16>, vector<8x8x16xf32> -> vector<8x8x16xf32>
    "tpu.trace_stop"() : () -> ()
    %cst_29 = arith.constant 0.353553385 : f32
    %41 = vector.broadcast %cst_29 : f32 to vector<8x8x16xf32>
    %42 = arith.mulf %40, %41 : vector<8x8x16xf32>
    %cst_30 = arith.constant dense<0xFF800000> : vector<8x8xf32>
    %43 = vector.multi_reduction <maximumf>, %42, %cst_30 [2] : vector<8x8x16xf32> to vector<8x8xf32>
    %44 = vector.shape_cast %43 : vector<8x8xf32> to vector<8x8x1xf32>
    %45 = vector.broadcast %44 : vector<8x8x1xf32> to vector<8x8x16xf32>
    %46 = arith.subf %42, %45 : vector<8x8x16xf32>
    %47 = math.exp %46 : vector<8x8x16xf32>
    %cst_31 = arith.constant dense<0.000000e+00> : vector<8x8xf32>
    %48 = vector.multi_reduction <add>, %47, %cst_31 [2] : vector<8x8x16xf32> to vector<8x8xf32>
    %49 = vector.shape_cast %48 : vector<8x8xf32> to vector<8x8x1xf32>
    %50 = tpu.reciprocal %49 {approx = true} : vector<8x8x1xf32> -> vector<8x8x1xf32>
    %51 = vector.broadcast %50 : vector<8x8x1xf32> to vector<8x8x16xf32>
    %52 = arith.mulf %47, %51 : vector<8x8x16xf32>
    %53 = arith.truncf %52 : vector<8x8x16xf32> to vector<8x8x16xbf16>
    %54 = arith.truncf %37 : vector<8x16x8xf32> to vector<8x16x8xbf16>
    "tpu.trace_start"() <{level = 10 : i32, message = "gqk,gkd->gqd"}> : () -> ()
    %cst_32 = arith.constant dense<0.000000e+00> : vector<8x8x8xf32>
    %55 = tpu.matmul %53, %54, %cst_32 {dimension_numbers = #tpu.dot_dimension_numbers<[2], [1], [1], [2], [0, 0, 0, 1, 1, 2], [0], [0]>} : vector<8x8x16xbf16>, vector<8x16x8xbf16>, vector<8x8x8xf32> -> vector<8x8x8xf32>
    "tpu.trace_stop"() : () -> ()
    %56 = vector.shape_cast %55 : vector<8x8x8xf32> to vector<4x16x8xf32>
    %57 = tpu.transpose %56, [1, 0, 2] : vector<4x16x8xf32> -> vector<16x4x8xf32>
    %58 = vector.shape_cast %57 : vector<16x4x8xf32> to vector<16x32xf32>
    %59 = arith.truncf %58 : vector<16x32xf32> to vector<16x32xbf16>
    %c0_33 = arith.constant 0 : index
    %c0_34 = arith.constant 0 : index
    %60 = vector.load %arg12[%c0_33, %c0_34] : memref<32x32xbf16, #tpu.memory_space<vmem>>, vector<32x32xbf16>
    %cst_35 = arith.constant dense<0.000000e+00> : vector<16x32xf32>
    %61 = tpu.matmul %59, %60, %cst_35 {dimension_numbers = #tpu.dot_dimension_numbers<[1], [0], [0], [1], [0, 0, 1, 1], [], []>} : vector<16x32xbf16>, vector<32x32xbf16>, vector<16x32xf32> -> vector<16x32xf32>
    %c0_36 = arith.constant 0 : index
    %c0_37 = arith.constant 0 : index
    %62 = vector.load %arg13[%c0_36, %c0_37] : memref<1x32xf32, #tpu.memory_space<vmem>>, vector<1x32xf32>
    %63 = vector.broadcast %62 : vector<1x32xf32> to vector<16x32xf32>
    %64 = arith.addf %61, %63 : vector<16x32xf32>
    %65 = arith.addf %8, %64 : vector<16x32xf32>
    %c0_38 = arith.constant 0 : index
    %c0_39 = arith.constant 0 : index
    %66 = vector.load %arg14[%c0_38, %c0_39] : memref<1x32xf32, #tpu.memory_space<vmem>>, vector<1x32xf32>
    %c0_40 = arith.constant 0 : index
    %c0_41 = arith.constant 0 : index
    %67 = vector.load %arg15[%c0_40, %c0_41] : memref<1x32xf32, #tpu.memory_space<vmem>>, vector<1x32xf32>
    %cst_42 = arith.constant dense<0.000000e+00> : vector<16xf32>
    %68 = vector.multi_reduction <add>, %65, %cst_42 [1] : vector<16x32xf32> to vector<16xf32>
    %69 = vector.shape_cast %68 : vector<16xf32> to vector<16x1xf32>
    %cst_43 = arith.constant 3.200000e+01 : f32
    %70 = vector.broadcast %cst_43 : f32 to vector<16x1xf32>
    %71 = arith.divf %69, %70 : vector<16x1xf32>
    %72 = vector.broadcast %71 : vector<16x1xf32> to vector<16x32xf32>
    %73 = arith.subf %65, %72 : vector<16x32xf32>
    %74 = arith.mulf %73, %73 : vector<16x32xf32>
    %cst_44 = arith.constant dense<0.000000e+00> : vector<16xf32>
    %75 = vector.multi_reduction <add>, %74, %cst_44 [1] : vector<16x32xf32> to vector<16xf32>
    %76 = vector.shape_cast %75 : vector<16xf32> to vector<16x1xf32>
    %cst_45 = arith.constant 3.200000e+01 : f32
    %77 = vector.broadcast %cst_45 : f32 to vector<16x1xf32>
    %78 = arith.divf %76, %77 : vector<16x1xf32>
    %79 = vector.broadcast %71 : vector<16x1xf32> to vector<16x32xf32>
    %80 = arith.subf %65, %79 : vector<16x32xf32>
    %cst_46 = arith.constant 9.99999974E-6 : f32
    %81 = vector.broadcast %cst_46 : f32 to vector<16x1xf32>
    %82 = arith.addf %78, %81 : vector<16x1xf32>
    %83 = math.rsqrt %82 : vector<16x1xf32>
    %84 = vector.broadcast %83 : vector<16x1xf32> to vector<16x32xf32>
    %85 = arith.mulf %80, %84 : vector<16x32xf32>
    %86 = vector.broadcast %66 : vector<1x32xf32> to vector<16x32xf32>
    %87 = arith.mulf %85, %86 : vector<16x32xf32>
    %88 = vector.broadcast %67 : vector<1x32xf32> to vector<16x32xf32>
    %89 = arith.addf %87, %88 : vector<16x32xf32>
    %90 = arith.truncf %89 : vector<16x32xf32> to vector<16x32xbf16>
    %c0_47 = arith.constant 0 : index
    %c0_48 = arith.constant 0 : index
    %91 = vector.load %arg16[%c0_47, %c0_48] : memref<32x64xbf16, #tpu.memory_space<vmem>>, vector<32x64xbf16>
    %cst_49 = arith.constant dense<0.000000e+00> : vector<16x64xf32>
    %92 = tpu.matmul %90, %91, %cst_49 {dimension_numbers = #tpu.dot_dimension_numbers<[1], [0], [0], [1], [0, 0, 1, 1], [], []>} : vector<16x32xbf16>, vector<32x64xbf16>, vector<16x64xf32> -> vector<16x64xf32>
    %c0_50 = arith.constant 0 : index
    %c0_51 = arith.constant 0 : index
    %93 = vector.load %arg17[%c0_50, %c0_51] : memref<1x64xf32, #tpu.memory_space<vmem>>, vector<1x64xf32>
    %94 = vector.broadcast %93 : vector<1x64xf32> to vector<16x64xf32>
    %95 = arith.addf %92, %94 : vector<16x64xf32>
    %cst_52 = arith.constant 0.000000e+00 : f32
    %96 = vector.broadcast %cst_52 : f32 to vector<16x64xf32>
    %97 = arith.maximumf %95, %96 : vector<16x64xf32>
    %98 = arith.truncf %97 : vector<16x64xf32> to vector<16x64xbf16>
    %c0_53 = arith.constant 0 : index
    %c0_54 = arith.constant 0 : index
    %99 = vector.load %arg18[%c0_53, %c0_54] : memref<64x32xbf16, #tpu.memory_space<vmem>>, vector<64x32xbf16>
    %cst_55 = arith.constant dense<0.000000e+00> : vector<16x32xf32>
    %100 = tpu.matmul %98, %99, %cst_55 {dimension_numbers = #tpu.dot_dimension_numbers<[1], [0], [0], [1], [0, 0, 1, 1], [], []>} : vector<16x64xbf16>, vector<64x32xbf16>, vector<16x32xf32> -> vector<16x32xf32>
    %c0_56 = arith.constant 0 : index
    %c0_57 = arith.constant 0 : index
    %101 = vector.load %arg19[%c0_56, %c0_57] : memref<1x32xf32, #tpu.memory_space<vmem>>, vector<1x32xf32>
    %102 = vector.broadcast %101 : vector<1x32xf32> to vector<16x32xf32>
    %103 = arith.addf %100, %102 : vector<16x32xf32>
    %104 = arith.addf %89, %103 : vector<16x32xf32>
    %c0_58 = arith.constant 0 : index
    %c0_59 = arith.constant 0 : index
    %105 = vector.load %arg20[%c0_58, %c0_59] : memref<1x32xf32, #tpu.memory_space<vmem>>, vector<1x32xf32>
    %c0_60 = arith.constant 0 : index
    %c0_61 = arith.constant 0 : index
    %106 = vector.load %arg21[%c0_60, %c0_61] : memref<1x32xf32, #tpu.memory_space<vmem>>, vector<1x32xf32>
    %cst_62 = arith.constant dense<0.000000e+00> : vector<16xf32>
    %107 = vector.multi_reduction <add>, %104, %cst_62 [1] : vector<16x32xf32> to vector<16xf32>
    %108 = vector.shape_cast %107 : vector<16xf32> to vector<16x1xf32>
    %cst_63 = arith.constant 3.200000e+01 : f32
    %109 = vector.broadcast %cst_63 : f32 to vector<16x1xf32>
    %110 = arith.divf %108, %109 : vector<16x1xf32>
    %111 = vector.broadcast %110 : vector<16x1xf32> to vector<16x32xf32>
    %112 = arith.subf %104, %111 : vector<16x32xf32>
    %113 = arith.mulf %112, %112 : vector<16x32xf32>
    %cst_64 = arith.constant dense<0.000000e+00> : vector<16xf32>
    %114 = vector.multi_reduction <add>, %113, %cst_64 [1] : vector<16x32xf32> to vector<16xf32>
    %115 = vector.shape_cast %114 : vector<16xf32> to vector<16x1xf32>
    %cst_65 = arith.constant 3.200000e+01 : f32
    %116 = vector.broadcast %cst_65 : f32 to vector<16x1xf32>
    %117 = arith.divf %115, %116 : vector<16x1xf32>
    %118 = vector.broadcast %110 : vector<16x1xf32> to vector<16x32xf32>
    %119 = arith.subf %104, %118 : vector<16x32xf32>
    %cst_66 = arith.constant 9.99999974E-6 : f32
    %120 = vector.broadcast %cst_66 : f32 to vector<16x1xf32>
    %121 = arith.addf %117, %120 : vector<16x1xf32>
    %122 = math.rsqrt %121 : vector<16x1xf32>
    %123 = vector.broadcast %122 : vector<16x1xf32> to vector<16x32xf32>
    %124 = arith.mulf %119, %123 : vector<16x32xf32>
    %125 = vector.broadcast %105 : vector<1x32xf32> to vector<16x32xf32>
    %126 = arith.mulf %124, %125 : vector<16x32xf32>
    %127 = vector.broadcast %106 : vector<1x32xf32> to vector<16x32xf32>
    %128 = arith.addf %126, %127 : vector<16x32xf32>
    %129 = vector.shape_cast %128 : vector<16x32xf32> to vector<2x8x32xf32>
    %c0_67 = arith.constant 0 : index
    %c0_68 = arith.constant 0 : index
    %c0_69 = arith.constant 0 : index
    %130 = vector.load %arg22[%c0_67, %c0_68, %c0_69] : memref<2x8x32xf32, #tpu.memory_space<vmem>>, vector<2x8x32xf32>
    tpu.vector_store %arg22[%c0_67, %c0_68, %c0_69], %129 {strides = array<i32>} : memref<2x8x32xf32, #tpu.memory_space<vmem>>, vector<2x8x32xf32>,
    return
  }
  func.func @transform_0(%arg0: i32) -> (i32, i32, i32) {
    %c0_i32 = arith.constant 0 : i32
    %c0_i32_0 = arith.constant 0 : i32
    %c0_i32_1 = arith.constant 0 : i32
    return %arg0, %c0_i32, %c0_i32_0 : i32, i32, i32
  }
  func.func @transform_1(%arg0: i32) -> (i32, i32, i32) {
    %c0_i32 = arith.constant 0 : i32
    %c0_i32_0 = arith.constant 0 : i32
    %c0_i32_1 = arith.constant 0 : i32
    return %arg0, %c0_i32, %c0_i32_0 : i32, i32, i32
  }
  func.func @transform_2(%arg0: i32) -> (i32, i32, i32) {
    %c0_i32 = arith.constant 0 : i32
    %c0_i32_0 = arith.constant 0 : i32
    %c0_i32_1 = arith.constant 0 : i32
    return %arg0, %c0_i32, %c0_i32_0 : i32, i32, i32
  }
  func.func @transform_3(%arg0: i32) -> (i32, i32, i32) {
    %c0_i32 = arith.constant 0 : i32
    %c0_i32_0 = arith.constant 0 : i32
    %c0_i32_1 = arith.constant 0 : i32
    return %arg0, %c0_i32, %c0_i32_0 : i32, i32, i32
  }
  func.func @transform_4(%arg0: i32) -> (i32, i32, i32) {
    %c0_i32 = arith.constant 0 : i32
    %c0_i32_0 = arith.constant 0 : i32
    %c0_i32_1 = arith.constant 0 : i32
    return %arg0, %c0_i32, %c0_i32_0 : i32, i32, i32
  }
  func.func @transform_5(%arg0: i32) -> (i32, i32) {
    %c0_i32 = arith.constant 0 : i32
    %c0_i32_0 = arith.constant 0 : i32
    %c0_i32_1 = arith.constant 0 : i32
    return %c0_i32, %c0_i32_0 : i32, i32
  }
  func.func @transform_6(%arg0: i32) -> (i32, i32) {
    %c0_i32 = arith.constant 0 : i32
    %c0_i32_0 = arith.constant 0 : i32
    %c0_i32_1 = arith.constant 0 : i32
    return %c0_i32, %c0_i32_0 : i32, i32
  }
  func.func @transform_7(%arg0: i32) -> (i32, i32) {
    %c0_i32 = arith.constant 0 : i32
    %c0_i32_0 = arith.constant 0 : i32
    %c0_i32_1 = arith.constant 0 : i32
    return %c0_i32, %c0_i32_0 : i32, i32
  }
  func.func @transform_8(%arg0: i32) -> (i32, i32) {
    %c0_i32 = arith.constant 0 : i32
    %c0_i32_0 = arith.constant 0 : i32
    %c0_i32_1 = arith.constant 0 : i32
    return %c0_i32, %c0_i32_0 : i32, i32
  }
  func.func @transform_9(%arg0: i32) -> (i32, i32) {
    %c0_i32 = arith.constant 0 : i32
    %c0_i32_0 = arith.constant 0 : i32
    %c0_i32_1 = arith.constant 0 : i32
    return %c0_i32, %c0_i32_0 : i32, i32
  }
  func.func @transform_10(%arg0: i32) -> (i32, i32) {
    %c0_i32 = arith.constant 0 : i32
    %c0_i32_0 = arith.constant 0 : i32
    %c0_i32_1 = arith.constant 0 : i32
    return %c0_i32, %c0_i32_0 : i32, i32
  }
  func.func @transform_11(%arg0: i32) -> (i32, i32) {
    %c0_i32 = arith.constant 0 : i32
    %c0_i32_0 = arith.constant 0 : i32
    %c0_i32_1 = arith.constant 0 : i32
    return %c0_i32, %c0_i32_0 : i32, i32
  }
  func.func @transform_12(%arg0: i32) -> (i32, i32) {
    %c0_i32 = arith.constant 0 : i32
    %c0_i32_0 = arith.constant 0 : i32
    %c0_i32_1 = arith.constant 0 : i32
    return %c0_i32, %c0_i32_0 : i32, i32
  }
  func.func @transform_13(%arg0: i32) -> (i32, i32) {
    %c0_i32 = arith.constant 0 : i32
    %c0_i32_0 = arith.constant 0 : i32
    %c0_i32_1 = arith.constant 0 : i32
    return %c0_i32, %c0_i32_0 : i32, i32
  }
  func.func @transform_14(%arg0: i32) -> (i32, i32) {
    %c0_i32 = arith.constant 0 : i32
    %c0_i32_0 = arith.constant 0 : i32
    %c0_i32_1 = arith.constant 0 : i32
    return %c0_i32, %c0_i32_0 : i32, i32
  }
  func.func @transform_15(%arg0: i32) -> (i32, i32) {
    %c0_i32 = arith.constant 0 : i32
    %c0_i32_0 = arith.constant 0 : i32
    %c0_i32_1 = arith.constant 0 : i32
    return %c0_i32, %c0_i32_0 : i32, i32
  }
  func.func @transform_16(%arg0: i32) -> (i32, i32) {
    %c0_i32 = arith.constant 0 : i32
    %c0_i32_0 = arith.constant 0 : i32
    %c0_i32_1 = arith.constant 0 : i32
    return %c0_i32, %c0_i32_0 : i32, i32
  }
  func.func @transform_17(%arg0: i32) -> (i32, i32) {
    %c0_i32 = arith.constant 0 : i32
    %c0_i32_0 = arith.constant 0 : i32
    %c0_i32_1 = arith.constant 0 : i32
    return %c0_i32, %c0_i32_0 : i32, i32
  }
  func.func @transform_18(%arg0: i32) -> (i32, i32) {
    %c0_i32 = arith.constant 0 : i32
    %c0_i32_0 = arith.constant 0 : i32
    %c0_i32_1 = arith.constant 0 : i32
    return %c0_i32, %c0_i32_0 : i32, i32
  }
  func.func @transform_19(%arg0: i32) -> (i32, i32) {
    %c0_i32 = arith.constant 0 : i32
    %c0_i32_0 = arith.constant 0 : i32
    %c0_i32_1 = arith.constant 0 : i32
    return %c0_i32, %c0_i32_0 : i32, i32
  }
  func.func @transform_20(%arg0: i32) -> (i32, i32) {
    %c0_i32 = arith.constant 0 : i32
    %c0_i32_0 = arith.constant 0 : i32
    %c0_i32_1 = arith.constant 0 : i32
    return %c0_i32, %c0_i32_0 : i32, i32
  }
  func.func @transform_21(%arg0: i32) -> (i32, i32, i32) {
    %c0_i32 = arith.constant 0 : i32
    %c0_i32_0 = arith.constant 0 : i32
    %c0_i32_1 = arith.constant 0 : i32
    return %arg0, %c0_i32, %c0_i32_0 : i32, i32, i32
  }
}

module attributes {stable_mosaic.version = 11 : i64} {
  func.func @_query_layer_kernel(%arg0: i32, %arg1: memref<2x8x32xf32, #tpu.memory_space<vmem>>, %arg2: memref<2x16x32xf32, #tpu.memory_space<vmem>>, %arg3: memref<2x16x32xf32, #tpu.memory_space<vmem>>, %arg4: memref<2x8x32xf32, #tpu.memory_space<vmem>>, %arg5: memref<2x16x32xf32, #tpu.memory_space<vmem>>, %arg6: memref<32x32xbf16, #tpu.memory_space<vmem>>, %arg7: memref<1x32xf32, #tpu.memory_space<vmem>>, %arg8: memref<32x32xbf16, #tpu.memory_space<vmem>>, %arg9: memref<1x32xf32, #tpu.memory_space<vmem>>, %arg10: memref<32x32xbf16, #tpu.memory_space<vmem>>, %arg11: memref<1x32xf32, #tpu.memory_space<vmem>>, %arg12: memref<32x32xbf16, #tpu.memory_space<vmem>>, %arg13: memref<1x32xf32, #tpu.memory_space<vmem>>, %arg14: memref<1x32xf32, #tpu.memory_space<vmem>>, %arg15: memref<1x32xf32, #tpu.memory_space<vmem>>, %arg16: memref<32x64xbf16, #tpu.memory_space<vmem>>, %arg17: memref<1x64xf32, #tpu.memory_space<vmem>>, %arg18: memref<64x32xbf16, #tpu.memory_space<vmem>>, %arg19: memref<1x32xf32, #tpu.memory_space<vmem>>, %arg20: memref<1x32xf32, #tpu.memory_space<vmem>>, %arg21: memref<1x32xf32, #tpu.memory_space<vmem>>, %arg22: memref<2x8x32xf32, #tpu.memory_space<vmem>>) attributes {dimension_semantics = [#tpu.dimension_semantics<parallel>], iteration_bounds = array<i64: 1>, scalar_prefetch = 0 : i64, scratch_operands = 0 : i64, tpu.core_type = #tpu.core_type<tc>, window_params = [{transform_indices = @transform_0, window_bounds = array<i64: 2, 8, 32>}, {transform_indices = @transform_1, window_bounds = array<i64: 2, 16, 32>}, {transform_indices = @transform_2, window_bounds = array<i64: 2, 16, 32>}, {transform_indices = @transform_3, window_bounds = array<i64: 2, 8, 32>}, {transform_indices = @transform_4, window_bounds = array<i64: 2, 16, 32>}, {pipeline_mode = #tpu.pipeline_mode<synchronous>, transform_indices = @transform_5, window_bounds = array<i64: 32, 32>}, {pipeline_mode = #tpu.pipeline_mode<synchronous>, transform_indices = @transform_6, window_bounds = array<i64: 1, 32>}, {pipeline_mode = #tpu.pipeline_mode<synchronous>, transform_indices = @transform_7, window_bounds = array<i64: 32, 32>}, {pipeline_mode = #tpu.pipeline_mode<synchronous>, transform_indices = @transform_8, window_bounds = array<i64: 1, 32>}, {pipeline_mode = #tpu.pipeline_mode<synchronous>, transform_indices = @transform_9, window_bounds = array<i64: 32, 32>}, {pipeline_mode = #tpu.pipeline_mode<synchronous>, transform_indices = @transform_10, window_bounds = array<i64: 1, 32>}, {pipeline_mode = #tpu.pipeline_mode<synchronous>, transform_indices = @transform_11, window_bounds = array<i64: 32, 32>}, {pipeline_mode = #tpu.pipeline_mode<synchronous>, transform_indices = @transform_12, window_bounds = array<i64: 1, 32>}, {pipeline_mode = #tpu.pipeline_mode<synchronous>, transform_indices = @transform_13, window_bounds = array<i64: 1, 32>}, {pipeline_mode = #tpu.pipeline_mode<synchronous>, transform_indices = @transform_14, window_bounds = array<i64: 1, 32>}, {pipeline_mode = #tpu.pipeline_mode<synchronous>, transform_indices = @transform_15, window_bounds = array<i64: 32, 64>}, {pipeline_mode = #tpu.pipeline_mode<synchronous>, transform_indices = @transform_16, window_bounds = array<i64: 1, 64>}, {pipeline_mode = #tpu.pipeline_mode<synchronous>, transform_indices = @transform_17, window_bounds = array<i64: 64, 32>}, {pipeline_mode = #tpu.pipeline_mode<synchronous>, transform_indices = @transform_18, window_bounds = array<i64: 1, 32>}, {pipeline_mode = #tpu.pipeline_mode<synchronous>, transform_indices = @transform_19, window_bounds = array<i64: 1, 32>}, {pipeline_mode = #tpu.pipeline_mode<synchronous>, transform_indices = @transform_20, window_bounds = array<i64: 1, 32>}, {transform_indices = @transform_21, window_bounds = array<i64: 2, 8, 32>}]} {
    %c0 = arith.constant 0 : index
    %c0_0 = arith.constant 0 : index
    %c0_1 = arith.constant 0 : index
    %0 = vector.load %arg1[%c0, %c0_0, %c0_1] : memref<2x8x32xf32, #tpu.memory_space<vmem>>, vector<2x8x32xf32>
    %c0_2 = arith.constant 0 : index
    %c0_3 = arith.constant 0 : index
    %c0_4 = arith.constant 0 : index
    %1 = vector.load %arg2[%c0_2, %c0_3, %c0_4] : memref<2x16x32xf32, #tpu.memory_space<vmem>>, vector<2x16x32xf32>
    %c0_5 = arith.constant 0 : index
    %c0_6 = arith.constant 0 : index
    %c0_7 = arith.constant 0 : index
    %2 = vector.load %arg3[%c0_5, %c0_6, %c0_7] : memref<2x16x32xf32, #tpu.memory_space<vmem>>, vector<2x16x32xf32>
    %c0_8 = arith.constant 0 : index
    %c0_9 = arith.constant 0 : index
    %c0_10 = arith.constant 0 : index
    %3 = vector.load %arg4[%c0_8, %c0_9, %c0_10] : memref<2x8x32xf32, #tpu.memory_space<vmem>>, vector<2x8x32xf32>
    %4 = arith.addf %0, %3 : vector<2x8x32xf32>
    %c0_11 = arith.constant 0 : index
    %c0_12 = arith.constant 0 : index
    %c0_13 = arith.constant 0 : index
    %5 = vector.load %arg5[%c0_11, %c0_12, %c0_13] : memref<2x16x32xf32, #tpu.memory_space<vmem>>, vector<2x16x32xf32>
    %6 = arith.addf %1, %5 : vector<2x16x32xf32>
    %7 = arith.addf %2, %5 : vector<2x16x32xf32>
    %8 = vector.shape_cast %4 : vector<2x8x32xf32> to vector<16x32xf32>
    %9 = vector.shape_cast %6 : vector<2x16x32xf32> to vector<32x32xf32>
    %10 = vector.shape_cast %7 : vector<2x16x32xf32> to vector<32x32xf32>
    %11 = arith.truncf %8 : vector<16x32xf32> to vector<16x32xbf16>
    %c0_14 = arith.constant 0 : index
    %c0_15 = arith.constant 0 : index
    %12 = vector.load %arg6[%c0_14, %c0_15] : memref<32x32xbf16, #tpu.memory_space<vmem>>, vector<32x32xbf16>
    %cst = arith.constant dense<0.000000e+00> : vector<16x32xf32>
    %13 = tpu.matmul %11, %12, %cst {dimension_numbers = #tpu.dot_dimension_numbers<[1], [0], [0], [1], [0, 0, 1, 1], [], []>} : vector<16x32xbf16>, vector<32x32xbf16>, vector<16x32xf32> -> vector<16x32xf32>
    %c0_16 = arith.constant 0 : index
    %c0_17 = arith.constant 0 : index
    %14 = vector.load %arg7[%c0_16, %c0_17] : memref<1x32xf32, #tpu.memory_space<vmem>>, vector<1x32xf32>
    %15 = vector.broadcast %14 : vector<1x32xf32> to vector<16x32xf32>
    %16 = arith.addf %13, %15 : vector<16x32xf32>
    %17 = arith.truncf %9 : vector<32x32xf32> to vector<32x32xbf16>
    %c0_18 = arith.constant 0 : index
    %c0_19 = arith.constant 0 : index
    %18 = vector.load %arg8[%c0_18, %c0_19] : memref<32x32xbf16, #tpu.memory_space<vmem>>, vector<32x32xbf16>
    %cst_20 = arith.constant dense<0.000000e+00> : vector<32x32xf32>
    %19 = tpu.matmul %17, %18, %cst_20 {dimension_numbers = #tpu.dot_dimension_numbers<[1], [0], [0], [1], [0, 0, 1, 1], [], []>} : vector<32x32xbf16>, vector<32x32xbf16>, vector<32x32xf32> -> vector<32x32xf32>
    %c0_21 = arith.constant 0 : index
    %c0_22 = arith.constant 0 : index
    %20 = vector.load %arg9[%c0_21, %c0_22] : memref<1x32xf32, #tpu.memory_space<vmem>>, vector<1x32xf32>
    %21 = vector.broadcast %20 : vector<1x32xf32> to vector<32x32xf32>
    %22 = arith.addf %19, %21 : vector<32x32xf32>
    %23 = arith.truncf %10 : vector<32x32xf32> to vector<32x32xbf16>
    %c0_23 = arith.constant 0 : index
    %c0_24 = arith.constant 0 : index
    %24 = vector.load %arg10[%c0_23, %c0_24] : memref<32x32xbf16, #tpu.memory_space<vmem>>, vector<32x32xbf16>
    %cst_25 = arith.constant dense<0.000000e+00> : vector<32x32xf32>
    %25 = tpu.matmul %23, %24, %cst_25 {dimension_numbers = #tpu.dot_dimension_numbers<[1], [0], [0], [1], [0, 0, 1, 1], [], []>} : vector<32x32xbf16>, vector<32x32xbf16>, vector<32x32xf32> -> vector<32x32xf32>
    %c0_26 = arith.constant 0 : index
    %c0_27 = arith.constant 0 : index
    %26 = vector.load %arg11[%c0_26, %c0_27] : memref<1x32xf32, #tpu.memory_space<vmem>>, vector<1x32xf32>
    %27 = vector.broadcast %26 : vector<1x32xf32> to vector<32x32xf32>
    %28 = arith.addf %25, %27 : vector<32x32xf32>
    %29 = vector.shape_cast %16 : vector<16x32xf32> to vector<2x8x32xf32>
    %30 = vector.shape_cast %22 : vector<32x32xf32> to vector<2x16x32xf32>
    %31 = vector.shape_cast %28 : vector<32x32xf32> to vector<2x16x32xf32>
    %c0_28 = arith.constant 0 : index
    %c0_29 = arith.constant 0 : index
    %32 = vector.load %arg12[%c0_28, %c0_29] : memref<32x32xbf16, #tpu.memory_space<vmem>>, vector<32x32xbf16>
    %cst_30 = arith.constant 0.000000e+00 : f32
    %33 = vector.broadcast %cst_30 : f32 to vector<16x32xf32>
    %34 = vector.extract_strided_slice %29 {offsets = [0, 0, 0], sizes = [2, 8, 8], strides = [1, 1, 1]} : vector<2x8x32xf32> to vector<2x8x8xf32>
    %35 = vector.extract_strided_slice %30 {offsets = [0, 0, 0], sizes = [2, 16, 8], strides = [1, 1, 1]} : vector<2x16x32xf32> to vector<2x16x8xf32>
    %36 = vector.extract_strided_slice %31 {offsets = [0, 0, 0], sizes = [2, 16, 8], strides = [1, 1, 1]} : vector<2x16x32xf32> to vector<2x16x8xf32>
    %37 = arith.truncf %34 : vector<2x8x8xf32> to vector<2x8x8xbf16>
    %38 = arith.truncf %35 : vector<2x16x8xf32> to vector<2x16x8xbf16>
    "tpu.trace_start"() <{level = 10 : i32, message = "bqd,bkd->bqk"}> : () -> ()
    %cst_31 = arith.constant dense<0.000000e+00> : vector<2x8x16xf32>
    %39 = tpu.matmul %37, %38, %cst_31 {dimension_numbers = #tpu.dot_dimension_numbers<[2], [2], [1], [1], [0, 0, 0, 1, 1, 1], [0], [0]>} : vector<2x8x8xbf16>, vector<2x16x8xbf16>, vector<2x8x16xf32> -> vector<2x8x16xf32>
    "tpu.trace_stop"() : () -> ()
    %cst_32 = arith.constant 0.353553385 : f32
    %40 = vector.broadcast %cst_32 : f32 to vector<2x8x16xf32>
    %41 = arith.mulf %39, %40 : vector<2x8x16xf32>
    %cst_33 = arith.constant dense<0xFF800000> : vector<2x8xf32>
    %42 = vector.multi_reduction <maximumf>, %41, %cst_33 [2] : vector<2x8x16xf32> to vector<2x8xf32>
    %43 = vector.shape_cast %42 : vector<2x8xf32> to vector<2x8x1xf32>
    %44 = vector.broadcast %43 : vector<2x8x1xf32> to vector<2x8x16xf32>
    %45 = arith.subf %41, %44 : vector<2x8x16xf32>
    %46 = math.exp %45 : vector<2x8x16xf32>
    %cst_34 = arith.constant dense<0.000000e+00> : vector<2x8xf32>
    %47 = vector.multi_reduction <add>, %46, %cst_34 [2] : vector<2x8x16xf32> to vector<2x8xf32>
    %48 = vector.shape_cast %47 : vector<2x8xf32> to vector<2x8x1xf32>
    %49 = tpu.reciprocal %48 {approx = true} : vector<2x8x1xf32> -> vector<2x8x1xf32>
    %50 = vector.broadcast %49 : vector<2x8x1xf32> to vector<2x8x16xf32>
    %51 = arith.mulf %46, %50 : vector<2x8x16xf32>
    %52 = arith.truncf %51 : vector<2x8x16xf32> to vector<2x8x16xbf16>
    %53 = arith.truncf %36 : vector<2x16x8xf32> to vector<2x16x8xbf16>
    "tpu.trace_start"() <{level = 10 : i32, message = "bqk,bkd->bqd"}> : () -> ()
    %cst_35 = arith.constant dense<0.000000e+00> : vector<2x8x8xf32>
    %54 = tpu.matmul %52, %53, %cst_35 {dimension_numbers = #tpu.dot_dimension_numbers<[2], [1], [1], [2], [0, 0, 0, 1, 1, 2], [0], [0]>} : vector<2x8x16xbf16>, vector<2x16x8xbf16>, vector<2x8x8xf32> -> vector<2x8x8xf32>
    "tpu.trace_stop"() : () -> ()
    %55 = vector.shape_cast %54 : vector<2x8x8xf32> to vector<16x8xf32>
    %56 = arith.truncf %55 : vector<16x8xf32> to vector<16x8xbf16>
    %57 = vector.extract_strided_slice %32 {offsets = [0, 0], sizes = [8, 32], strides = [1, 1]} : vector<32x32xbf16> to vector<8x32xbf16>
    %cst_36 = arith.constant dense<0.000000e+00> : vector<16x32xf32>
    %58 = tpu.matmul %56, %57, %cst_36 {dimension_numbers = #tpu.dot_dimension_numbers<[1], [0], [0], [1], [0, 0, 1, 1], [], []>} : vector<16x8xbf16>, vector<8x32xbf16>, vector<16x32xf32> -> vector<16x32xf32>
    %59 = arith.addf %33, %58 : vector<16x32xf32>
    %60 = vector.extract_strided_slice %29 {offsets = [0, 0, 8], sizes = [2, 8, 8], strides = [1, 1, 1]} : vector<2x8x32xf32> to vector<2x8x8xf32>
    %61 = vector.extract_strided_slice %30 {offsets = [0, 0, 8], sizes = [2, 16, 8], strides = [1, 1, 1]} : vector<2x16x32xf32> to vector<2x16x8xf32>
    %62 = vector.extract_strided_slice %31 {offsets = [0, 0, 8], sizes = [2, 16, 8], strides = [1, 1, 1]} : vector<2x16x32xf32> to vector<2x16x8xf32>
    %63 = arith.truncf %60 : vector<2x8x8xf32> to vector<2x8x8xbf16>
    %64 = arith.truncf %61 : vector<2x16x8xf32> to vector<2x16x8xbf16>
    "tpu.trace_start"() <{level = 10 : i32, message = "bqd,bkd->bqk"}> : () -> ()
    %cst_37 = arith.constant dense<0.000000e+00> : vector<2x8x16xf32>
    %65 = tpu.matmul %63, %64, %cst_37 {dimension_numbers = #tpu.dot_dimension_numbers<[2], [2], [1], [1], [0, 0, 0, 1, 1, 1], [0], [0]>} : vector<2x8x8xbf16>, vector<2x16x8xbf16>, vector<2x8x16xf32> -> vector<2x8x16xf32>
    "tpu.trace_stop"() : () -> ()
    %cst_38 = arith.constant 0.353553385 : f32
    %66 = vector.broadcast %cst_38 : f32 to vector<2x8x16xf32>
    %67 = arith.mulf %65, %66 : vector<2x8x16xf32>
    %cst_39 = arith.constant dense<0xFF800000> : vector<2x8xf32>
    %68 = vector.multi_reduction <maximumf>, %67, %cst_39 [2] : vector<2x8x16xf32> to vector<2x8xf32>
    %69 = vector.shape_cast %68 : vector<2x8xf32> to vector<2x8x1xf32>
    %70 = vector.broadcast %69 : vector<2x8x1xf32> to vector<2x8x16xf32>
    %71 = arith.subf %67, %70 : vector<2x8x16xf32>
    %72 = math.exp %71 : vector<2x8x16xf32>
    %cst_40 = arith.constant dense<0.000000e+00> : vector<2x8xf32>
    %73 = vector.multi_reduction <add>, %72, %cst_40 [2] : vector<2x8x16xf32> to vector<2x8xf32>
    %74 = vector.shape_cast %73 : vector<2x8xf32> to vector<2x8x1xf32>
    %75 = tpu.reciprocal %74 {approx = true} : vector<2x8x1xf32> -> vector<2x8x1xf32>
    %76 = vector.broadcast %75 : vector<2x8x1xf32> to vector<2x8x16xf32>
    %77 = arith.mulf %72, %76 : vector<2x8x16xf32>
    %78 = arith.truncf %77 : vector<2x8x16xf32> to vector<2x8x16xbf16>
    %79 = arith.truncf %62 : vector<2x16x8xf32> to vector<2x16x8xbf16>
    "tpu.trace_start"() <{level = 10 : i32, message = "bqk,bkd->bqd"}> : () -> ()
    %cst_41 = arith.constant dense<0.000000e+00> : vector<2x8x8xf32>
    %80 = tpu.matmul %78, %79, %cst_41 {dimension_numbers = #tpu.dot_dimension_numbers<[2], [1], [1], [2], [0, 0, 0, 1, 1, 2], [0], [0]>} : vector<2x8x16xbf16>, vector<2x16x8xbf16>, vector<2x8x8xf32> -> vector<2x8x8xf32>
    "tpu.trace_stop"() : () -> ()
    %81 = vector.shape_cast %80 : vector<2x8x8xf32> to vector<16x8xf32>
    %82 = arith.truncf %81 : vector<16x8xf32> to vector<16x8xbf16>
    %83 = vector.extract_strided_slice %32 {offsets = [8, 0], sizes = [8, 32], strides = [1, 1]} : vector<32x32xbf16> to vector<8x32xbf16>
    %cst_42 = arith.constant dense<0.000000e+00> : vector<16x32xf32>
    %84 = tpu.matmul %82, %83, %cst_42 {dimension_numbers = #tpu.dot_dimension_numbers<[1], [0], [0], [1], [0, 0, 1, 1], [], []>} : vector<16x8xbf16>, vector<8x32xbf16>, vector<16x32xf32> -> vector<16x32xf32>
    %85 = arith.addf %59, %84 : vector<16x32xf32>
    %86 = vector.extract_strided_slice %29 {offsets = [0, 0, 16], sizes = [2, 8, 8], strides = [1, 1, 1]} : vector<2x8x32xf32> to vector<2x8x8xf32>
    %87 = vector.extract_strided_slice %30 {offsets = [0, 0, 16], sizes = [2, 16, 8], strides = [1, 1, 1]} : vector<2x16x32xf32> to vector<2x16x8xf32>
    %88 = vector.extract_strided_slice %31 {offsets = [0, 0, 16], sizes = [2, 16, 8], strides = [1, 1, 1]} : vector<2x16x32xf32> to vector<2x16x8xf32>
    %89 = arith.truncf %86 : vector<2x8x8xf32> to vector<2x8x8xbf16>
    %90 = arith.truncf %87 : vector<2x16x8xf32> to vector<2x16x8xbf16>
    "tpu.trace_start"() <{level = 10 : i32, message = "bqd,bkd->bqk"}> : () -> ()
    %cst_43 = arith.constant dense<0.000000e+00> : vector<2x8x16xf32>
    %91 = tpu.matmul %89, %90, %cst_43 {dimension_numbers = #tpu.dot_dimension_numbers<[2], [2], [1], [1], [0, 0, 0, 1, 1, 1], [0], [0]>} : vector<2x8x8xbf16>, vector<2x16x8xbf16>, vector<2x8x16xf32> -> vector<2x8x16xf32>
    "tpu.trace_stop"() : () -> ()
    %cst_44 = arith.constant 0.353553385 : f32
    %92 = vector.broadcast %cst_44 : f32 to vector<2x8x16xf32>
    %93 = arith.mulf %91, %92 : vector<2x8x16xf32>
    %cst_45 = arith.constant dense<0xFF800000> : vector<2x8xf32>
    %94 = vector.multi_reduction <maximumf>, %93, %cst_45 [2] : vector<2x8x16xf32> to vector<2x8xf32>
    %95 = vector.shape_cast %94 : vector<2x8xf32> to vector<2x8x1xf32>
    %96 = vector.broadcast %95 : vector<2x8x1xf32> to vector<2x8x16xf32>
    %97 = arith.subf %93, %96 : vector<2x8x16xf32>
    %98 = math.exp %97 : vector<2x8x16xf32>
    %cst_46 = arith.constant dense<0.000000e+00> : vector<2x8xf32>
    %99 = vector.multi_reduction <add>, %98, %cst_46 [2] : vector<2x8x16xf32> to vector<2x8xf32>
    %100 = vector.shape_cast %99 : vector<2x8xf32> to vector<2x8x1xf32>
    %101 = tpu.reciprocal %100 {approx = true} : vector<2x8x1xf32> -> vector<2x8x1xf32>
    %102 = vector.broadcast %101 : vector<2x8x1xf32> to vector<2x8x16xf32>
    %103 = arith.mulf %98, %102 : vector<2x8x16xf32>
    %104 = arith.truncf %103 : vector<2x8x16xf32> to vector<2x8x16xbf16>
    %105 = arith.truncf %88 : vector<2x16x8xf32> to vector<2x16x8xbf16>
    "tpu.trace_start"() <{level = 10 : i32, message = "bqk,bkd->bqd"}> : () -> ()
    %cst_47 = arith.constant dense<0.000000e+00> : vector<2x8x8xf32>
    %106 = tpu.matmul %104, %105, %cst_47 {dimension_numbers = #tpu.dot_dimension_numbers<[2], [1], [1], [2], [0, 0, 0, 1, 1, 2], [0], [0]>} : vector<2x8x16xbf16>, vector<2x16x8xbf16>, vector<2x8x8xf32> -> vector<2x8x8xf32>
    "tpu.trace_stop"() : () -> ()
    %107 = vector.shape_cast %106 : vector<2x8x8xf32> to vector<16x8xf32>
    %108 = arith.truncf %107 : vector<16x8xf32> to vector<16x8xbf16>
    %109 = vector.extract_strided_slice %32 {offsets = [16, 0], sizes = [8, 32], strides = [1, 1]} : vector<32x32xbf16> to vector<8x32xbf16>
    %cst_48 = arith.constant dense<0.000000e+00> : vector<16x32xf32>
    %110 = tpu.matmul %108, %109, %cst_48 {dimension_numbers = #tpu.dot_dimension_numbers<[1], [0], [0], [1], [0, 0, 1, 1], [], []>} : vector<16x8xbf16>, vector<8x32xbf16>, vector<16x32xf32> -> vector<16x32xf32>
    %111 = arith.addf %85, %110 : vector<16x32xf32>
    %112 = vector.extract_strided_slice %29 {offsets = [0, 0, 24], sizes = [2, 8, 8], strides = [1, 1, 1]} : vector<2x8x32xf32> to vector<2x8x8xf32>
    %113 = vector.extract_strided_slice %30 {offsets = [0, 0, 24], sizes = [2, 16, 8], strides = [1, 1, 1]} : vector<2x16x32xf32> to vector<2x16x8xf32>
    %114 = vector.extract_strided_slice %31 {offsets = [0, 0, 24], sizes = [2, 16, 8], strides = [1, 1, 1]} : vector<2x16x32xf32> to vector<2x16x8xf32>
    %115 = arith.truncf %112 : vector<2x8x8xf32> to vector<2x8x8xbf16>
    %116 = arith.truncf %113 : vector<2x16x8xf32> to vector<2x16x8xbf16>
    "tpu.trace_start"() <{level = 10 : i32, message = "bqd,bkd->bqk"}> : () -> ()
    %cst_49 = arith.constant dense<0.000000e+00> : vector<2x8x16xf32>
    %117 = tpu.matmul %115, %116, %cst_49 {dimension_numbers = #tpu.dot_dimension_numbers<[2], [2], [1], [1], [0, 0, 0, 1, 1, 1], [0], [0]>} : vector<2x8x8xbf16>, vector<2x16x8xbf16>, vector<2x8x16xf32> -> vector<2x8x16xf32>
    "tpu.trace_stop"() : () -> ()
    %cst_50 = arith.constant 0.353553385 : f32
    %118 = vector.broadcast %cst_50 : f32 to vector<2x8x16xf32>
    %119 = arith.mulf %117, %118 : vector<2x8x16xf32>
    %cst_51 = arith.constant dense<0xFF800000> : vector<2x8xf32>
    %120 = vector.multi_reduction <maximumf>, %119, %cst_51 [2] : vector<2x8x16xf32> to vector<2x8xf32>
    %121 = vector.shape_cast %120 : vector<2x8xf32> to vector<2x8x1xf32>
    %122 = vector.broadcast %121 : vector<2x8x1xf32> to vector<2x8x16xf32>
    %123 = arith.subf %119, %122 : vector<2x8x16xf32>
    %124 = math.exp %123 : vector<2x8x16xf32>
    %cst_52 = arith.constant dense<0.000000e+00> : vector<2x8xf32>
    %125 = vector.multi_reduction <add>, %124, %cst_52 [2] : vector<2x8x16xf32> to vector<2x8xf32>
    %126 = vector.shape_cast %125 : vector<2x8xf32> to vector<2x8x1xf32>
    %127 = tpu.reciprocal %126 {approx = true} : vector<2x8x1xf32> -> vector<2x8x1xf32>
    %128 = vector.broadcast %127 : vector<2x8x1xf32> to vector<2x8x16xf32>
    %129 = arith.mulf %124, %128 : vector<2x8x16xf32>
    %130 = arith.truncf %129 : vector<2x8x16xf32> to vector<2x8x16xbf16>
    %131 = arith.truncf %114 : vector<2x16x8xf32> to vector<2x16x8xbf16>
    "tpu.trace_start"() <{level = 10 : i32, message = "bqk,bkd->bqd"}> : () -> ()
    %cst_53 = arith.constant dense<0.000000e+00> : vector<2x8x8xf32>
    %132 = tpu.matmul %130, %131, %cst_53 {dimension_numbers = #tpu.dot_dimension_numbers<[2], [1], [1], [2], [0, 0, 0, 1, 1, 2], [0], [0]>} : vector<2x8x16xbf16>, vector<2x16x8xbf16>, vector<2x8x8xf32> -> vector<2x8x8xf32>
    "tpu.trace_stop"() : () -> ()
    %133 = vector.shape_cast %132 : vector<2x8x8xf32> to vector<16x8xf32>
    %134 = arith.truncf %133 : vector<16x8xf32> to vector<16x8xbf16>
    %135 = vector.extract_strided_slice %32 {offsets = [24, 0], sizes = [8, 32], strides = [1, 1]} : vector<32x32xbf16> to vector<8x32xbf16>
    %cst_54 = arith.constant dense<0.000000e+00> : vector<16x32xf32>
    %136 = tpu.matmul %134, %135, %cst_54 {dimension_numbers = #tpu.dot_dimension_numbers<[1], [0], [0], [1], [0, 0, 1, 1], [], []>} : vector<16x8xbf16>, vector<8x32xbf16>, vector<16x32xf32> -> vector<16x32xf32>
    %137 = arith.addf %111, %136 : vector<16x32xf32>
    %c0_55 = arith.constant 0 : index
    %c0_56 = arith.constant 0 : index
    %138 = vector.load %arg13[%c0_55, %c0_56] : memref<1x32xf32, #tpu.memory_space<vmem>>, vector<1x32xf32>
    %139 = vector.broadcast %138 : vector<1x32xf32> to vector<16x32xf32>
    %140 = arith.addf %137, %139 : vector<16x32xf32>
    %141 = arith.addf %8, %140 : vector<16x32xf32>
    %c0_57 = arith.constant 0 : index
    %c0_58 = arith.constant 0 : index
    %142 = vector.load %arg14[%c0_57, %c0_58] : memref<1x32xf32, #tpu.memory_space<vmem>>, vector<1x32xf32>
    %c0_59 = arith.constant 0 : index
    %c0_60 = arith.constant 0 : index
    %143 = vector.load %arg15[%c0_59, %c0_60] : memref<1x32xf32, #tpu.memory_space<vmem>>, vector<1x32xf32>
    %cst_61 = arith.constant dense<0.000000e+00> : vector<16xf32>
    %144 = vector.multi_reduction <add>, %141, %cst_61 [1] : vector<16x32xf32> to vector<16xf32>
    %145 = vector.shape_cast %144 : vector<16xf32> to vector<16x1xf32>
    %cst_62 = arith.constant 3.200000e+01 : f32
    %146 = vector.broadcast %cst_62 : f32 to vector<16x1xf32>
    %147 = arith.divf %145, %146 : vector<16x1xf32>
    %148 = vector.broadcast %147 : vector<16x1xf32> to vector<16x32xf32>
    %149 = arith.subf %141, %148 : vector<16x32xf32>
    %150 = arith.mulf %149, %149 : vector<16x32xf32>
    %cst_63 = arith.constant dense<0.000000e+00> : vector<16xf32>
    %151 = vector.multi_reduction <add>, %150, %cst_63 [1] : vector<16x32xf32> to vector<16xf32>
    %152 = vector.shape_cast %151 : vector<16xf32> to vector<16x1xf32>
    %cst_64 = arith.constant 3.200000e+01 : f32
    %153 = vector.broadcast %cst_64 : f32 to vector<16x1xf32>
    %154 = arith.divf %152, %153 : vector<16x1xf32>
    %155 = vector.broadcast %147 : vector<16x1xf32> to vector<16x32xf32>
    %156 = arith.subf %141, %155 : vector<16x32xf32>
    %cst_65 = arith.constant 9.99999974E-6 : f32
    %157 = vector.broadcast %cst_65 : f32 to vector<16x1xf32>
    %158 = arith.addf %154, %157 : vector<16x1xf32>
    %159 = math.rsqrt %158 : vector<16x1xf32>
    %160 = vector.broadcast %159 : vector<16x1xf32> to vector<16x32xf32>
    %161 = arith.mulf %156, %160 : vector<16x32xf32>
    %162 = vector.broadcast %142 : vector<1x32xf32> to vector<16x32xf32>
    %163 = arith.mulf %161, %162 : vector<16x32xf32>
    %164 = vector.broadcast %143 : vector<1x32xf32> to vector<16x32xf32>
    %165 = arith.addf %163, %164 : vector<16x32xf32>
    %166 = arith.truncf %165 : vector<16x32xf32> to vector<16x32xbf16>
    %c0_66 = arith.constant 0 : index
    %c0_67 = arith.constant 0 : index
    %167 = vector.load %arg16[%c0_66, %c0_67] : memref<32x64xbf16, #tpu.memory_space<vmem>>, vector<32x64xbf16>
    %cst_68 = arith.constant dense<0.000000e+00> : vector<16x64xf32>
    %168 = tpu.matmul %166, %167, %cst_68 {dimension_numbers = #tpu.dot_dimension_numbers<[1], [0], [0], [1], [0, 0, 1, 1], [], []>} : vector<16x32xbf16>, vector<32x64xbf16>, vector<16x64xf32> -> vector<16x64xf32>
    %c0_69 = arith.constant 0 : index
    %c0_70 = arith.constant 0 : index
    %169 = vector.load %arg17[%c0_69, %c0_70] : memref<1x64xf32, #tpu.memory_space<vmem>>, vector<1x64xf32>
    %170 = vector.broadcast %169 : vector<1x64xf32> to vector<16x64xf32>
    %171 = arith.addf %168, %170 : vector<16x64xf32>
    %cst_71 = arith.constant 0.000000e+00 : f32
    %172 = vector.broadcast %cst_71 : f32 to vector<16x64xf32>
    %173 = arith.maximumf %171, %172 : vector<16x64xf32>
    %174 = arith.truncf %173 : vector<16x64xf32> to vector<16x64xbf16>
    %c0_72 = arith.constant 0 : index
    %c0_73 = arith.constant 0 : index
    %175 = vector.load %arg18[%c0_72, %c0_73] : memref<64x32xbf16, #tpu.memory_space<vmem>>, vector<64x32xbf16>
    %cst_74 = arith.constant dense<0.000000e+00> : vector<16x32xf32>
    %176 = tpu.matmul %174, %175, %cst_74 {dimension_numbers = #tpu.dot_dimension_numbers<[1], [0], [0], [1], [0, 0, 1, 1], [], []>} : vector<16x64xbf16>, vector<64x32xbf16>, vector<16x32xf32> -> vector<16x32xf32>
    %c0_75 = arith.constant 0 : index
    %c0_76 = arith.constant 0 : index
    %177 = vector.load %arg19[%c0_75, %c0_76] : memref<1x32xf32, #tpu.memory_space<vmem>>, vector<1x32xf32>
    %178 = vector.broadcast %177 : vector<1x32xf32> to vector<16x32xf32>
    %179 = arith.addf %176, %178 : vector<16x32xf32>
    %180 = arith.addf %165, %179 : vector<16x32xf32>
    %c0_77 = arith.constant 0 : index
    %c0_78 = arith.constant 0 : index
    %181 = vector.load %arg20[%c0_77, %c0_78] : memref<1x32xf32, #tpu.memory_space<vmem>>, vector<1x32xf32>
    %c0_79 = arith.constant 0 : index
    %c0_80 = arith.constant 0 : index
    %182 = vector.load %arg21[%c0_79, %c0_80] : memref<1x32xf32, #tpu.memory_space<vmem>>, vector<1x32xf32>
    %cst_81 = arith.constant dense<0.000000e+00> : vector<16xf32>
    %183 = vector.multi_reduction <add>, %180, %cst_81 [1] : vector<16x32xf32> to vector<16xf32>
    %184 = vector.shape_cast %183 : vector<16xf32> to vector<16x1xf32>
    %cst_82 = arith.constant 3.200000e+01 : f32
    %185 = vector.broadcast %cst_82 : f32 to vector<16x1xf32>
    %186 = arith.divf %184, %185 : vector<16x1xf32>
    %187 = vector.broadcast %186 : vector<16x1xf32> to vector<16x32xf32>
    %188 = arith.subf %180, %187 : vector<16x32xf32>
    %189 = arith.mulf %188, %188 : vector<16x32xf32>
    %cst_83 = arith.constant dense<0.000000e+00> : vector<16xf32>
    %190 = vector.multi_reduction <add>, %189, %cst_83 [1] : vector<16x32xf32> to vector<16xf32>
    %191 = vector.shape_cast %190 : vector<16xf32> to vector<16x1xf32>
    %cst_84 = arith.constant 3.200000e+01 : f32
    %192 = vector.broadcast %cst_84 : f32 to vector<16x1xf32>
    %193 = arith.divf %191, %192 : vector<16x1xf32>
    %194 = vector.broadcast %186 : vector<16x1xf32> to vector<16x32xf32>
    %195 = arith.subf %180, %194 : vector<16x32xf32>
    %cst_85 = arith.constant 9.99999974E-6 : f32
    %196 = vector.broadcast %cst_85 : f32 to vector<16x1xf32>
    %197 = arith.addf %193, %196 : vector<16x1xf32>
    %198 = math.rsqrt %197 : vector<16x1xf32>
    %199 = vector.broadcast %198 : vector<16x1xf32> to vector<16x32xf32>
    %200 = arith.mulf %195, %199 : vector<16x32xf32>
    %201 = vector.broadcast %181 : vector<1x32xf32> to vector<16x32xf32>
    %202 = arith.mulf %200, %201 : vector<16x32xf32>
    %203 = vector.broadcast %182 : vector<1x32xf32> to vector<16x32xf32>
    %204 = arith.addf %202, %203 : vector<16x32xf32>
    %205 = vector.shape_cast %204 : vector<16x32xf32> to vector<2x8x32xf32>
    %c0_86 = arith.constant 0 : index
    %c0_87 = arith.constant 0 : index
    %c0_88 = arith.constant 0 : index
    %206 = vector.load %arg22[%c0_86, %c0_87, %c0_88] : memref<2x8x32xf32, #tpu.memory_space<vmem>>, vector<2x8x32xf32>
    tpu.vector_store %arg22[%c0_86, %c0_87, %c0_88], %205 {strides = array<i32>} : memref<2x8x32xf32, #tpu.memory_space<vmem>>, vector<2x8x32xf32>,
    return
  }
  func.func @transform_0(%arg0: i32) -> (i32, i32, i32) {
    %c0_i32 = arith.constant 0 : i32
    %c0_i32_0 = arith.constant 0 : i32
    %c0_i32_1 = arith.constant 0 : i32
    return %arg0, %c0_i32, %c0_i32_0 : i32, i32, i32
  }
  func.func @transform_1(%arg0: i32) -> (i32, i32, i32) {
    %c0_i32 = arith.constant 0 : i32
    %c0_i32_0 = arith.constant 0 : i32
    %c0_i32_1 = arith.constant 0 : i32
    return %arg0, %c0_i32, %c0_i32_0 : i32, i32, i32
  }
  func.func @transform_2(%arg0: i32) -> (i32, i32, i32) {
    %c0_i32 = arith.constant 0 : i32
    %c0_i32_0 = arith.constant 0 : i32
    %c0_i32_1 = arith.constant 0 : i32
    return %arg0, %c0_i32, %c0_i32_0 : i32, i32, i32
  }
  func.func @transform_3(%arg0: i32) -> (i32, i32, i32) {
    %c0_i32 = arith.constant 0 : i32
    %c0_i32_0 = arith.constant 0 : i32
    %c0_i32_1 = arith.constant 0 : i32
    return %arg0, %c0_i32, %c0_i32_0 : i32, i32, i32
  }
  func.func @transform_4(%arg0: i32) -> (i32, i32, i32) {
    %c0_i32 = arith.constant 0 : i32
    %c0_i32_0 = arith.constant 0 : i32
    %c0_i32_1 = arith.constant 0 : i32
    return %arg0, %c0_i32, %c0_i32_0 : i32, i32, i32
  }
  func.func @transform_5(%arg0: i32) -> (i32, i32) {
    %c0_i32 = arith.constant 0 : i32
    %c0_i32_0 = arith.constant 0 : i32
    %c0_i32_1 = arith.constant 0 : i32
    return %c0_i32, %c0_i32_0 : i32, i32
  }
  func.func @transform_6(%arg0: i32) -> (i32, i32) {
    %c0_i32 = arith.constant 0 : i32
    %c0_i32_0 = arith.constant 0 : i32
    %c0_i32_1 = arith.constant 0 : i32
    return %c0_i32, %c0_i32_0 : i32, i32
  }
  func.func @transform_7(%arg0: i32) -> (i32, i32) {
    %c0_i32 = arith.constant 0 : i32
    %c0_i32_0 = arith.constant 0 : i32
    %c0_i32_1 = arith.constant 0 : i32
    return %c0_i32, %c0_i32_0 : i32, i32
  }
  func.func @transform_8(%arg0: i32) -> (i32, i32) {
    %c0_i32 = arith.constant 0 : i32
    %c0_i32_0 = arith.constant 0 : i32
    %c0_i32_1 = arith.constant 0 : i32
    return %c0_i32, %c0_i32_0 : i32, i32
  }
  func.func @transform_9(%arg0: i32) -> (i32, i32) {
    %c0_i32 = arith.constant 0 : i32
    %c0_i32_0 = arith.constant 0 : i32
    %c0_i32_1 = arith.constant 0 : i32
    return %c0_i32, %c0_i32_0 : i32, i32
  }
  func.func @transform_10(%arg0: i32) -> (i32, i32) {
    %c0_i32 = arith.constant 0 : i32
    %c0_i32_0 = arith.constant 0 : i32
    %c0_i32_1 = arith.constant 0 : i32
    return %c0_i32, %c0_i32_0 : i32, i32
  }
  func.func @transform_11(%arg0: i32) -> (i32, i32) {
    %c0_i32 = arith.constant 0 : i32
    %c0_i32_0 = arith.constant 0 : i32
    %c0_i32_1 = arith.constant 0 : i32
    return %c0_i32, %c0_i32_0 : i32, i32
  }
  func.func @transform_12(%arg0: i32) -> (i32, i32) {
    %c0_i32 = arith.constant 0 : i32
    %c0_i32_0 = arith.constant 0 : i32
    %c0_i32_1 = arith.constant 0 : i32
    return %c0_i32, %c0_i32_0 : i32, i32
  }
  func.func @transform_13(%arg0: i32) -> (i32, i32) {
    %c0_i32 = arith.constant 0 : i32
    %c0_i32_0 = arith.constant 0 : i32
    %c0_i32_1 = arith.constant 0 : i32
    return %c0_i32, %c0_i32_0 : i32, i32
  }
  func.func @transform_14(%arg0: i32) -> (i32, i32) {
    %c0_i32 = arith.constant 0 : i32
    %c0_i32_0 = arith.constant 0 : i32
    %c0_i32_1 = arith.constant 0 : i32
    return %c0_i32, %c0_i32_0 : i32, i32
  }
  func.func @transform_15(%arg0: i32) -> (i32, i32) {
    %c0_i32 = arith.constant 0 : i32
    %c0_i32_0 = arith.constant 0 : i32
    %c0_i32_1 = arith.constant 0 : i32
    return %c0_i32, %c0_i32_0 : i32, i32
  }
  func.func @transform_16(%arg0: i32) -> (i32, i32) {
    %c0_i32 = arith.constant 0 : i32
    %c0_i32_0 = arith.constant 0 : i32
    %c0_i32_1 = arith.constant 0 : i32
    return %c0_i32, %c0_i32_0 : i32, i32
  }
  func.func @transform_17(%arg0: i32) -> (i32, i32) {
    %c0_i32 = arith.constant 0 : i32
    %c0_i32_0 = arith.constant 0 : i32
    %c0_i32_1 = arith.constant 0 : i32
    return %c0_i32, %c0_i32_0 : i32, i32
  }
  func.func @transform_18(%arg0: i32) -> (i32, i32) {
    %c0_i32 = arith.constant 0 : i32
    %c0_i32_0 = arith.constant 0 : i32
    %c0_i32_1 = arith.constant 0 : i32
    return %c0_i32, %c0_i32_0 : i32, i32
  }
  func.func @transform_19(%arg0: i32) -> (i32, i32) {
    %c0_i32 = arith.constant 0 : i32
    %c0_i32_0 = arith.constant 0 : i32
    %c0_i32_1 = arith.constant 0 : i32
    return %c0_i32, %c0_i32_0 : i32, i32
  }
  func.func @transform_20(%arg0: i32) -> (i32, i32) {
    %c0_i32 = arith.constant 0 : i32
    %c0_i32_0 = arith.constant 0 : i32
    %c0_i32_1 = arith.constant 0 : i32
    return %c0_i32, %c0_i32_0 : i32, i32
  }
  func.func @transform_21(%arg0: i32) -> (i32, i32, i32) {
    %c0_i32 = arith.constant 0 : i32
    %c0_i32_0 = arith.constant 0 : i32
    %c0_i32_1 = arith.constant 0 : i32
    return %arg0, %c0_i32, %c0_i32_0 : i32, i32, i32
  }
}

</mosaic_0001>

<bundles_post_ra>
// kernel: tpu_custom_call.1
= control target key start
LH: loop header
LB: loop body
LE: loop exit
PB: predicated region body
PF: predicated region fallthrough
CT: control target
= control target key end

     0   :  { %s4863_s0 = inlined_call_operand.vmem [shape: f32[2,8,32], index: 0, kind: input, shape index: {}]   ;;  %s4864_s1 = inlined_call_operand.vmem [shape: f32[2,16,32], index: 1, kind: input, shape index: {}]   ;;  %s4865_s2 = inlined_call_operand.hbm [shape: f32[2,16,32], index: 2, kind: input, shape index: {}]   ;;  %s4866_s3 = inlined_call_operand.hbm [shape: f32[2,8,32], index: 3, kind: input, shape index: {}]   ;;  %s4867_s4 = inlined_call_operand.hbm [shape: f32[2,16,32], index: 4, kind: input, shape index: {}]   ;;  %s4868_s5 = inlined_call_operand.hbm [shape: bf16[32,32], index: 5, kind: input, shape index: {}]   ;;  %s4869_s6 = inlined_call_operand.hbm [shape: f32[1,32], index: 6, kind: input, shape index: {}]   ;;  %s4870_s7 = inlined_call_operand.hbm [shape: bf16[32,32], index: 7, kind: input, shape index: {}]   ;;  %s4871_s8 = inlined_call_operand.hbm [shape: f32[1,32], index: 8, kind: input, shape index: {}]   ;;  %s4872_s9 = inlined_call_operand.vmem [shape: bf16[32,32], index: 9, kind: input, shape index: {}]   ;;  %s4873_s10 = inlined_call_operand.vmem [shape: f32[1,32], index: 10, kind: input, shape index: {}]   ;;  %s4874_s11 = inlined_call_operand.hbm [shape: bf16[32,32], index: 11, kind: input, shape index: {}]   ;;  %s4875_s12 = inlined_call_operand.vmem [shape: f32[1,32], index: 12, kind: input, shape index: {}]   ;;  %s4876_s13 = inlined_call_operand.vmem [shape: f32[1,32], index: 13, kind: input, shape index: {}]   ;;  %s4877_s14 = inlined_call_operand.vmem [shape: f32[1,32], index: 14, kind: input, shape index: {}]   ;;  %s4878_s15 = inlined_call_operand.hbm [shape: bf16[32,64], index: 15, kind: input, shape index: {}]   ;;  %s4879_s16 = inlined_call_operand.vmem [shape: f32[1,64], index: 16, kind: input, shape index: {}]   ;;  %s4880_s17 = inlined_call_operand.vmem [shape: bf16[64,32], index: 17, kind: input, shape index: {}]   ;;  %s4881_s18 = inlined_call_operand.vmem [shape: f32[1,32], index: 18, kind: input, shape index: {}]   ;;  %s4882_s19 = inlined_call_operand.vmem [shape: f32[1,32], index: 19, kind: input, shape index: {}]   ;;  %s4883_s20 = inlined_call_operand.vmem [shape: f32[1,32], index: 20, kind: input, shape index: {}]   ;;  %s4884_s21 = inlined_call_operand.hbm [shape: f32[2,8,32], index: 21, kind: output, shape index: {}]  }
   0x1   :  { %4887 = sst [smem:[#allocation24_spill]] %s4863_s0 }
   0x2   :  { %4888 = sst [smem:[#allocation25_spill]] %s4864_s1 }
   0x3   :  { %4889 = sst [smem:[#allocation26_spill]] %s4865_s2 }
   0x4   :  { %4890 = sst [smem:[#allocation27_spill]] %s4866_s3 }
   0x5   :  { %4891 = sst [smem:[#allocation28_spill]] %s4867_s4 }
   0x6   :  { %4892 = sst [smem:[#allocation29_spill]] %s4868_s5 }
   0x7   :  { %26 = vsyncpa [#allocation3], 0 }
   0x8   :  { %27 = vsyncpa [#allocation6], 0 }
   0x9   :  { %28 = vsyncpa [#allocation9], 0 }
   0xa   :  { %29 = vsyncpa [#allocation12], 0 }
   0xb   :  { %30 = vsyncpa [#allocation15], 0 }
   0xc   :  { %31 = vsyncpa [#allocation4], 0  ;;  %s3965_s2 = smov [#allocation5]   ;;  %s3966_s26 = smov [#allocation8]  }
   0xd   :  { %s53_s25 = sshll.u32 %s3965_s2, 4  ;;  %s77_s27 = sshll.u32 %s3966_s26, 4  ;;  %s54_s25 = int_to_ptr.vmem [resolvable:$true] %s53_s25  ;;  %s78_s27 = int_to_ptr.vmem [resolvable:$true] %s77_s27 }
   0xe   :  { %s3761_s3 = scalar_lea.vmem %s54_s25, 256  ;;  %p3766_p1 = scmp.lt.s32.totalorder %s54_s25, %s54_s25 }
   0xf   :  { %p3762_p0 = scmp.ne.s32.totalorder %s54_s25, %s3761_s3  ;;  %p3767_p2 = scmp.lt.s32.totalorder %s3761_s3, %s3761_s3 }
  0x11   :  { %p3768_p3 = por %p3767_p2, %p3766_p1 }
  0x13   :  { %p3769_p4 = pnand %p3768_p3, %p3762_p0 }
  0x15   :  { %3772 = shalt.err (!%p3769_p4)
}
  0x16   :  { %s3967_s28 = smov 128   ;;  %s3968_s29 = smov 8  }
  0x17   :  { %s4893_s30 = sld [smem:[#allocation27_spill]]  ;;  %s3781_s5 = scalar_lea.vmem %s78_s27, 256 }
  0x18   :  { %p3782_p5 = scmp.ne.s32.totalorder %s78_s27, %s3781_s5  ;;  %p3786_p6 = scmp.lt.s32.totalorder %s78_s27, %s78_s27 }
  0x19   :  { %p3787_p7 = scmp.lt.s32.totalorder %s3781_s5, %s3781_s5 }
  0x1b   :  { %p3788_p8 = por %p3787_p7, %p3786_p6 }
  0x1d   :  { %59 = dma.hbm_to_vmem [thread:$0]  %s4893_s30, 256, %s54_s25, [#allocation6], %s3967_s28, %s3967_s28, %s3968_s29  }
  0x1e   :  { %p3789_p9 = pnand %p3788_p8, %p3782_p5 }
  0x20   :  { %3792 = shalt.err (!%p3789_p9)
}
  0x21   :  { %s3969_s22 = smov 64   ;;  %s3970_s23 = smov 4  }
  0x22   :  { %s4894_s2 = sld [smem:[#allocation29_spill]]  ;;  %s3971_s26 = smov [#allocation11]  }
  0x23   :  { %s99_s3 = sshll.u32 %s3971_s26, 4  ;;  %s3972_s0 = smov [#allocation14]   ;;  %s100_s3 = int_to_ptr.vmem [resolvable:$true] %s99_s3 }
  0x24   :  { %s125_s25 = sshll.u32 %s3972_s0, 4  ;;  %s3801_s4 = scalar_lea.vmem %s100_s3, 256  ;;  %s126_s25 = int_to_ptr.vmem [resolvable:$true] %s125_s25 }
  0x25   :  { %p3802_p10 = scmp.ne.s32.totalorder %s100_s3, %s3801_s4  ;;  %p3806_p11 = scmp.lt.s32.totalorder %s100_s3, %s100_s3 }
  0x26   :  { %p3807_p12 = scmp.lt.s32.totalorder %s3801_s4, %s3801_s4 }
  0x28   :  { %83 = dma.hbm_to_vmem [thread:$0]  %s4894_s2, 256, %s78_s27, [#allocation9], %s3969_s22, %s3969_s22, %s3970_s23  }
  0x29   :  { %p3808_p13 = por %p3807_p12, %p3806_p11 }
  0x2b   :  { %p3809_p0 = pnand %p3808_p13, %p3802_p10 }
  0x2d   :  { %3812 = shalt.err (!%p3809_p0)
}
  0x2e   :  { %105 = dma.hbm_to_vmem [thread:$0]  %s4870_s7, 256, %s100_s3, [#allocation12], %s3969_s22, %s3969_s22, %s3970_s23  }
  0x2f   :  { %s3821_s27 = scalar_lea.vmem %s126_s25, 256  ;;  %p3826_p2 = scmp.lt.s32.totalorder %s126_s25, %s126_s25 }
  0x30   :  { %p3822_p1 = scmp.ne.s32.totalorder %s126_s25, %s3821_s27  ;;  %p3827_p3 = scmp.lt.s32.totalorder %s3821_s27, %s3821_s27 }
  0x32   :  { %p3828_p4 = por %p3827_p3, %p3826_p2 }
  0x34   :  { %p3829_p5 = pnand %p3828_p4, %p3822_p1 }
  0x36   :  { %3832 = shalt.err (!%p3829_p5)
}
  0x37   :  { %131 = dma.hbm_to_vmem [thread:$0]  %s4874_s11, 256, %s126_s25, [#allocation15], %s3969_s22, %s3969_s22, %s3970_s23  }
  0x38   :  { %s3973_s2 = smov [#allocation2]   ;;  %s3974_s0 = smov [#allocation7]  }
  0x39   :  { %s41_s26 = sshll.u32 %s3973_s2, 4  ;;  %s65_s4 = sshll.u32 %s3974_s0, 4  ;;  %s42_s26 = int_to_ptr.vmem [resolvable:$true] %s41_s26  ;;  %s66_s4 = int_to_ptr.vmem [resolvable:$true] %s65_s4 }
  0x3a   :  { %s3841_s7 = scalar_lea.vmem %s42_s26, 512  ;;  %p3846_p7 = scmp.lt.s32.totalorder %s42_s26, %s42_s26 }
  0x3b   :  { %p3842_p6 = scmp.ne.s32.totalorder %s42_s26, %s3841_s7  ;;  %p3847_p8 = scmp.lt.s32.totalorder %s3841_s7, %s3841_s7 }
  0x3d   :  { %p3848_p9 = por %p3847_p8, %p3846_p7 }
  0x3f   :  { %p3849_p10 = pnand %p3848_p9, %p3842_p6 }
  0x41   :  { %3852 = shalt.err (!%p3849_p10)
}
  0x42   :  { %s4895_s5 = sld [smem:[#allocation26_spill]]  ;;  %s3861_s11 = scalar_lea.vmem %s66_s4, 512 }
  0x43   :  { %p3862_p11 = scmp.ne.s32.totalorder %s66_s4, %s3861_s11  ;;  %p3866_p12 = scmp.lt.s32.totalorder %s66_s4, %s66_s4 }
  0x44   :  { %p3867_p13 = scmp.lt.s32.totalorder %s3861_s11, %s3861_s11 }
  0x46   :  { %p3868_p0 = por %p3867_p13, %p3866_p12 }
  0x48   :  { %47 = dma.hbm_to_vmem [thread:$0]  %s4895_s5, 512, %s42_s26, [#allocation3], %s3967_s28, %s3967_s28, %s3968_s29  }
  0x49   :  { %p3869_p1 = pnand %p3868_p0, %p3862_p11 }
  0x4b   :  { %3872 = shalt.err (!%p3869_p1)
}
  0x4c   :  { %s4896_s1 = sld [smem:[#allocation28_spill]]  ;;  %s3975_s24 = smov [#allocation10]  }
  0x4d   :  { %s90_s2 = sshll.u32 %s3975_s24, 4  ;;  %s3976_s0 = smov [#allocation13]   ;;  %s91_s2 = int_to_ptr.vmem [resolvable:$true] %s90_s2 }
  0x4e   :  { %s112_s7 = sshll.u32 %s3976_s0, 4  ;;  %s3881_s26 = scalar_lea.vmem %s91_s2, 16  ;;  %s113_s7 = int_to_ptr.vmem [resolvable:$true] %s112_s7 }
  0x4f   :  { %p3882_p2 = scmp.ne.s32.totalorder %s91_s2, %s3881_s26  ;;  %s3885_s3 = scalar_lea.vmem %s91_s2, 32 }
  0x50   :  { %p3886_p3 = scmp.lt.s32.totalorder %s91_s2, %s91_s2  ;;  %p3887_p4 = scmp.lt.s32.totalorder %s3885_s3, %s3881_s26 }
  0x52   :  { %71 = dma.hbm_to_vmem [thread:$0]  %s4896_s1, 512, %s66_s4, [#allocation6], %s3967_s28, %s3967_s28, %s3968_s29  }
  0x53   :  { %p3888_p5 = por %p3887_p4, %p3886_p3 }
  0x55   :  { %p3889_p6 = pnand %p3888_p5, %p3882_p2 }
  0x57   :  { %3892 = shalt.err (!%p3889_p6)
}
  0x58   :  { %93 = dma.hbm_to_vmem [thread:$0]  %s4869_s6, 16, %s91_s2, [#allocation9]  }
  0x59   :  { %s3901_s11 = scalar_lea.vmem %s113_s7, 16  ;;  %s3905_s4 = scalar_lea.vmem %s113_s7, 32 }
  0x5a   :  { %p3902_p7 = scmp.ne.s32.totalorder %s113_s7, %s3901_s11  ;;  %p3906_p8 = scmp.lt.s32.totalorder %s113_s7, %s113_s7 }
  0x5b   :  { %p3907_p9 = scmp.lt.s32.totalorder %s3905_s4, %s3901_s11 }
  0x5d   :  { %p3908_p10 = por %p3907_p9, %p3906_p8 }
  0x5f   :  { %p3909_p11 = pnand %p3908_p10, %p3902_p7 }
  0x61   :  { %3912 = shalt.err (!%p3909_p11)
}
  0x62   :  { %115 = dma.hbm_to_vmem [thread:$0]  %s4871_s8, 16, %s113_s7, [#allocation12]  }
  0x63   :  { %s3977_s1 = smov [#allocation16]  }
  0x64   :  { %s143_s24 = sshll.u32 %s3977_s1, 4  ;;  %s144_s24 = int_to_ptr.vmem [resolvable:$true] %s143_s24 }
  0x65   :  { %s3921_s0 = scalar_lea.vmem %s144_s24, 256  ;;  %p3926_p13 = scmp.lt.s32.totalorder %s144_s24, %s144_s24 }
  0x66   :  { %p3922_p12 = scmp.ne.s32.totalorder %s144_s24, %s3921_s0  ;;  %p3927_p0 = scmp.lt.s32.totalorder %s3921_s0, %s3921_s0 }
  0x68   :  { %p3928_p1 = por %p3927_p0, %p3926_p13 }
  0x6a   :  { %p3929_p2 = pnand %p3928_p1, %p3922_p12 }
  0x6c   :  { %3932 = shalt.err (!%p3929_p2)
}
  0x6d   :  { %149 = dma.hbm_to_vmem [thread:$0]  %s4878_s15, 256, %s144_s24, [#allocation15], %s3969_s22, %s3969_s22, %s3970_s23  }
  0x6e   :  { %3953 = dma.done.wait [#allocation3], 512  }
  0x6f   :  { %3954 = vsyncadd [#allocation3], 4294966784 }
  0x70   :  { %3955 = dma.done.wait [#allocation6], 768  }
  0x71   :  { %3956 = vsyncadd [#allocation6], 4294966528 }
  0x72   :  { %3957 = dma.done.wait [#allocation9], 272  }
  0x73   :  { %3958 = vsyncadd [#allocation9], 4294967024 }
  0x74   :  { %3959 = dma.done.wait [#allocation12], 272  }
  0x75   :  { %3960 = vsyncadd [#allocation12], 4294967024 }
  0x76   :  { %3961 = dma.done.wait [#allocation15], 512  }
  0x77   :  { %3962 = vsyncadd [#allocation15], 4294966784  ;;  %v3978_v0 = vmov 0.0   ;;  %vm3979_vm0 = vmmov 0   ;;  %v3699_v1 = vld [vmem:[#allocation8 + $0x8] sm:$0xff]   ;;  %v3700_v2 = vld [vmem:[#allocation11 + $0x8] sm:$0xff]  }
  0x78   :  { %3513 = vmatprep.subr.bf16.mxu0 %v3978_v0  ;;  %3517 = vmatprep.mubr.msk.bf16.mxu0 %vm3979_vm0, %v3978_v0  ;;  %v3701_v3 = vld [vmem:[#allocation8] sm:$0xff]   ;;  %v3702_v4 = vld [vmem:[#allocation11] sm:$0xff]   ;;  %s4897_s22 = sld [smem:[#allocation24_spill]]  ;;  %vm238_vm1 = vcmask 261120   ;;  %v203_v16 = vld [vmem:[#allocation7 + $0x8] sm:$0xff]  ;;  %s3981_s8 = smov 112  }
  0x79   :  { %3514 = vmatpush3.bf16.msra.mxu0 %v3699_v1  ;;  %3521 = vmatprep.subr.bf16.mxu1 %v3700_v2  ;;  %v198_v7 = vld [vmem:[#allocation5] sm:$0xff]  ;;  %v199_v8 = vld [vmem:[#allocation5 + $0x8] sm:$0xff]  ;;  %s4898_s30 = sld [smem:[#allocation25_spill]]  ;;  %v202_v15 = vld [vmem:[#allocation7] sm:$0xff]  ;;  %s3982_s15 = smov 104   ;;  %vm1919_vm2 = vcmask 64512  }
  0x7a   :  { %3515 = vmatprep.subr.bf16.mxu0 %v3978_v0  ;;  %3522 = vmatpush3.bf16.msra.mxu1 %v3700_v2  ;;  %v194_v13 = vld [vmem:[#allocation2] sm:$0xff]  ;;  %v195_v14 = vld [vmem:[#allocation2 + $0x8] sm:$0xff]  ;;  %v196_v24 = vld [vmem:[#allocation2 + $0x10] sm:$0xff]  ;;  %v3983_v63 = vmov 1983009808   ;;  %v468_v2 = vlaneseq  ;;  %vm2296_vm3 = vcmask 130048  }
  0x7b   :  { %3523 = vmatprep.subr.bf16.mxu1 %v3702_v4  ;;  %v210_v18 = vadd.f32 %v202_v15, %v194_v13  ;;  %v211_v23 = vadd.f32 %v203_v16, %v195_v14  ;;  %v197_v25 = vld [vmem:[#allocation2 + $0x18] sm:$0xff]  ;;  %v204_v26 = vld [vmem:[#allocation7 + $0x10] sm:$0xff]  ;;  %v205_v27 = vld [vmem:[#allocation7 + $0x18] sm:$0xff]  ;;  %v466_v1 = vunpack.c.l.s4 %v3983_v63  ;;  %s3986_s7 = smov 24   ;;  %vm3045_vm4 = vcmask 195584  }
  0x7c   :  { %v3703_v31 = vld [vmem:[%s4872_s9 + $0x8] sm:$0xff]   ;;  %v3704_v33 = vld [vmem:[%s4872_s9] sm:$0xff]   ;;  %v212_v34 = vadd.f32 %v204_v26, %v196_v24  ;;  %v213_v35 = vadd.f32 %v205_v27, %v197_v25  ;;  %v3391_v41 = vld [vmem:[#allocation13] ss:$0 sm:$0xff]  ;;  %s3980_s9 = smov 120   ;;  %vm3273_vm5 = vcmask 523264  }
  0x7d   :  { %3516 = vmatpush3.bf16.msra.mxu0 %v3701_v3  ;;  %v363_v32 = vpack.c.bf16 %v211_v23, %v210_v18  ;;  %v3387_v38 = vld [vmem:[#allocation10] ss:$0 sm:$0xff] }
  0x7e   :  { %v188_v5 = vld [vmem:[%s4897_s22] sm:$0xff]  ;;  %v189_v6 = vld [vmem:[%s4897_s22 + $0x8] sm:$0xff]  ;;  %3524 = vmatpush3.bf16.msra.mxu1 %v3702_v4  ;;  %3529 = vmatprep.subr.bf16.mxu0 %v3703_v31  ;;  %v364_v37 = vpack.c.bf16 %v213_v35, %v212_v34  ;;  %v3984_v4 = vmov 1934713408   ;;  %s3987_s22 = smov [#allocation17]  }
  0x7f   :  { %v4156_v9 = vadd.f32 %v198_v7, %v188_v5  ;;  %v190_v10 = vld [vmem:[%s4898_s30] sm:$0xff]  ;;  %v191_v11 = vld [vmem:[%s4898_s30 + $0x8] sm:$0xff]  ;;  %v4164_v12 = vadd.f32 %v199_v8, %v189_v6  ;;  %v192_v19 = vld [vmem:[%s4898_s30 + $0x10] sm:$0xff]  ;;  %3537 = vmatprep.subr.bf16.mxu1 %v3978_v0  ;;  %v498_v5 = vunpack.c.l.s4 %v3984_v4  ;;  %v467_v6 = vunpack.c.0.s8 %v466_v1  ;;  %s3371_s23 = sshll.u32 %s3987_s22, 4  ;;  %s3372_s23 = int_to_ptr.vmem [resolvable:$true] %s3371_s23 }
  0x80   :  { %v206_v17 = vadd.f32 %v202_v15, %v190_v10  ;;  %v193_v20 = vld [vmem:[%s4898_s30 + $0x18] sm:$0xff]  ;;  %v207_v22 = vadd.f32 %v203_v16, %v191_v11  ;;  %v208_v28 = vadd.f32 %v204_v26, %v192_v19  ;;  %v3396_v55 = vld [vmem:[%s4873_s10] ss:$0 sm:$0xff]  ;;  %v469_v7 = vshrl.u32 %v468_v2, 7  ;;  %s3985_s10 = smov 16   ;;  %p3938_p4 = scmp.lt.s32.totalorder %s3372_s23, %s3372_s23 }
  0x81   :  { %v214_v21 = vpack.c.bf16 %v4164_v12, %v4156_v9  ;;  %v209_v30 = vadd.f32 %v205_v27, %v193_v20  ;;  %v499_v11 = vunpack.c.0.s8 %v498_v5 }
  0x82   :  { %v283_v29 = vpack.c.bf16 %v207_v22, %v206_v17  ;;  %v4268_v13 = vsub.s32 %v467_v6, %v469_v7 }
  0x83   :  { %3518 = vmatmul.mubr.msk.bf16.vlgmr.msra.gmra.mxu0 %vm238_vm1, %v214_v21  ;;  %v284_v36 = vpack.c.bf16 %v209_v30, %v208_v28  ;;  %v4274_v20 = vsub.s32 %v499_v11, %v469_v7 }
  0x84   :  { %3525 = vmatprep.mubr.msk.bf16.mxu1 %vm238_vm1, %v283_v29  ;;  %3530 = vmatpush3.bf16.msra.mxu0 %v3703_v31 }
  0x85   :  { %3533 = vmatprep.mubr.msk.bf16.mxu0 %vm238_vm1, %v363_v32  ;;  %3526 = vmatmul.mubr.msk.bf16.vlgmr.msra.gmra.mxu1 %vm238_vm1, %v284_v36 }
  0x86   :  { %3531 = vmatprep.subr.bf16.mxu0 %v3704_v33  ;;  %3539 = vmatprep.mubr.msk.bf16.mxu1 %vm3979_vm0, %v3978_v0 }
  0x88   :  { %3532 = vmatpush3.bf16.msra.mxu0 %v3704_v33 }
  0x89   :  { %3543 = vmatprep.subr.bf16.mxu0 %v3978_v0 }
  0x8b   :  { %3534 = vmatmul.mubr.msk.bf16.vlgmr.msra.gmra.mxu0 %vm238_vm1, %v364_v37 }
  0x8c   :  { %3545 = vmatprep.mubr.msk.bf16.mxu0 %vm3979_vm0, %v3978_v0 }
 0x143   :  { %v276_v39 = vpop.f32.mrf.mxu0 }
 0x144   :  { %v4191_v40 = vadd.f32 %v3387_v38, %v276_v39 }
 0x145   :  { %v3519_v42 = vpop.f32.mrf.mxu0  ;;  %v3527_v43 = vpop.f32.mrf.mxu1 }
 0x146   :  { %445 = vrot.lane.b32.xlu0 %v4191_v40, %s3980_s9  ;;  %v4195_v45 = vadd.f32 %v3527_v43, %v3391_v41 }
 0x147   :  { %v279_v44 = vpop.f32.mrf.mxu0  ;;  %v348_v46 = vpop.f32.mrf.mxu1 }
 0x148   :  { %743 = vrot.lane.b32.xlu1 %v4195_v45, %s3980_s9  ;;  %v4199_v48 = vadd.f32 %v3387_v38, %v279_v44  ;;  %v4207_v50 = vadd.f32 %v3391_v41, %v348_v46 }
 0x149   :  { %v3520_v47 = vpop.f32.mrf.mxu0  ;;  %v3528_v49 = vpop.f32.mrf.mxu1 }
 0x14a   :  { %755 = vrot.lane.b32.xlu0 %v4195_v45, %s3981_s8  ;;  %v4209_v51 = vadd.f32 %v3528_v49, %v3391_v41 }
 0x14b   :  { %v351_v52 = vpop.f32.mrf.mxu1  ;;  %v3535_v54 = vpop.f32.mrf.mxu0 }
 0x14c   :  { %447 = vrot.lane.b32.xlu1 %v4199_v48, %s3980_s9  ;;  %v4223_v53 = vadd.f32 %v3391_v41, %v351_v52  ;;  %v4242_v56 = vadd.f32 %v3535_v54, %v3396_v55 }
 0x14d   :  { %v428_v57 = vpop.f32.mrf.mxu0 }
 0x14e   :  { %767 = vrot.lane.b32.xlu0 %v4195_v45, %s3982_s15  ;;  %v4246_v58 = vadd.f32 %v3396_v55, %v428_v57 }
 0x14f   :  { %v3536_v59 = vpop.f32.mrf.mxu0 }
 0x150   :  { %745 = vrot.lane.b32.xlu1 %v4209_v51, %s3980_s9  ;;  %v4254_v60 = vadd.f32 %v3536_v59, %v3396_v55 }
 0x151   :  { %v431_v61 = vpop.f32.mrf.mxu0 }
 0x152   :  { %739 = vrot.lane.b32.xlu0 %v4207_v50, %s3980_s9  ;;  %v4260_v62 = vadd.f32 %v3396_v55, %v431_v61 }
 0x154   :  { %757 = vrot.lane.b32.xlu1 %v4209_v51, %s3981_s8 }
 0x156   :  { %751 = vrot.lane.b32.xlu0 %v4207_v50, %s3981_s8 }
 0x158   :  { %769 = vrot.lane.b32.xlu1 %v4209_v51, %s3982_s15 }
 0x15a   :  { %763 = vrot.lane.b32.xlu0 %v4207_v50, %s3982_s15 }
 0x15c   :  { %753 = vrot.lane.b32.xlu1 %v4223_v53, %s3981_s8 }
 0x15e   :  { %741 = vrot.lane.b32.xlu0 %v4223_v53, %s3980_s9 }
 0x160   :  { %765 = vrot.lane.b32.xlu1 %v4223_v53, %s3982_s15 }
 0x162   :  { %451 = vrot.lane.b32.xlu0 %v4191_v40, %s3981_s8 }
 0x164   :  { %453 = vrot.lane.b32.xlu1 %v4199_v48, %s3981_s8 }
 0x166   :  { %457 = vrot.lane.b32.xlu0 %v4191_v40, %s3982_s15 }
 0x168   :  { %459 = vrot.lane.b32.xlu1 %v4199_v48, %s3982_s15 }
 0x16a   :  { %1339 = vrot.lane.b32.xlu0 %v4242_v56, %s3981_s8 }
 0x16c   :  { %1327 = vrot.lane.b32.xlu1 %v4242_v56, %s3980_s9 }
 0x16e   :  { %1335 = vrot.lane.b32.xlu0 %v4246_v58, %s3981_s8 }
 0x170   :  { %1323 = vrot.lane.b32.xlu1 %v4246_v58, %s3980_s9 }
 0x172   :  { %1325 = vrot.lane.b32.xlu0 %v4260_v62, %s3980_s9 }
 0x174   :  { %1329 = vrot.lane.b32.xlu1 %v4254_v60, %s3980_s9 }
 0x178   :  { %1341 = vrot.lane.b32.xlu1 %v4254_v60, %s3981_s8 }
 0x17c   :  { %1337 = vrot.lane.b32.xlu1 %v4260_v62, %s3981_s8 }
 0x1b8   :  { %v4266_v3 = vpop.permute.xlu0 %445 }
 0x1ba   :  { %v744_v8 = vpop.permute.xlu1 %743 }
 0x1bc   :  { %v756_v10 = vpop.permute.xlu0 %755 }
 0x1bd   :  { %v911_v14 = vcombine.low %v4195_v45, %v756_v10  ;;  %v912_v15 = vcombine.high %v4195_v45, %v756_v10 }
 0x1be   :  { %v4272_v16 = vpop.permute.xlu1 %447 }
 0x1bf   :  { %v919_v21 = vrot.slane %v911_v14, %v4268_v13  ;;  %v926_v22 = vrot.slane %v912_v15, %v4268_v13 }
 0x1c0   :  { %v768_v17 = vpop.permute.xlu0 %767 }
 0x1c1   :  { %v927_v18 = vcombine.low %v744_v8, %v768_v17  ;;  %v928_v19 = vcombine.high %v744_v8, %v768_v17 }
 0x1c2   :  { %v746_v25 = vpop.permute.xlu1 %745 }
 0x1c3   :  { %v935_v23 = vrot.slane %v927_v18, %v4268_v13  ;;  %v942_v24 = vrot.slane %v928_v19, %v4268_v13 }
 0x1c4   :  { %v740_v26 = vpop.permute.xlu0 %739 }
 0x1c5   :  { %v943_v27 = vcombine.low %v919_v21, %v935_v23  ;;  %v944_v28 = vcombine.high %v919_v21, %v935_v23  ;;  %v959_v29 = vcombine.low %v926_v22, %v942_v24  ;;  %v960_v30 = vcombine.high %v926_v22, %v942_v24 }
 0x1c6   :  { %v758_v35 = vpop.permute.xlu1 %757 }
 0x1c7   :  { %v951_v31 = vrot.slane %v943_v27, %v4274_v20  ;;  %v958_v32 = vrot.slane %v944_v28, %v4274_v20  ;;  %v967_v33 = vrot.slane %v959_v29, %v4274_v20  ;;  %v974_v34 = vrot.slane %v960_v30, %v4274_v20 }
 0x1c8   :  { %v752_v36 = vpop.permute.xlu0 %751  ;;  %v979_v42 = vcombine.low %v4209_v51, %v758_v35  ;;  %v980_v43 = vcombine.high %v4209_v51, %v758_v35 }
 0x1c9   :  { %v1183_v37 = vcombine.low %v951_v31, %v958_v32  ;;  %v3409_v38 = vcombine.high %v951_v31, %v958_v32  ;;  %v1199_v39 = vcombine.low %v967_v33, %v974_v34  ;;  %v3410_v41 = vcombine.high %v967_v33, %v974_v34 }
 0x1ca   :  { %v775_v44 = vcombine.low %v4207_v50, %v752_v36  ;;  %v776_v45 = vcombine.high %v4207_v50, %v752_v36  ;;  %v770_v54 = vpop.permute.xlu1 %769  ;;  %v987_v50 = vrot.slane %v979_v42, %v4268_v13  ;;  %v994_v63 = vrot.slane %v980_v43, %v4268_v13 }
 0x1cb   :  { %v4289_v46 = vrot.slane %v1183_v37, %v4268_v13  ;;  %v4292_v47 = vrot.slane %v3409_v38, %v4268_v13  ;;  %v4295_v49 = vrot.slane %v1199_v39, %v4268_v13  ;;  %v4298_v52 = vrot.slane %v3410_v41, %v4268_v13 }
 0x1cc   :  { %v764_v55 = vpop.permute.xlu0 %763  ;;  %v995_v57 = vcombine.low %v746_v25, %v770_v54  ;;  %v996_v51 = vcombine.high %v746_v25, %v770_v54  ;;  %v783_v6 = vrot.slane %v775_v44, %v4268_v13  ;;  %v790_v7 = vrot.slane %v776_v45, %v4268_v13 }
 0x1cd   :  { %v791_v59 = vcombine.low %v740_v26, %v764_v55  ;;  %v792_v61 = vcombine.high %v740_v26, %v764_v55  ;;  %v1215_v11 = vcombine.low %v4289_v46, %v4292_v47  ;;  %v1231_v14 = vcombine.low %v4295_v49, %v4298_v52 }
 0x1ce   :  { %v1003_v1 = vrot.slane %v995_v57, %v4268_v13  ;;  %v1010_v2 = vrot.slane %v996_v51, %v4268_v13  ;;  %v754_v8 = vpop.permute.xlu1 %753 }
 0x1cf   :  { %v799_v4 = vrot.slane %v791_v59, %v4268_v13  ;;  %v806_v5 = vrot.slane %v792_v61, %v4268_v13  ;;  %v4321_v44 = vrot.slane %v1215_v11, %v4274_v20  ;;  %v4324_v45 = vrot.slane %v1231_v14, %v4274_v20 }
 0x1d0   :  { %v742_v10 = vpop.permute.xlu0 %741  ;;  %v1011_v15 = vcombine.low %v987_v50, %v1003_v1  ;;  %v1012_v17 = vcombine.high %v987_v50, %v1003_v1  ;;  %v1027_v18 = vcombine.low %v994_v63, %v1010_v2  ;;  %v1028_v19 = vcombine.high %v994_v63, %v1010_v2 }
 0x1d1   :  { %v807_v21 = vcombine.low %v783_v6, %v799_v4  ;;  %v808_v22 = vcombine.high %v783_v6, %v799_v4  ;;  %v823_v23 = vcombine.low %v790_v7, %v806_v5  ;;  %v824_v24 = vcombine.high %v790_v7, %v806_v5 }
 0x1d2   :  { %v1019_v25 = vrot.slane %v1011_v15, %v4274_v20  ;;  %v1026_v26 = vrot.slane %v1012_v17, %v4274_v20  ;;  %v1035_v27 = vrot.slane %v1027_v18, %v4274_v20  ;;  %v1042_v28 = vrot.slane %v1028_v19, %v4274_v20  ;;  %v766_v33 = vpop.permute.xlu1 %765 }
 0x1d3   :  { %v815_v29 = vrot.slane %v807_v21, %v4274_v20  ;;  %v822_v30 = vrot.slane %v808_v22, %v4274_v20  ;;  %v831_v31 = vrot.slane %v823_v23, %v4274_v20  ;;  %v838_v32 = vrot.slane %v824_v24, %v4274_v20 }
 0x1d4   :  { %v1251_v34 = vcombine.low %v1019_v25, %v1026_v26  ;;  %v3411_v35 = vcombine.high %v1019_v25, %v1026_v26  ;;  %v1267_v36 = vcombine.low %v1035_v27, %v1042_v28  ;;  %v3412_v37 = vcombine.high %v1035_v27, %v1042_v28  ;;  %v452_v38 = vpop.permute.xlu0 %451 }
 0x1d5   :  { %v1047_v39 = vcombine.low %v815_v29, %v822_v30  ;;  %v3405_v41 = vcombine.high %v815_v29, %v822_v30  ;;  %v1063_v42 = vcombine.low %v831_v31, %v838_v32  ;;  %v3406_v43 = vcombine.high %v831_v31, %v838_v32 }
 0x1d6   :  { %v4327_v54 = vrot.slane %v1251_v34, %v4268_v13  ;;  %v4330_v55 = vrot.slane %v3411_v35, %v4268_v13  ;;  %v4333_v57 = vrot.slane %v1267_v36, %v4268_v13  ;;  %v4336_v51 = vrot.slane %v3412_v37, %v4268_v13  ;;  %v454_v59 = vpop.permute.xlu1 %453 }
 0x1d7   :  { %v843_v61 = vcombine.low %v4223_v53, %v754_v8  ;;  %v844_v50 = vcombine.high %v4223_v53, %v754_v8  ;;  %v859_v63 = vcombine.low %v742_v10, %v766_v33  ;;  %v860_v1 = vcombine.high %v742_v10, %v766_v33 }
 0x1d8   :  { %v4341_v2 = vrot.slane %v1047_v39, %v4268_v13  ;;  %v4344_v4 = vrot.slane %v3405_v41, %v4268_v13  ;;  %v4347_v5 = vrot.slane %v1063_v42, %v4268_v13  ;;  %v4350_v6 = vrot.slane %v3406_v43, %v4268_v13  ;;  %v458_v10 = vpop.permute.xlu0 %457 }
 0x1d9   :  { %v851_v7 = vrot.slane %v843_v61, %v4268_v13  ;;  %v858_v11 = vrot.slane %v844_v50, %v4268_v13  ;;  %v867_v53 = vrot.slane %v859_v63, %v4268_v13  ;;  %v874_v8 = vrot.slane %v860_v1, %v4268_v13 }
 0x1da   :  { %v463_v14 = vcombine.low %v4191_v40, %v452_v38  ;;  %v464_v15 = vcombine.high %v4191_v40, %v452_v38  ;;  %v531_v17 = vcombine.low %v4199_v48, %v454_v59  ;;  %v532_v18 = vcombine.high %v4199_v48, %v454_v59  ;;  %v460_v19 = vpop.permute.xlu1 %459 }
 0x1db   :  { %v875_v21 = vcombine.low %v851_v7, %v867_v53  ;;  %v876_v22 = vcombine.high %v851_v7, %v867_v53  ;;  %v891_v23 = vcombine.low %v858_v11, %v874_v8  ;;  %v892_v24 = vcombine.high %v858_v11, %v874_v8 }
 0x1dc   :  { %v479_v25 = vcombine.low %v4266_v3, %v458_v10  ;;  %v480_v26 = vcombine.high %v4266_v3, %v458_v10  ;;  %v547_v27 = vcombine.low %v4272_v16, %v460_v19  ;;  %v548_v28 = vcombine.high %v4272_v16, %v460_v19 }
 0x1dd   :  { %v883_v29 = vrot.slane %v875_v21, %v4274_v20  ;;  %v890_v40 = vrot.slane %v876_v22, %v4274_v20  ;;  %v899_v30 = vrot.slane %v891_v23, %v4274_v20  ;;  %v906_v48 = vrot.slane %v892_v24, %v4274_v20 }
 0x1de   :  { %v471_v31 = vrot.slane %v463_v14, %v4268_v13  ;;  %v478_v32 = vrot.slane %v464_v15, %v4268_v13  ;;  %v487_v33 = vrot.slane %v479_v25, %v4268_v13  ;;  %v494_v3 = vrot.slane %v480_v26, %v4268_v13 }
 0x1df   :  { %v539_v34 = vrot.slane %v531_v17, %v4268_v13  ;;  %v546_v16 = vrot.slane %v532_v18, %v4268_v13  ;;  %v555_v35 = vrot.slane %v547_v27, %v4268_v13  ;;  %v562_v36 = vrot.slane %v548_v28, %v4268_v13 }
 0x1e0   :  { %v495_v37 = vcombine.low %v471_v31, %v487_v33  ;;  %v496_v38 = vcombine.high %v471_v31, %v487_v33  ;;  %v511_v39 = vcombine.low %v478_v32, %v494_v3  ;;  %v512_v41 = vcombine.high %v478_v32, %v494_v3 }
 0x1e1   :  { %v1115_v42 = vcombine.low %v883_v29, %v890_v40  ;;  %v3407_v43 = vcombine.high %v883_v29, %v890_v40  ;;  %v1131_v59 = vcombine.low %v899_v30, %v906_v48  ;;  %v3408_v61 = vcombine.high %v899_v30, %v906_v48 }
 0x1e2   :  { %v503_v50 = vrot.slane %v495_v37, %v4274_v20  ;;  %v510_v63 = vrot.slane %v496_v38, %v4274_v20  ;;  %v519_v1 = vrot.slane %v511_v39, %v4274_v20  ;;  %v526_v7 = vrot.slane %v512_v41, %v4274_v20 }
 0x1e3   :  { %v563_v11 = vcombine.low %v539_v34, %v555_v35  ;;  %v564_v53 = vcombine.high %v539_v34, %v555_v35  ;;  %v579_v8 = vcombine.low %v546_v16, %v562_v36  ;;  %v580_v10 = vcombine.high %v546_v16, %v562_v36 }
 0x1e4   :  { %v599_v14 = vcombine.low %v503_v50, %v510_v63  ;;  %v3401_v15 = vcombine.high %v503_v50, %v510_v63  ;;  %v615_v17 = vcombine.low %v519_v1, %v526_v7  ;;  %v3402_v18 = vcombine.high %v519_v1, %v526_v7 }
 0x1e5   :  { %v571_v19 = vrot.slane %v563_v11, %v4274_v20  ;;  %v578_v21 = vrot.slane %v564_v53, %v4274_v20  ;;  %v587_v22 = vrot.slane %v579_v8, %v4274_v20  ;;  %v594_v23 = vrot.slane %v580_v10, %v4274_v20 }
 0x1e6   :  { %v4385_v24 = vrot.slane %v1115_v42, %v4268_v13  ;;  %v4388_v25 = vrot.slane %v3407_v43, %v4268_v13  ;;  %v4391_v26 = vrot.slane %v599_v14, %v4268_v13  ;;  %v4394_v27 = vrot.slane %v3401_v15, %v4268_v13 }
 0x1e7   :  { %v667_v28 = vcombine.low %v571_v19, %v578_v21  ;;  %v3403_v29 = vcombine.high %v571_v19, %v578_v21  ;;  %v683_v40 = vcombine.low %v587_v22, %v594_v23  ;;  %v3404_v30 = vcombine.high %v587_v22, %v594_v23 }
 0x1e8   :  { %v4397_v48 = vrot.slane %v1131_v59, %v4268_v13  ;;  %v4400_v31 = vrot.slane %v3408_v61, %v4268_v13  ;;  %v4403_v32 = vrot.slane %v615_v17, %v4268_v13  ;;  %v4406_v33 = vrot.slane %v3402_v18, %v4268_v13 }
 0x1e9   :  { %v4409_v3 = vrot.slane %v667_v28, %v4268_v13  ;;  %v4412_v34 = vrot.slane %v3403_v29, %v4268_v13  ;;  %v4415_v16 = vrot.slane %v683_v40, %v4268_v13  ;;  %v4418_v35 = vrot.slane %v3404_v30, %v4268_v13 }
 0x1ea   :  { %v1283_v36 = vcombine.low %v4327_v54, %v4330_v55  ;;  %v1299_v37 = vcombine.low %v4333_v57, %v4336_v51  ;;  %v1079_v38 = vcombine.low %v4341_v2, %v4344_v4  ;;  %v631_v39 = vcombine.low %v4391_v26, %v4394_v27 }
 0x1eb   :  { %v699_v41 = vcombine.low %v4409_v3, %v4412_v34  ;;  %v715_v42 = vcombine.low %v4415_v16, %v4418_v35  ;;  %v647_v43 = vcombine.low %v4403_v32, %v4406_v33  ;;  %v1095_v50 = vcombine.low %v4347_v5, %v4350_v6 }
 0x1ec   :  { %v1291_v59 = vrot.slane %v1283_v36, %v4274_v20  ;;  %v1307_v61 = vrot.slane %v1299_v37, %v4274_v20  ;;  %v1247_v63 = vcombine.low %v4321_v44, %v4324_v45  ;;  %v1087_v1 = vrot.slane %v1079_v38, %v4274_v20 }
 0x1ed   :  { %v1147_v7 = vcombine.low %v4385_v24, %v4388_v25  ;;  %v1163_v11 = vcombine.low %v4397_v48, %v4400_v31  ;;  %v1103_v8 = vrot.slane %v1095_v50, %v4274_v20  ;;  %v707_v10 = vrot.slane %v699_v41, %v4274_v20 }
 0x1ee   :  { %v1315_v53 = vcombine.low %v1291_v59, %v1307_v61  ;;  %v723_v14 = vrot.slane %v715_v42, %v4274_v20  ;;  %v639_v19 = vrot.slane %v631_v39, %v4274_v20  ;;  %v655_v23 = vrot.slane %v647_v43, %v4274_v20 }
 0x1ef   :  { %v1155_v15 = vrot.slane %v1147_v7, %v4274_v20  ;;  %v1171_v17 = vrot.slane %v1163_v11, %v4274_v20  ;;  %v1111_v21 = vcombine.low %v1087_v1, %v1103_v8  ;;  %v1316_v40 = vcombine.high %v1291_v59, %v1307_v61 }
 0x1f0   :  { %v1912_v18 = vpack.c.bf16 %v1315_v53, %v1247_v63  ;;  %v731_v28 = vcombine.low %v707_v10, %v723_v14  ;;  %v1216_v36 = vcombine.high %v4289_v46, %v4292_v47  ;;  %v1248_v37 = vcombine.high %v4321_v44, %v4324_v45 }
 0x1f1   :  { %v1179_v22 = vcombine.low %v1155_v15, %v1171_v17  ;;  %v1232_v38 = vcombine.high %v4295_v49, %v4298_v52  ;;  %v1284_v39 = vcombine.high %v4327_v54, %v4330_v55  ;;  %v1300_v41 = vcombine.high %v4333_v57, %v4336_v51 }
 0x1f2   :  { %v1970_v29 = vsel %vm1919_vm2, %v1912_v18, 0  ;;  %v663_v43 = vcombine.low %v639_v19, %v655_v23  ;;  %v1904_v59 = vpack.c.bf16 %v731_v28, %v731_v28  ;;  %v1180_v61 = vcombine.high %v1155_v15, %v1171_v17 }
 0x1f3   :  { %3544 = vmatpush3.bf16.xpose.msra.mxu0 %v1970_v29  ;;  %v1911_v30 = vpack.c.bf16 %v1179_v22, %v1111_v21  ;;  %v1914_v46 = vpack.c.bf16 %v1316_v40, %v1248_v37  ;;  %v1298_v47 = vrot.slane %v1284_v39, %v4274_v20  ;;  %v1314_v44 = vrot.slane %v1300_v41, %v4274_v20 }
 0x1f4   :  { %3555 = vmatprep.subr.bf16.mxu0 %v3978_v0  ;;  %v1148_v49 = vcombine.high %v4385_v24, %v4388_v25  ;;  %v1112_v52 = vcombine.high %v1087_v1, %v1103_v8  ;;  %v1080_v45 = vcombine.high %v4341_v2, %v4344_v4  ;;  %v1096_v54 = vcombine.high %v4347_v5, %v4350_v6 }
 0x1f5   :  { %v1924_v42 = vsel %vm1919_vm2, %v1911_v30, 0  ;;  %v1164_v55 = vcombine.high %v4397_v48, %v4400_v31  ;;  %v1230_v57 = vrot.slane %v1216_v36, %v4274_v20  ;;  %v1246_v51 = vrot.slane %v1232_v38, %v4274_v20 }
 0x1f6   :  { %3538 = vmatpush3.bf16.xpose.msra.mxu1 %v1924_v42  ;;  %v1903_v50 = vpack.c.bf16 %v663_v43, %v663_v43  ;;  %v1913_v63 = vpack.c.bf16 %v1180_v61, %v1112_v52  ;;  %v1162_v24 = vrot.slane %v1148_v49, %v4274_v20  ;;  %v2062_v2 = vsel %vm1919_vm2, %v1914_v46, 0 }
 0x1f7   :  { %3549 = vmatprep.subr.bf16.mxu1 %v3978_v0  ;;  %v1178_v25 = vrot.slane %v1164_v55, %v4274_v20  ;;  %v1317_v4 = vcombine.low %v1298_v47, %v1314_v44  ;;  %v1094_v5 = vrot.slane %v1080_v45, %v4274_v20  ;;  %v1110_v6 = vrot.slane %v1096_v54, %v4274_v20 }
 0x1f8   :  { %v700_v48 = vcombine.high %v4409_v3, %v4412_v34  ;;  %v716_v31 = vcombine.high %v4415_v16, %v4418_v35  ;;  %v732_v1 = vcombine.high %v707_v10, %v723_v14  ;;  %v1249_v7 = vcombine.low %v1230_v57, %v1246_v51 }
 0x1f9   :  { %v2016_v11 = vsel %vm1919_vm2, %v1913_v63, 0  ;;  %v1181_v53 = vcombine.low %v1162_v24, %v1178_v25  ;;  %v632_v3 = vcombine.high %v4391_v26, %v4394_v27  ;;  %v648_v34 = vcombine.high %v4403_v32, %v4406_v33 }
 0x1fa   :  { %3546 = vmatmul.mubr.msk.bf16.vlgmr.msra.gmra.mxu0 %vm1919_vm2, %v1904_v59  ;;  %v1916_v8 = vpack.c.bf16 %v1317_v4, %v1249_v7  ;;  %v664_v16 = vcombine.high %v639_v19, %v655_v23  ;;  %v1113_v35 = vcombine.low %v1094_v5, %v1110_v6  ;;  %v1906_v10 = vpack.c.bf16 %v732_v1, %v732_v1 }
 0x1fb   :  { %3556 = vmatpush3.bf16.xpose.msra.mxu0 %v2062_v2  ;;  %3557 = vmatprep.mubr.msk.bf16.mxu0 %vm3979_vm0, %v3978_v0  ;;  %v714_v14 = vrot.slane %v700_v48, %v4274_v20  ;;  %v730_v15 = vrot.slane %v716_v31, %v4274_v20  ;;  %v1318_v21 = vcombine.high %v1298_v47, %v1314_v44 }
 0x1fc   :  { %3567 = vmatprep.subr.bf16.mxu0 %v3978_v0  ;;  %v1915_v17 = vpack.c.bf16 %v1181_v53, %v1113_v35  ;;  %v2154_v18 = vsel %vm1919_vm2, %v1916_v8, 0  ;;  %v1905_v22 = vpack.c.bf16 %v664_v16, %v664_v16  ;;  %v646_v26 = vrot.slane %v632_v3, %v4274_v20 }
 0x1fd   :  { %3540 = vmatmul.mubr.msk.bf16.vlgmr.msra.gmra.mxu1 %vm1919_vm2, %v1903_v50  ;;  %v662_v27 = vrot.slane %v648_v34, %v4274_v20  ;;  %v733_v32 = vcombine.low %v714_v14, %v730_v15  ;;  %v1250_v33 = vcombine.high %v1230_v57, %v1246_v51  ;;  %v1182_v23 = vcombine.high %v1162_v24, %v1178_v25 }
 0x1fe   :  { %3550 = vmatpush3.bf16.xpose.msra.mxu1 %v2016_v11  ;;  %3551 = vmatprep.mubr.msk.bf16.mxu1 %vm3979_vm0, %v3978_v0  ;;  %v2108_v19 = vsel %vm1919_vm2, %v1915_v17, 0  ;;  %v1114_v40 = vcombine.high %v1094_v5, %v1110_v6  ;;  %v734_v39 = vcombine.high %v714_v14, %v730_v15 }
 0x1ff   :  { %3561 = vmatprep.subr.bf16.mxu1 %v3978_v0  ;;  %v1918_v28 = vpack.c.bf16 %v1318_v21, %v1250_v33  ;;  %v665_v29 = vcombine.low %v646_v26, %v662_v27  ;;  %v1908_v30 = vpack.c.bf16 %v733_v32, %v733_v32  ;;  %v666_v42 = vcombine.high %v646_v26, %v662_v27 }
 0x200   :  { %v1917_v36 = vpack.c.bf16 %v1182_v23, %v1114_v40  ;;  %v1910_v43 = vpack.c.bf16 %v734_v39, %v734_v39 }
 0x201   :  { %v2246_v37 = vsel %vm1919_vm2, %v1918_v28, 0  ;;  %v1907_v38 = vpack.c.bf16 %v665_v29, %v665_v29  ;;  %v1909_v59 = vpack.c.bf16 %v666_v42, %v666_v42 }
 0x202   :  { %3558 = vmatmul.mubr.msk.bf16.vlgmr.msra.gmra.mxu0 %vm1919_vm2, %v1906_v10  ;;  %v2200_v41 = vsel %vm1919_vm2, %v1917_v36, 0 }
 0x203   :  { %3568 = vmatpush3.bf16.xpose.msra.mxu0 %v2154_v18  ;;  %3569 = vmatprep.mubr.msk.bf16.mxu0 %vm3979_vm0, %v3978_v0 }
 0x204   :  { %3579 = vmatprep.subr.bf16.mxu0 %v3978_v0 }
 0x205   :  { %3552 = vmatmul.mubr.msk.bf16.vlgmr.msra.gmra.mxu1 %vm1919_vm2, %v1905_v22 }
 0x206   :  { %3562 = vmatpush3.bf16.xpose.msra.mxu1 %v2108_v19  ;;  %3563 = vmatprep.mubr.msk.bf16.mxu1 %vm3979_vm0, %v3978_v0 }
 0x207   :  { %3573 = vmatprep.subr.bf16.mxu1 %v3978_v0 }
 0x20a   :  { %3570 = vmatmul.mubr.msk.bf16.vlgmr.msra.gmra.mxu0 %vm1919_vm2, %v1908_v30 }
 0x20b   :  { %3580 = vmatpush3.bf16.xpose.msra.mxu0 %v2246_v37  ;;  %3581 = vmatprep.mubr.msk.bf16.mxu0 %vm3979_vm0, %v3978_v0  ;;  %v4566_v37 = vpop.permute.xlu1 %1327 }
 0x20c   :  { %3591 = vmatprep.subr.bf16.mxu0 %v3978_v0 }
 0x20d   :  { %3564 = vmatmul.mubr.msk.bf16.vlgmr.msra.gmra.mxu1 %vm1919_vm2, %v1907_v38 }
 0x20e   :  { %3574 = vmatpush3.bf16.xpose.msra.mxu1 %v2200_v41  ;;  %3575 = vmatprep.mubr.msk.bf16.mxu1 %vm3979_vm0, %v3978_v0  ;;  %v4570_v41 = vpop.permute.xlu0 %1339 }
 0x20f   :  { %3585 = vmatprep.subr.bf16.mxu1 %v3978_v0  ;;  %v1324_v38 = vpop.permute.xlu1 %1323 }
 0x212   :  { %3582 = vmatmul.mubr.msk.bf16.vlgmr.msra.gmra.mxu0 %vm1919_vm2, %v1910_v43  ;;  %v1336_v43 = vpop.permute.xlu0 %1335 }
 0x213   :  { %3593 = vmatprep.mubr.msk.bf16.mxu0 %vm3979_vm0, %v3978_v0  ;;  %v4568_v39 = vpop.permute.xlu1 %1329 }
 0x215   :  { %3576 = vmatmul.mubr.msk.bf16.vlgmr.msra.gmra.mxu1 %vm1919_vm2, %v1909_v59 }
 0x216   :  { %3587 = vmatprep.mubr.msk.bf16.mxu1 %vm3979_vm0, %v3978_v0 }
 0x217   :  { %v4572_v42 = vpop.permute.xlu1 %1341 }
 0x21b   :  { %v1338_v59 = vpop.permute.xlu1 %1337 }
 0x2ba   :  { %v2006_v61 = vpop.f32.mrf.mxu0 }
 0x2bb   :  { %v4530_v46 = vmul.f32 0.35355338, %v2006_v61  ;;  %v1326_v61 = vpop.permute.xlu0 %1325 }
 0x2bc   :  { %v3547_v47 = vpop.f32.mrf.mxu0 }
 0x2bd   :  { %v1960_v44 = vpop.f32.mrf.mxu1  ;;  %v2300_v49 = vsel %vm2296_vm3, %v4530_v46, -inf }
 0x2be   :  { %v4534_v52 = vmul.f32 0.35355338, %v1960_v44  ;;  %v2009_v45 = vpop.f32.mrf.mxu0  ;;  %2301 = vmax.xlane.f32.xlu1 %v2300_v49 }
 0x2bf   :  { %v3541_v54 = vpop.f32.mrf.mxu1 }
 0x2c0   :  { %v2297_v55 = vsel %vm2296_vm3, %v4534_v52, -inf  ;;  %v3548_v57 = vpop.f32.mrf.mxu0 }
 0x2c1   :  { %v1963_v51 = vpop.f32.mrf.mxu1  ;;  %2298 = vmax.xlane.f32.xlu0 %v2297_v55 }
 0x2c2   :  { %v2098_v50 = vpop.f32.mrf.mxu0 }
 0x2c3   :  { %v3542_v63 = vpop.f32.mrf.mxu1  ;;  %v4538_v24 = vmul.f32 0.35355338, %v2098_v50 }
 0x2c4   :  { %v3559_v25 = vpop.f32.mrf.mxu0 }
 0x2c5   :  { %v2052_v2 = vpop.f32.mrf.mxu1  ;;  %v2306_v4 = vsel %vm2296_vm3, %v4538_v24, -inf }
 0x2c6   :  { %v4542_v5 = vmul.f32 0.35355338, %v2052_v2  ;;  %v2101_v6 = vpop.f32.mrf.mxu0  ;;  %2307 = vmax.xlane.f32.xlu0 %v2306_v4 }
 0x2c7   :  { %v3553_v48 = vpop.f32.mrf.mxu1  ;;  %v1359_v6 = vcombine.low %v4246_v58, %v1336_v43 }
 0x2c8   :  { %v3560_v31 = vpop.f32.mrf.mxu0  ;;  %v2303_v7 = vsel %vm2296_vm3, %v4542_v5, -inf  ;;  %v1360_v48 = vcombine.high %v4246_v58, %v1336_v43 }
 0x2c9   :  { %v2055_v1 = vpop.f32.mrf.mxu1 }
 0x2ca   :  { %v2190_v11 = vpop.f32.mrf.mxu0  ;;  %2304 = vmax.xlane.f32.xlu0 %v2303_v7 }
 0x2cb   :  { %v3554_v53 = vpop.f32.mrf.mxu1  ;;  %v4546_v8 = vmul.f32 0.35355338, %v2190_v11 }
 0x2cc   :  { %v3571_v3 = vpop.f32.mrf.mxu0  ;;  %v1427_v53 = vcombine.low %v4260_v62, %v1338_v59 }
 0x2cd   :  { %v2144_v34 = vpop.f32.mrf.mxu1  ;;  %v2312_v16 = vsel %vm2296_vm3, %v4546_v8, -inf  ;;  %v1428_v3 = vcombine.high %v4260_v62, %v1338_v59 }
 0x2ce   :  { %v4550_v35 = vmul.f32 0.35355338, %v2144_v34  ;;  %v2193_v10 = vpop.f32.mrf.mxu0  ;;  %2313 = vmax.xlane.f32.xlu0 %v2312_v16  ;;  %v1367_v34 = vrot.slane %v1359_v6, %v4268_v13  ;;  %v1374_v16 = vrot.slane %v1360_v48, %v4268_v13 }
 0x2cf   :  { %v3565_v14 = vpop.f32.mrf.mxu1 }
 0x2d0   :  { %v2309_v15 = vsel %vm2296_vm3, %v4550_v35, -inf  ;;  %v3572_v17 = vpop.f32.mrf.mxu0 }
 0x2d1   :  { %v2147_v18 = vpop.f32.mrf.mxu1  ;;  %2310 = vmax.xlane.f32.xlu1 %v2309_v15 }
 0x2d2   :  { %v2282_v21 = vpop.f32.mrf.mxu0 }
 0x2d3   :  { %v3566_v22 = vpop.f32.mrf.mxu1  ;;  %v4554_v26 = vmul.f32 0.35355338, %v2282_v21 }
 0x2d4   :  { %v3583_v27 = vpop.f32.mrf.mxu0 }
 0x2d5   :  { %v2236_v32 = vpop.f32.mrf.mxu1  ;;  %v2318_v33 = vsel %vm2296_vm3, %v4554_v26, -inf }
 0x2d6   :  { %v4558_v19 = vmul.f32 0.35355338, %v2236_v32  ;;  %v2285_v23 = vpop.f32.mrf.mxu0  ;;  %2319 = vmax.xlane.f32.xlu0 %v2318_v33  ;;  %v1435_v32 = vrot.slane %v1427_v53, %v4268_v13  ;;  %v1442_v33 = vrot.slane %v1428_v3, %v4268_v13 }
 0x2d7   :  { %v3577_v28 = vpop.f32.mrf.mxu1 }
 0x2d8   :  { %v2315_v29 = vsel %vm2296_vm3, %v4558_v19, -inf  ;;  %v3584_v40 = vpop.f32.mrf.mxu0 }
 0x2d9   :  { %v2239_v30 = vpop.f32.mrf.mxu1  ;;  %2316 = vmax.xlane.f32.xlu1 %v2315_v29 }
 0x2db   :  { %v3578_v36 = vpop.f32.mrf.mxu1 }
 0x2ea   :  { %1349 = vrot.lane.b32.xlu1 %v4260_v62, %s3982_s15 }
 0x2ec   :  { %1347 = vrot.lane.b32.xlu0 %v4246_v58, %s3982_s15 }
 0x347   :  { %v2302_v47 = vpop.xlane.xlu1 %2301 }
 0x348   :  { %v2322_v44 = vsub.f32 %v4530_v46, %v2302_v47 }
 0x34a   :  { %v2299_v49 = vpop.xlane.xlu0 %2298  ;;  %v2331_v45 = vmul.f32 1.442695, %v2322_v44 }
 0x34b   :  { %v2321_v54 = vsub.f32 %v4534_v52, %v2299_v49 }
 0x34c   :  { %3713 = vpow2.f32 %v2331_v45 }
 0x34d   :  { %v2329_v55 = vmul.f32 1.442695, %v2321_v54 }
 0x34f   :  { %3715 = vpow2.f32 %v2329_v55  ;;  %v4576_v57 = vpop.xlane.xlu0 %2307 }
 0x353   :  { %v4578_v51 = vpop.xlane.xlu0 %2304 }
 0x357   :  { %v4584_v25 = vpop.xlane.xlu0 %2313 }
 0x359   :  { %v4580_v50 = vpop.eup %3713 }
 0x35a   :  { %v2348_v63 = vsel %vm2296_vm3, %v4580_v50, 0.0  ;;  %v4590_v2 = vpop.xlane.xlu1 %2310 }
 0x35b   :  { %2349 = vadd.xlane.f32.xlu0 %v2348_v63 }
 0x35c   :  { %v4586_v46 = vpop.eup %3715 }
 0x35d   :  { %v2345_v52 = vsel %vm2296_vm3, %v4586_v46, 0.0 }
 0x35e   :  { %2346 = vadd.xlane.f32.xlu1 %v2345_v52 }
 0x35f   :  { %v4592_v4 = vpop.xlane.xlu0 %2319 }
 0x362   :  { %v4596_v31 = vpop.xlane.xlu1 %2316 }
 0x363   :  { %v1348_v1 = vpop.permute.xlu0 %1347 }
 0x364   :  { %v1375_v7 = vcombine.low %v1324_v38, %v1348_v1  ;;  %v1376_v11 = vcombine.high %v1324_v38, %v1348_v1 }
 0x366   :  { %v1383_v10 = vrot.slane %v1375_v7, %v4268_v13  ;;  %v1390_v14 = vrot.slane %v1376_v11, %v4268_v13  ;;  %v1350_v15 = vpop.permute.xlu1 %1349 }
 0x367   :  { %v1443_v17 = vcombine.low %v1326_v61, %v1350_v15  ;;  %v1444_v58 = vcombine.high %v1326_v61, %v1350_v15 }
 0x368   :  { %v1391_v18 = vcombine.low %v1367_v34, %v1383_v10  ;;  %v1392_v21 = vcombine.high %v1367_v34, %v1383_v10  ;;  %v1407_v22 = vcombine.low %v1374_v16, %v1390_v14  ;;  %v1408_v27 = vcombine.high %v1374_v16, %v1390_v14 }
 0x369   :  { %v1451_v62 = vrot.slane %v1443_v17, %v4268_v13  ;;  %v1458_v23 = vrot.slane %v1444_v58, %v4268_v13 }
 0x36a   :  { %v1399_v28 = vrot.slane %v1391_v18, %v4274_v20  ;;  %v1406_v29 = vrot.slane %v1392_v21, %v4274_v20  ;;  %v1415_v40 = vrot.slane %v1407_v22, %v4274_v20  ;;  %v1422_v30 = vrot.slane %v1408_v27, %v4274_v20 }
 0x36b   :  { %v1459_v36 = vcombine.low %v1435_v32, %v1451_v62  ;;  %v1460_v38 = vcombine.high %v1435_v32, %v1451_v62  ;;  %v1475_v43 = vcombine.low %v1442_v33, %v1458_v23  ;;  %v1476_v59 = vcombine.high %v1442_v33, %v1458_v23 }
 0x36c   :  { %v1631_v61 = vcombine.low %v1399_v28, %v1406_v29  ;;  %v3413_v47 = vcombine.high %v1399_v28, %v1406_v29  ;;  %v1647_v44 = vcombine.low %v1415_v40, %v1422_v30  ;;  %v3414_v49 = vcombine.high %v1415_v40, %v1422_v30 }
 0x36d   :  { %v1467_v45 = vrot.slane %v1459_v36, %v4274_v20  ;;  %v1474_v54 = vrot.slane %v1460_v38, %v4274_v20  ;;  %v1483_v55 = vrot.slane %v1475_v43, %v4274_v20  ;;  %v1490_v63 = vrot.slane %v1476_v59, %v4274_v20 }
 0x36e   :  { %v1638_v52 = vrot.slane %v1631_v61, %v4268_v13  ;;  %v1646_v6 = vrot.slane %v3413_v47, %v4268_v13  ;;  %v1654_v48 = vrot.slane %v1647_v44, %v4268_v13  ;;  %v1662_v1 = vrot.slane %v3414_v49, %v4268_v13 }
 0x36f   :  { %v1699_v7 = vcombine.low %v1467_v45, %v1474_v54  ;;  %v3415_v11 = vcombine.high %v1467_v45, %v1474_v54  ;;  %v1715_v53 = vcombine.low %v1483_v55, %v1490_v63  ;;  %v3416_v3 = vcombine.high %v1483_v55, %v1490_v63  ;;  %1353 = vrot.lane.b32.xlu1 %v4254_v60, %s3982_s15 }
 0x370   :  { %v1663_v34 = vcombine.low %v1638_v52, %v1646_v6  ;;  %v1679_v16 = vcombine.low %v1654_v48, %v1662_v1  ;;  %v1664_v21 = vcombine.high %v1638_v52, %v1646_v6  ;;  %v1680_v32 = vcombine.high %v1654_v48, %v1662_v1 }
 0x371   :  { %v1706_v10 = vrot.slane %v1699_v7, %v4268_v13  ;;  %v1714_v14 = vrot.slane %v3415_v11, %v4268_v13  ;;  %v1722_v15 = vrot.slane %v1715_v53, %v4268_v13  ;;  %v1730_v17 = vrot.slane %v3416_v3, %v4268_v13  ;;  %1351 = vrot.lane.b32.xlu0 %v4242_v56, %s3982_s15 }
 0x372   :  { %v1671_v58 = vrot.slane %v1663_v34, %v4274_v20  ;;  %v1687_v18 = vrot.slane %v1679_v16, %v4274_v20  ;;  %v1678_v23 = vrot.slane %v1664_v21, %v4274_v20  ;;  %v1694_v36 = vrot.slane %v1680_v32, %v4274_v20 }
 0x373   :  { %v1731_v22 = vcombine.low %v1706_v10, %v1714_v14  ;;  %v1747_v27 = vcombine.low %v1722_v15, %v1730_v17  ;;  %v1732_v33 = vcombine.high %v1706_v10, %v1714_v14  ;;  %v1748_v28 = vcombine.high %v1722_v15, %v1730_v17 }
 0x374   :  { %v1696_v62 = vcombine.high %v1671_v58, %v1687_v18  ;;  %v1695_v29 = vcombine.low %v1671_v58, %v1687_v18  ;;  %v2323_v38 = vsub.f32 %v4542_v5, %v4578_v51  ;;  %v1697_v44 = vcombine.low %v1678_v23, %v1694_v36 }
 0x375   :  { %v1739_v40 = vrot.slane %v1731_v22, %v4274_v20  ;;  %v1755_v30 = vrot.slane %v1747_v27, %v4274_v20  ;;  %v1746_v43 = vrot.slane %v1732_v33, %v4274_v20  ;;  %v1762_v59 = vrot.slane %v1748_v28, %v4274_v20 }
 0x376   :  { %v1698_v49 = vcombine.high %v1678_v23, %v1694_v36  ;;  %v2324_v52 = vsub.f32 %v4538_v24, %v4576_v57  ;;  %v2333_v5 = vmul.f32 1.442695, %v2323_v38  ;;  %v2325_v51 = vsub.f32 %v4550_v35, %v4590_v2 }
 0x377   :  { %v1763_v61 = vcombine.low %v1739_v40, %v1755_v30  ;;  %v1764_v47 = vcombine.high %v1739_v40, %v1755_v30  ;;  %v1765_v45 = vcombine.low %v1746_v43, %v1762_v59  ;;  %v1766_v54 = vcombine.high %v1746_v43, %v1762_v59 }
 0x378   :  { %v2335_v1 = vmul.f32 1.442695, %v2324_v52  ;;  %v2327_v7 = vsub.f32 %v4558_v19, %v4596_v31  ;;  %3717 = vpow2.f32 %v2333_v5  ;;  %v2326_v11 = vsub.f32 %v4546_v8, %v4584_v25 }
 0x379   :  { %v2393_v55 = vpack.c.bf16 %v1763_v61, %v1695_v29  ;;  %v4638_v63 = vpack.c.bf16 %v1764_v47, %v1696_v62  ;;  %v4642_v6 = vpack.c.bf16 %v1765_v45, %v1697_v44  ;;  %v4644_v48 = vpack.c.bf16 %v1766_v54, %v1698_v49 }
 0x37a   :  { %v2337_v24 = vmul.f32 1.442695, %v2325_v51  ;;  %3719 = vpow2.f32 %v2335_v1  ;;  %v2341_v57 = vmul.f32 1.442695, %v2327_v7  ;;  %v2339_v53 = vmul.f32 1.442695, %v2326_v11 }
 0x37b   :  { %3586 = vmatpush3.bf16.msra.mxu1 %v2393_v55  ;;  %v2328_v3 = vsub.f32 %v4554_v26, %v4592_v4  ;;  %v1495_v58 = vcombine.low %v4242_v56, %v4570_v41  ;;  %v1496_v18 = vcombine.high %v4242_v56, %v4570_v41  ;;  %v1563_v33 = vcombine.low %v4254_v60, %v4572_v42 }
 0x37c   :  { %3597 = vmatprep.subr.bf16.mxu1 %v3978_v0  ;;  %3721 = vpow2.f32 %v2337_v24  ;;  %v1564_v62 = vcombine.high %v4254_v60, %v4572_v42 }
 0x37d   :  { %3723 = vpow2.f32 %v2341_v57  ;;  %v2343_v35 = vmul.f32 1.442695, %v2328_v3  ;;  %v1503_v23 = vrot.slane %v1495_v58, %v4268_v13  ;;  %v1510_v28 = vrot.slane %v1496_v18, %v4268_v13 }
 0x37e   :  { %3725 = vpow2.f32 %v2339_v53  ;;  %v1571_v60 = vrot.slane %v1563_v33, %v4268_v13  ;;  %v1578_v42 = vrot.slane %v1564_v62, %v4268_v13 }
 0x37f   :  { %3727 = vpow2.f32 %v2343_v35 }
 0x385   :  { %v4655_v2 = vpop.eup %3717 }
 0x386   :  { %v2351_v19 = vsel %vm2296_vm3, %v4655_v2, 0.0 }
 0x387   :  { %v4657_v34 = vpop.eup %3719 }
 0x388   :  { %v2354_v25 = vsel %vm2296_vm3, %v4657_v34, 0.0 }
 0x389   :  { %v4661_v8 = vpop.eup %3721 }
 0x38a   :  { %v4665_v31 = vpop.eup %3723  ;;  %v2357_v26 = vsel %vm2296_vm3, %v4661_v8, 0.0 }
 0x38b   :  { %v4669_v4 = vpop.eup %3725  ;;  %v2363_v16 = vsel %vm2296_vm3, %v4665_v31, 0.0 }
 0x38c   :  { %v2360_v10 = vsel %vm2296_vm3, %v4669_v4, 0.0  ;;  %v4675_v14 = vpop.eup %3727 }
 0x38d   :  { %v2366_v15 = vsel %vm2296_vm3, %v4675_v14, 0.0 }
 0x390   :  { %2352 = vadd.xlane.f32.xlu0 %v2351_v19 }
 0x393   :  { %2355 = vadd.xlane.f32.xlu1 %v2354_v25 }
 0x394   :  { %2358 = vadd.xlane.f32.xlu0 %v2357_v26 }
 0x397   :  { %2364 = vadd.xlane.f32.xlu1 %v2363_v16 }
 0x398   :  { %2361 = vadd.xlane.f32.xlu0 %v2360_v10 }
 0x39c   :  { %2367 = vadd.xlane.f32.xlu0 %v2366_v15 }
 0x3e4   :  { %v2350_v17 = vpop.xlane.xlu0 %2349 }
 0x3e7   :  { %v2347_v21 = vpop.xlane.xlu1 %2346 }
 0x3e8   :  { %3729 = vrcp.f32 %v2347_v21  ;;  %v1352_v22 = vpop.permute.xlu0 %1351 }
 0x3e9   :  { %v1511_v27 = vcombine.low %v4566_v37, %v1352_v22  ;;  %v1512_v32 = vcombine.high %v4566_v37, %v1352_v22  ;;  %3731 = vrcp.f32 %v2350_v17 }
 0x3eb   :  { %v1519_v29 = vrot.slane %v1511_v27, %v4268_v13  ;;  %v1526_v56 = vrot.slane %v1512_v32, %v4268_v13  ;;  %v1354_v41 = vpop.permute.xlu1 %1353 }
 0x3ec   :  { %v1579_v40 = vcombine.low %v4568_v39, %v1354_v41  ;;  %v1580_v37 = vcombine.high %v4568_v39, %v1354_v41 }
 0x3ed   :  { %v1527_v30 = vcombine.low %v1503_v23, %v1519_v29  ;;  %v1528_v36 = vcombine.high %v1503_v23, %v1519_v29  ;;  %v1543_v38 = vcombine.low %v1510_v28, %v1526_v56  ;;  %v1544_v43 = vcombine.high %v1510_v28, %v1526_v56 }
 0x3ee   :  { %v1587_v59 = vrot.slane %v1579_v40, %v4268_v13  ;;  %v1594_v61 = vrot.slane %v1580_v37, %v4268_v13 }
 0x3ef   :  { %v1535_v47 = vrot.slane %v1527_v30, %v4274_v20  ;;  %v1542_v44 = vrot.slane %v1528_v36, %v4274_v20  ;;  %v1551_v49 = vrot.slane %v1543_v38, %v4274_v20  ;;  %v1558_v39 = vrot.slane %v1544_v43, %v4274_v20 }
 0x3f0   :  { %v1595_v45 = vcombine.low %v1571_v60, %v1587_v59  ;;  %v1596_v54 = vcombine.high %v1571_v60, %v1587_v59  ;;  %v1611_v55 = vcombine.low %v1578_v42, %v1594_v61  ;;  %v1612_v52 = vcombine.high %v1578_v42, %v1594_v61 }
 0x3f1   :  { %v1767_v5 = vcombine.low %v1535_v47, %v1542_v44  ;;  %v3417_v51 = vcombine.high %v1535_v47, %v1542_v44  ;;  %v1783_v1 = vcombine.low %v1551_v49, %v1558_v39  ;;  %v3418_v7 = vcombine.high %v1551_v49, %v1558_v39 }
 0x3f2   :  { %v1603_v11 = vrot.slane %v1595_v45, %v4274_v20  ;;  %v1610_v24 = vrot.slane %v1596_v54, %v4274_v20  ;;  %v1619_v57 = vrot.slane %v1611_v55, %v4274_v20  ;;  %v1626_v53 = vrot.slane %v1612_v52, %v4274_v20 }
 0x3f3   :  { %v1774_v3 = vrot.slane %v1767_v5, %v4268_v13  ;;  %v1782_v35 = vrot.slane %v3417_v51, %v4268_v13  ;;  %v1790_v19 = vrot.slane %v1783_v1, %v4268_v13  ;;  %v1798_v25 = vrot.slane %v3418_v7, %v4268_v13 }
 0x3f4   :  { %v1835_v26 = vcombine.low %v1603_v11, %v1610_v24  ;;  %v3419_v16 = vcombine.high %v1603_v11, %v1610_v24  ;;  %v1851_v10 = vcombine.low %v1619_v57, %v1626_v53  ;;  %v3420_v15 = vcombine.high %v1619_v57, %v1626_v53 }
 0x3f5   :  { %v3730_v17 = vpop.eup %3729  ;;  %v1799_v58 = vcombine.low %v1774_v3, %v1782_v35  ;;  %v1815_v18 = vcombine.low %v1790_v19, %v1798_v25  ;;  %v1800_v21 = vcombine.high %v1774_v3, %v1782_v35  ;;  %v1816_v40 = vcombine.high %v1790_v19, %v1798_v25 }
 0x3f6   :  { %v1842_v22 = vrot.slane %v1835_v26, %v4268_v13  ;;  %v1850_v27 = vrot.slane %v3419_v16, %v4268_v13  ;;  %v1858_v32 = vrot.slane %v1851_v10, %v4268_v13  ;;  %v1866_v33 = vrot.slane %v3420_v15, %v4268_v13  ;;  %v3732_v37 = vpop.eup %3731 }
 0x3f7   :  { %v2377_v62 = vmul.f32 %v3730_v17, %v4586_v46  ;;  %v1807_v23 = vrot.slane %v1799_v58, %v4274_v20  ;;  %v1823_v28 = vrot.slane %v1815_v18, %v4274_v20  ;;  %v1814_v41 = vrot.slane %v1800_v21, %v4274_v20 }
 0x3f8   :  { %v1867_v29 = vcombine.low %v1842_v22, %v1850_v27  ;;  %v1883_v56 = vcombine.low %v1858_v32, %v1866_v33  ;;  %v1868_v43 = vcombine.high %v1842_v22, %v1850_v27  ;;  %v1830_v46 = vrot.slane %v1816_v40, %v4274_v20 }
 0x3f9   :  { %v2385_v30 = vpack.c.bf16 %v2377_v62, %v2377_v62  ;;  %v1831_v36 = vcombine.low %v1807_v23, %v1823_v28  ;;  %v1832_v38 = vcombine.high %v1807_v23, %v1823_v28  ;;  %v1884_v59 = vcombine.high %v1858_v32, %v1866_v33 }
 0x3fa   :  { %v1875_v60 = vrot.slane %v1867_v29, %v4274_v20  ;;  %v1891_v42 = vrot.slane %v1883_v56, %v4274_v20  ;;  %v1882_v61 = vrot.slane %v1868_v43, %v4274_v20  ;;  %v2378_v49 = vmul.f32 %v3732_v37, %v4580_v50 }
 0x3fb   :  { %3588 = vmatmul.mubr.msk.bf16.vlgmr.msra.gmra.mxu1 %vm2296_vm3, %v2385_v30  ;;  %v1833_v39 = vcombine.low %v1814_v41, %v1830_v46  ;;  %v1898_v45 = vrot.slane %v1884_v59, %v4274_v20  ;;  %v1834_v54 = vcombine.high %v1814_v41, %v1830_v46 }
 0x3fc   :  { %3598 = vmatpush3.bf16.msra.mxu1 %v4638_v63  ;;  %v1899_v47 = vcombine.low %v1875_v60, %v1891_v42  ;;  %v1900_v44 = vcombine.high %v1875_v60, %v1891_v42  ;;  %3599 = vmatprep.mubr.msk.bf16.mxu1 %vm3979_vm0, %v3978_v0  ;;  %v2386_v1 = vpack.c.bf16 %v2378_v49, %v2378_v49 }
 0x3fd   :  { %3609 = vmatprep.subr.bf16.mxu1 %v3978_v0  ;;  %v1901_v5 = vcombine.low %v1882_v61, %v1898_v45  ;;  %v1902_v51 = vcombine.high %v1882_v61, %v1898_v45 }
 0x3fe   :  { %v2394_v55 = vpack.c.bf16 %v1899_v47, %v1831_v36  ;;  %v2396_v52 = vpack.c.bf16 %v1900_v44, %v1832_v38 }
 0x3ff   :  { %v2398_v63 = vpack.c.bf16 %v1901_v5, %v1833_v39  ;;  %v2400_v7 = vpack.c.bf16 %v1902_v51, %v1834_v54 }
 0x400   :  { %3592 = vmatpush3.bf16.msra.mxu0 %v2394_v55 }
 0x401   :  { %3603 = vmatprep.subr.bf16.mxu0 %v3978_v0 }
 0x403   :  { %3594 = vmatmul.mubr.msk.bf16.vlgmr.msra.gmra.mxu0 %vm2296_vm3, %v2386_v1 }
 0x404   :  { %3604 = vmatpush3.bf16.msra.mxu0 %v2396_v52  ;;  %3605 = vmatprep.mubr.msk.bf16.mxu0 %vm3979_vm0, %v3978_v0 }
 0x405   :  { %3615 = vmatprep.subr.bf16.mxu0 %v3978_v0 }
 0x419   :  { %v2353_v50 = vpop.xlane.xlu0 %2352 }
 0x41a   :  { %3733 = vrcp.f32 %v2353_v50 }
 0x41c   :  { %v2356_v11 = vpop.xlane.xlu1 %2355 }
 0x41d   :  { %3735 = vrcp.f32 %v2356_v11  ;;  %v2359_v24 = vpop.xlane.xlu0 %2358 }
 0x41e   :  { %3737 = vrcp.f32 %v2359_v24 }
 0x420   :  { %v2365_v53 = vpop.xlane.xlu1 %2364 }
 0x421   :  { %v2362_v57 = vpop.xlane.xlu0 %2361 }
 0x422   :  { %3739 = vrcp.f32 %v2362_v57 }
 0x423   :  { %3741 = vrcp.f32 %v2365_v53 }
 0x425   :  { %v2368_v3 = vpop.xlane.xlu0 %2367 }
 0x426   :  { %3743 = vrcp.f32 %v2368_v3 }
 0x427   :  { %v3734_v35 = vpop.eup %3733 }
 0x428   :  { %v2379_v19 = vmul.f32 %v3734_v35, %v4655_v2 }
 0x42a   :  { %v3736_v25 = vpop.eup %3735  ;;  %v2387_v26 = vpack.c.bf16 %v2379_v19, %v2379_v19 }
 0x42b   :  { %v3738_v16 = vpop.eup %3737  ;;  %v2380_v10 = vmul.f32 %v3736_v25, %v4657_v34 }
 0x42c   :  { %3600 = vmatmul.mubr.msk.bf16.vlgmr.msra.gmra.mxu1 %vm2296_vm3, %v2387_v26  ;;  %v2381_v17 = vmul.f32 %v3738_v16, %v4661_v8 }
 0x42d   :  { %v2388_v15 = vpack.c.bf16 %v2380_v10, %v2380_v10  ;;  %3610 = vmatpush3.bf16.msra.mxu1 %v4642_v6  ;;  %3611 = vmatprep.mubr.msk.bf16.mxu1 %vm3979_vm0, %v3978_v0 }
 0x42e   :  { %3621 = vmatprep.subr.bf16.mxu1 %v3978_v0  ;;  %v2389_v34 = vpack.c.bf16 %v2381_v17, %v2381_v17 }
 0x42f   :  { %v3740_v58 = vpop.eup %3739  ;;  %3606 = vmatmul.mubr.msk.bf16.vlgmr.msra.gmra.mxu0 %vm2296_vm3, %v2388_v15 }
 0x430   :  { %3616 = vmatpush3.bf16.msra.mxu0 %v2398_v63  ;;  %3617 = vmatprep.mubr.msk.bf16.mxu0 %vm3979_vm0, %v3978_v0  ;;  %v2382_v2 = vmul.f32 %v3740_v58, %v4669_v4  ;;  %v3742_v6 = vpop.eup %3741 }
 0x431   :  { %3627 = vmatprep.subr.bf16.mxu0 %v3978_v0  ;;  %v2383_v21 = vmul.f32 %v3742_v6, %v4665_v31 }
 0x432   :  { %v2390_v18 = vpack.c.bf16 %v2382_v2, %v2382_v2 }
 0x433   :  { %v3744_v8 = vpop.eup %3743  ;;  %v2391_v22 = vpack.c.bf16 %v2383_v21, %v2383_v21 }
 0x434   :  { %3612 = vmatmul.mubr.msk.bf16.vlgmr.msra.gmra.mxu1 %vm2296_vm3, %v2389_v34  ;;  %v2384_v4 = vmul.f32 %v3744_v8, %v4675_v14 }
 0x435   :  { %3622 = vmatpush3.bf16.msra.mxu1 %v4644_v48  ;;  %3623 = vmatprep.mubr.msk.bf16.mxu1 %vm3979_vm0, %v3978_v0 }
 0x436   :  { %3633 = vmatprep.subr.bf16.mxu1 %v3978_v0  ;;  %v2392_v48 = vpack.c.bf16 %v2384_v4, %v2384_v4 }
 0x437   :  { %3618 = vmatmul.mubr.msk.bf16.vlgmr.msra.gmra.mxu0 %vm2296_vm3, %v2390_v18 }
 0x438   :  { %3628 = vmatpush3.bf16.msra.mxu0 %v2400_v7  ;;  %3629 = vmatprep.mubr.msk.bf16.mxu0 %vm3979_vm0, %v3978_v0 }
 0x439   :  { %3641 = vmatprep.subr.bf16.mxu0 %v3978_v0 }
 0x43c   :  { %3624 = vmatmul.mubr.msk.bf16.vlgmr.msra.gmra.mxu1 %vm2296_vm3, %v2391_v22 }
 0x43d   :  { %3637 = vmatprep.mubr.msk.bf16.mxu1 %vm3979_vm0, %v3978_v0 }
 0x43f   :  { %3630 = vmatmul.mubr.msk.bf16.vlgmr.msra.gmra.mxu0 %vm2296_vm3, %v2392_v48 }
 0x440   :  { %3645 = vmatprep.mubr.msk.bf16.mxu0 %vm3979_vm0, %v3978_v0 }
 0x4bb   :  { %v2438_v31 = vpop.f32.mrf.mxu1 }
 0x4bd   :  { %v3589_v27 = vpop.f32.mrf.mxu1 }
 0x4bf   :  { %v2441_v32 = vpop.f32.mrf.mxu1 }
 0x4c1   :  { %v3590_v33 = vpop.f32.mrf.mxu1 }
 0x4c3   :  { %v2481_v62 = vpop.f32.mrf.mxu0 }
 0x4c5   :  { %v3595_v14 = vpop.f32.mrf.mxu0 }
 0x4c7   :  { %v2484_v23 = vpop.f32.mrf.mxu0 }
 0x4c9   :  { %v3596_v28 = vpop.f32.mrf.mxu0 }
 0x4ec   :  { %v2524_v29 = vpop.f32.mrf.mxu1 }
 0x4ee   :  { %v3601_v56 = vpop.f32.mrf.mxu1 }
 0x4ef   :  { %v2567_v41 = vpop.f32.mrf.mxu0 }
 0x4f0   :  { %v2527_v40 = vpop.f32.mrf.mxu1 }
 0x4f1   :  { %v3607_v37 = vpop.f32.mrf.mxu0 }
 0x4f2   :  { %v3602_v30 = vpop.f32.mrf.mxu1 }
 0x4f3   :  { %v2570_v36 = vpop.f32.mrf.mxu0 }
 0x4f4   :  { %v2610_v38 = vpop.f32.mrf.mxu1 }
 0x4f5   :  { %v3608_v43 = vpop.f32.mrf.mxu0  ;;  %v2745_v47 = vcombine.low %v2438_v31, %v2610_v38  ;;  %v2746_v44 = vcombine.high %v2438_v31, %v2610_v38 }
 0x4f6   :  { %v3613_v60 = vpop.f32.mrf.mxu1 }
 0x4f7   :  { %v2653_v42 = vpop.f32.mrf.mxu0  ;;  %v2753_v1 = vrot.slane %v2745_v47, %v4268_v13  ;;  %v2760_v63 = vrot.slane %v2746_v44, %v4268_v13 }
 0x4f8   :  { %v2613_v46 = vpop.f32.mrf.mxu1  ;;  %v2813_v52 = vcombine.low %v2481_v62, %v2653_v42  ;;  %v2814_v5 = vcombine.high %v2481_v62, %v2653_v42 }
 0x4f9   :  { %v3619_v59 = vpop.f32.mrf.mxu0 }
 0x4fa   :  { %v3614_v61 = vpop.f32.mrf.mxu1  ;;  %v2821_v16 = vrot.slane %v2813_v52, %v4268_v13  ;;  %v2828_v10 = vrot.slane %v2814_v5, %v4268_v13 }
 0x4fb   :  { %v2656_v49 = vpop.f32.mrf.mxu0  ;;  %v3705_v61 = vld [vmem:[#allocation14 + $0x8] sm:$0xff]  }
 0x4fc   :  { %v2696_v39 = vpop.f32.mrf.mxu1  ;;  %3634 = vmatpush3.bf16.msra.mxu1 %v3705_v61 }
 0x4fd   :  { %v3620_v45 = vpop.f32.mrf.mxu0  ;;  %v2761_v54 = vcombine.low %v2524_v29, %v2696_v39  ;;  %v2762_v55 = vcombine.high %v2524_v29, %v2696_v39  ;;  %3635 = vmatprep.subr.bf16.mxu1 %v3978_v0 }
 0x4fe   :  { %v3625_v51 = vpop.f32.mrf.mxu1 }
 0x4ff   :  { %v2769_v7 = vrot.slane %v2761_v54, %v4268_v13  ;;  %v2776_v50 = vrot.slane %v2762_v55, %v4268_v13  ;;  %v2739_v11 = vpop.f32.mrf.mxu0 }
 0x500   :  { %v2829_v24 = vcombine.low %v2567_v41, %v2739_v11  ;;  %v2830_v57 = vcombine.high %v2567_v41, %v2739_v11  ;;  %v2699_v53 = vpop.f32.mrf.mxu1 }
 0x501   :  { %v2777_v3 = vcombine.low %v2753_v1, %v2769_v7  ;;  %v2778_v35 = vcombine.high %v2753_v1, %v2769_v7  ;;  %v2793_v19 = vcombine.low %v2760_v63, %v2776_v50  ;;  %v2794_v25 = vcombine.high %v2760_v63, %v2776_v50  ;;  %v3631_v26 = vpop.f32.mrf.mxu0 }
 0x502   :  { %v2837_v15 = vrot.slane %v2829_v24, %v4268_v13  ;;  %v2844_v17 = vrot.slane %v2830_v57, %v4268_v13  ;;  %v3626_v58 = vpop.f32.mrf.mxu1 }
 0x503   :  { %v2785_v2 = vrot.slane %v2777_v3, %v4274_v20  ;;  %v2792_v34 = vrot.slane %v2778_v35, %v4274_v20  ;;  %v2801_v6 = vrot.slane %v2793_v19, %v4274_v20  ;;  %v2808_v18 = vrot.slane %v2794_v25, %v4274_v20  ;;  %v2742_v8 = vpop.f32.mrf.mxu0  ;;  %v3706_v3 = vld [vmem:[#allocation14] sm:$0xff]  }
 0x504   :  { %v2845_v21 = vcombine.low %v2821_v16, %v2837_v15  ;;  %v2846_v4 = vcombine.high %v2821_v16, %v2837_v15  ;;  %v2861_v22 = vcombine.low %v2828_v10, %v2844_v17  ;;  %v2862_v48 = vcombine.high %v2828_v10, %v2844_v17  ;;  %3636 = vmatpush3.bf16.msra.mxu1 %v3706_v3 }
 0x505   :  { %v2881_v31 = vcombine.low %v2785_v2, %v2792_v34  ;;  %v3437_v27 = vcombine.high %v2785_v2, %v2792_v34  ;;  %v2897_v32 = vcombine.low %v2801_v6, %v2808_v18  ;;  %v3438_v33 = vcombine.high %v2801_v6, %v2808_v18  ;;  %v3632_v62 = vpop.f32.mrf.mxu0  ;;  %3649 = vmatprep.subr.bf16.mxu1 %v3978_v0 }
 0x506   :  { %v2853_v14 = vrot.slane %v2845_v21, %v4274_v20  ;;  %v2860_v23 = vrot.slane %v2846_v4, %v4274_v20  ;;  %v2869_v28 = vrot.slane %v2861_v22, %v4274_v20  ;;  %v2876_v29 = vrot.slane %v2862_v48, %v4274_v20 }
 0x507   :  { %v2888_v56 = vrot.slane %v2881_v31, %v4268_v13  ;;  %v2896_v41 = vrot.slane %v3437_v27, %v4268_v13  ;;  %v2904_v40 = vrot.slane %v2897_v32, %v4268_v13  ;;  %v2912_v37 = vrot.slane %v3438_v33, %v4268_v13 }
 0x508   :  { %v2949_v30 = vcombine.low %v2853_v14, %v2860_v23  ;;  %v3439_v36 = vcombine.high %v2853_v14, %v2860_v23  ;;  %v2965_v38 = vcombine.low %v2869_v28, %v2876_v29  ;;  %v3440_v43 = vcombine.high %v2869_v28, %v2876_v29  ;;  %v3441_v14 = vld [vmem:[%s4875_s12] ss:$0 sm:$0xff] }
 0x509   :  { %v2914_v60 = vcombine.high %v2888_v56, %v2896_v41  ;;  %v2930_v42 = vcombine.high %v2904_v40, %v2912_v37  ;;  %v2913_v46 = vcombine.low %v2888_v56, %v2896_v41  ;;  %v2929_v59 = vcombine.low %v2904_v40, %v2912_v37 }
 0x50a   :  { %v2956_v47 = vrot.slane %v2949_v30, %v4268_v13  ;;  %v2964_v44 = vrot.slane %v3439_v36, %v4268_v13  ;;  %v2972_v49 = vrot.slane %v2965_v38, %v4268_v13  ;;  %v2980_v39 = vrot.slane %v3440_v43, %v4268_v13 }
 0x50b   :  { %v2928_v45 = vrot.slane %v2914_v60, %v4274_v20  ;;  %v2944_v54 = vrot.slane %v2930_v42, %v4274_v20  ;;  %v2921_v55 = vrot.slane %v2913_v46, %v4274_v20  ;;  %v2937_v52 = vrot.slane %v2929_v59, %v4274_v20 }
 0x50c   :  { %v2982_v5 = vcombine.high %v2956_v47, %v2964_v44  ;;  %v2998_v51 = vcombine.high %v2972_v49, %v2980_v39  ;;  %v2981_v1 = vcombine.low %v2956_v47, %v2964_v44  ;;  %v2997_v63 = vcombine.low %v2972_v49, %v2980_v39  ;;  %v3707_v39 = vld [vmem:[#allocation16 + $0x8] sm:$0xff]  }
 0x50d   :  { %v2947_v7 = vcombine.low %v2928_v45, %v2944_v54  ;;  %v2946_v50 = vcombine.high %v2921_v55, %v2937_v52  ;;  %v2945_v11 = vcombine.low %v2921_v55, %v2937_v52  ;;  %v2948_v10 = vcombine.high %v2928_v45, %v2944_v54  ;;  %3642 = vmatpush3.bf16.msra.mxu0 %v3707_v39  ;;  %v3709_v45 = vld [vmem:[%s4880_s17 + $0x18] sm:$0xff]  }
 0x50e   :  { %v2996_v13 = vrot.slane %v2982_v5, %v4274_v20  ;;  %v3012_v24 = vrot.slane %v2998_v51, %v4274_v20  ;;  %v2989_v57 = vrot.slane %v2981_v1, %v4274_v20  ;;  %v3005_v53 = vrot.slane %v2997_v63, %v4274_v20  ;;  %3643 = vmatprep.subr.bf16.mxu0 %v3978_v0 }
 0x510   :  { %v3015_v35 = vcombine.low %v2996_v13, %v3012_v24  ;;  %v3013_v19 = vcombine.low %v2989_v57, %v3005_v53  ;;  %v3014_v25 = vcombine.high %v2989_v57, %v3005_v53  ;;  %v3016_v15 = vcombine.high %v2996_v13, %v3012_v24  ;;  %v3446_v57 = vld [vmem:[%s4877_s14] ss:$0 sm:$0xff] }
 0x512   :  { %v3689_v26 = vpack.i.bf16 %v3015_v35, %v2947_v7  ;;  %v3684_v16 = vpack.i.bf16 %v3014_v25, %v2946_v50  ;;  %v3694_v17 = vpack.i.bf16 %v3016_v15, %v2948_v10  ;;  %v3445_v50 = vld [vmem:[%s4876_s13] ss:$0 sm:$0xff]  ;;  %v3710_v25 = vld [vmem:[%s4880_s17 + $0x10] sm:$0xff]  }
 0x513   :  { %v3447_v10 = vld [vmem:[%s4879_s16] ss:$0 sm:$0xff] }
 0x514   :  { %3690 = vrot.lane.b32.xlu0 %v3689_v26, %s3985_s10  ;;  %3685 = vrot.lane.b32.xlu1 %v3684_v16, %s3968_s29  ;;  %v3711_v26 = vld [vmem:[%s4880_s17 + $0x8] sm:$0xff]   ;;  %v3712_v16 = vld [vmem:[%s4880_s17] sm:$0xff]   ;;  %s3933_s10 = scalar_lea.vmem %s3372_s23, 256 }
 0x515   :  { %p3934_p3 = scmp.ne.s32.totalorder %s3372_s23, %s3933_s10  ;;  %p3939_p5 = scmp.lt.s32.totalorder %s3933_s10, %s3933_s10 }
 0x517   :  { %p3940_p6 = por %p3939_p5, %p3938_p4 }
 0x518   :  { %3695 = vrot.lane.b32.xlu1 %v3694_v17, %s3986_s7 }
 0x519   :  { %p3941_p7 = pnand %p3940_p6, %p3934_p3 }
 0x586   :  { %v3691_v58 = vpop.permute.xlu0 %3690  ;;  %v3686_v20 = vpop.permute.xlu1 %3685 }
 0x587   :  { %v3688_v2 = vunpack.i.h.bf16 %v3686_v20  ;;  %v3687_v34 = vunpack.i.l.bf16 %v3686_v20  ;;  %v3693_v6 = vunpack.i.h.bf16 %v3691_v58  ;;  %v3692_v18 = vunpack.i.l.bf16 %v3691_v58 }
 0x589   :  { %v3042_v8 = vsel %vm1919_vm2, %v3013_v19, %v3688_v2  ;;  %v3041_v21 = vsel %vm1919_vm2, %v2945_v11, %v3687_v34 }
 0x58a   :  { %v3696_v4 = vpop.permute.xlu1 %3695  ;;  %v3043_v31 = vsel %vm2296_vm3, %v3041_v21, %v3692_v18  ;;  %v3044_v27 = vsel %vm2296_vm3, %v3042_v8, %v3693_v6 }
 0x58b   :  { %v3698_v22 = vunpack.i.h.bf16 %v3696_v4  ;;  %v3697_v48 = vunpack.i.l.bf16 %v3696_v4 }
 0x58d   :  { %v3046_v32 = vsel %vm3045_vm4, %v3043_v31, %v3697_v48  ;;  %v3047_v33 = vsel %vm3045_vm4, %v3044_v27, %v3698_v22 }
 0x58e   :  { %v3048_v62 = vpack.c.bf16 %v3047_v33, %v3046_v32 }
 0x590   :  { %3638 = vmatmul.mubr.msk.bf16.vlgmr.msra.gmra.mxu1 %vm238_vm1, %v3048_v62 }
 0x591   :  { %3657 = vmatprep.mubr.msk.bf16.mxu1 %vm3979_vm0, %v3978_v0  ;;  %3650 = vmatpush3.bf16.msra.mxu1 %v3709_v45 }
 0x592   :  { %3651 = vmatprep.subr.bf16.mxu1 %v3978_v0 }
 0x595   :  { %3652 = vmatpush3.bf16.msra.mxu1 %v3710_v25 }
 0x596   :  { %3653 = vmatprep.subr.bf16.mxu1 %v3978_v0 }
 0x599   :  { %3654 = vmatpush3.bf16.msra.mxu1 %v3711_v26 }
 0x59a   :  { %3655 = vmatprep.subr.bf16.mxu1 %v3978_v0  ;;  %v3451_v0 = vld [vmem:[%s4881_s18] ss:$0 sm:$0xff] }
 0x59d   :  { %3656 = vmatpush3.bf16.msra.mxu1 %v3712_v16 }
 0x650   :  { %v3109_v23 = vpop.f32.mrf.mxu1 }
 0x651   :  { %v3110_v28 = vadd.f32 %v3441_v14, %v3109_v23 }
 0x652   :  { %v3639_v29 = vpop.f32.mrf.mxu1 }
 0x653   :  { %v3116_v56 = vadd.f32 %v3110_v28, %v4156_v9 }
 0x654   :  { %v3112_v41 = vpop.f32.mrf.mxu1 }
 0x655   :  { %v3113_v40 = vadd.f32 %v3441_v14, %v3112_v41  ;;  %v3120_v37 = vsel %vm238_vm1, %v3116_v56, 0.0 }
 0x656   :  { %3121 = vadd.xlane.f32.xlu1 %v3120_v37  ;;  %v3640_v30 = vpop.f32.mrf.mxu1 }
 0x657   :  { %v3117_v36 = vadd.f32 %v3113_v40, %v4164_v12  ;;  %v3708_v12 = vld [vmem:[#allocation16] sm:$0xff]  }
 0x658   :  { %3644 = vmatpush3.bf16.msra.mxu0 %v3708_v12 }
 0x659   :  { %v3123_v38 = vsel %vm238_vm1, %v3117_v36, 0.0 }
 0x65a   :  { %3124 = vadd.xlane.f32.xlu0 %v3123_v38 }
 0x6df   :  { %v3122_v43 = vpop.xlane.xlu1 %3121 }
 0x6e0   :  { %v3127_v60 = vmul.f32 0.03125, %v3122_v43 }
 0x6e2   :  { %v3129_v42 = vsub.f32 %v3116_v56, %v3127_v60 }
 0x6e3   :  { %v3125_v46 = vpop.xlane.xlu0 %3124 }
 0x6e4   :  { %v3128_v59 = vmul.f32 0.03125, %v3125_v46  ;;  %v3131_v61 = vmul.f32 %v3129_v42, %v3129_v42 }
 0x6e6   :  { %v3130_v47 = vsub.f32 %v3117_v36, %v3128_v59  ;;  %v3133_v9 = vsel %vm238_vm1, %v3131_v61, 0.0 }
 0x6e7   :  { %3134 = vadd.xlane.f32.xlu0 %v3133_v9  ;;  %v3457_v9 = vld [vmem:[%s4882_s19] ss:$0 sm:$0xff] }
 0x6e8   :  { %v3132_v44 = vmul.f32 %v3130_v47, %v3130_v47 }
 0x6ea   :  { %v3136_v49 = vsel %vm238_vm1, %v3132_v44, 0.0 }
 0x6eb   :  { %3137 = vadd.xlane.f32.xlu1 %v3136_v49  ;;  %v3458_v49 = vld [vmem:[%s4883_s20] ss:$0 sm:$0xff] }
 0x770   :  { %v3135_v54 = vpop.xlane.xlu0 %3134 }
 0x771   :  { %v3139_v55 = vmul.f32 0.03125, %v3135_v54 }
 0x773   :  { %v3141_v52 = vadd.f32 1e-05, %v3139_v55 }
 0x774   :  { %v3138_v5 = vpop.xlane.xlu1 %3137 }
 0x775   :  { %3745 = vrsqrt.f32 %v3141_v52  ;;  %v3140_v51 = vmul.f32 0.03125, %v3138_v5 }
 0x777   :  { %v3142_v1 = vadd.f32 1e-05, %v3140_v51 }
 0x779   :  { %3747 = vrsqrt.f32 %v3142_v1 }
 0x782   :  { %v3746_v63 = vpop.eup %3745 }
 0x783   :  { %v3145_v7 = vmul.f32 %v3746_v63, %v3129_v42 }
 0x785   :  { %v3153_v24 = vmul.f32 %v3445_v50, %v3145_v7 }
 0x786   :  { %v3748_v11 = vpop.eup %3747 }
 0x787   :  { %v3146_v13 = vmul.f32 %v3748_v11, %v3130_v47  ;;  %v3161_v3 = vadd.f32 %v3446_v57, %v3153_v24 }
 0x789   :  { %v3154_v53 = vmul.f32 %v3445_v50, %v3146_v13 }
 0x78b   :  { %v3162_v35 = vadd.f32 %v3446_v57, %v3154_v53 }
 0x78d   :  { %v3163_v19 = vpack.c.bf16 %v3162_v35, %v3161_v3 }
 0x78f   :  { %3646 = vmatmul.mubr.msk.bf16.vlgmr.msra.gmra.mxu0 %vm238_vm1, %v3163_v19 }
 0x84f   :  { %v3224_v15 = vpop.f32.mrf.mxu0 }
 0x850   :  { %v3225_v58 = vadd.f32 %v3447_v10, %v3224_v15 }
 0x851   :  { %v3647_v17 = vpop.f32.mrf.mxu0 }
 0x852   :  { %v3231_v6 = vmax.f32 %v3225_v58, 0.0 }
 0x853   :  { %v3227_v20 = vpop.f32.mrf.mxu0 }
 0x854   :  { %v3228_v2 = vadd.f32 %v3447_v10, %v3227_v20 }
 0x855   :  { %v3648_v34 = vpop.f32.mrf.mxu0 }
 0x856   :  { %v3232_v18 = vmax.f32 %v3228_v2, 0.0 }
 0x858   :  { %v3233_v8 = vpack.c.bf16 %v3232_v18, %v3231_v6 }
 0x85a   :  { %3658 = vmatmul.mubr.msk.bf16.vlgmr.msra.gmra.mxu1 %vm3273_vm5, %v3233_v8 }
 0x91a   :  { %v3311_v21 = vpop.f32.mrf.mxu1 }
 0x91b   :  { %v3312_v4 = vadd.f32 %v3451_v0, %v3311_v21 }
 0x91c   :  { %v3659_v22 = vpop.f32.mrf.mxu1 }
 0x91d   :  { %v3318_v48 = vadd.f32 %v3312_v4, %v3161_v3 }
 0x91e   :  { %v3314_v31 = vpop.f32.mrf.mxu1 }
 0x91f   :  { %v3315_v27 = vadd.f32 %v3451_v0, %v3314_v31  ;;  %v3322_v32 = vsel %vm238_vm1, %v3318_v48, 0.0 }
 0x920   :  { %3323 = vadd.xlane.f32.xlu0 %v3322_v32  ;;  %v3660_v33 = vpop.f32.mrf.mxu1 }
 0x921   :  { %v3319_v62 = vadd.f32 %v3315_v27, %v3162_v35 }
 0x923   :  { %v3325_v14 = vsel %vm238_vm1, %v3319_v62, 0.0 }
 0x924   :  { %3326 = vadd.xlane.f32.xlu1 %v3325_v14 }
 0x9a9   :  { %v3324_v23 = vpop.xlane.xlu0 %3323 }
 0x9aa   :  { %v3328_v28 = vmul.f32 0.03125, %v3324_v23 }
 0x9ac   :  { %v3330_v29 = vsub.f32 %v3318_v48, %v3328_v28 }
 0x9ad   :  { %v3327_v56 = vpop.xlane.xlu1 %3326 }
 0x9ae   :  { %v3329_v41 = vmul.f32 0.03125, %v3327_v56  ;;  %v3332_v40 = vmul.f32 %v3330_v29, %v3330_v29 }
 0x9b0   :  { %v3331_v37 = vsub.f32 %v3319_v62, %v3329_v41  ;;  %v3334_v30 = vsel %vm238_vm1, %v3332_v40, 0.0 }
 0x9b1   :  { %3335 = vadd.xlane.f32.xlu0 %v3334_v30 }
 0x9b2   :  { %v3333_v36 = vmul.f32 %v3331_v37, %v3331_v37 }
 0x9b4   :  { %v3337_v38 = vsel %vm238_vm1, %v3333_v36, 0.0 }
 0x9b5   :  { %3338 = vadd.xlane.f32.xlu1 %v3337_v38 }
 0xa3a   :  { %v3336_v43 = vpop.xlane.xlu0 %3335 }
 0xa3b   :  { %v3340_v60 = vmul.f32 0.03125, %v3336_v43 }
 0xa3d   :  { %v3342_v42 = vadd.f32 1e-05, %v3340_v60 }
 0xa3e   :  { %v3339_v46 = vpop.xlane.xlu1 %3338 }
 0xa3f   :  { %3749 = vrsqrt.f32 %v3342_v42  ;;  %v3341_v59 = vmul.f32 0.03125, %v3339_v46 }
 0xa41   :  { %v3343_v61 = vadd.f32 1e-05, %v3341_v59 }
 0xa43   :  { %3751 = vrsqrt.f32 %v3343_v61 }
 0xa4c   :  { %v3750_v47 = vpop.eup %3749 }
 0xa4d   :  { %v3346_v44 = vmul.f32 %v3750_v47, %v3330_v29 }
 0xa4f   :  { %v3354_v39 = vmul.f32 %v3457_v9, %v3346_v44 }
 0xa50   :  { %v3752_v12 = vpop.eup %3751 }
 0xa51   :  { %v3347_v45 = vmul.f32 %v3752_v12, %v3331_v37  ;;  %v3362_v54 = vadd.f32 %v3458_v49, %v3354_v39 }
 0xa53   :  { %v3355_v55 = vmul.f32 %v3457_v9, %v3347_v45  ;;  %3364 = vst.msk [vmem:[#allocation17] sm:$0xff] %vm238_vm1, %v3362_v54 }
 0xa55   :  { %v3363_v52 = vadd.f32 %v3458_v49, %v3355_v55 }
 0xa57   :  { %3365 = vst.msk [vmem:[#allocation17 + $0x8] sm:$0xff] %vm238_vm1, %v3363_v52 }
 0xa58   :  { %3944 = shalt.err (!%p3941_p7)
}
 0xa59   :  { %3377 = dma.vmem_to_hbm [thread:$0]  %s3372_s23, 256, %s4884_s21, [#allocation4], %s3967_s28, %s3967_s28, %s3968_s29  }
 0xa5a   :  { %3963 = dma.done.wait [#allocation4], 256  }
 0xa5b   :  { %3964 = vsyncadd [#allocation4], 4294967040 }
 0xa5c   :  { %3381 = vsyncpa [#allocation3], 1 }
 0xa5d   :  { %3382 = vsyncpa [#allocation6], 1 }
 0xa5e   :  { %3383 = vsyncpa [#allocation9], 1 }
 0xa5f   :  { %3384 = vsyncpa [#allocation12], 1 }
 0xa60   :  { %3385 = vsyncpa [#allocation15], 1 }
 0xa61   :  { %3386 = vsyncpa [#allocation4], 1 }

// kernel: tpu_custom_call.1
= control target key start
LH: loop header
LB: loop body
LE: loop exit
PB: predicated region body
PF: predicated region fallthrough
CT: control target
= control target key end

     0   :  { %s2815_s0 = inlined_call_operand.vmem [shape: f32[2,8,32], index: 0, kind: input, shape index: {}]   ;;  %s2816_s1 = inlined_call_operand.vmem [shape: f32[2,16,32], index: 1, kind: input, shape index: {}]   ;;  %s2817_s2 = inlined_call_operand.hbm [shape: f32[2,16,32], index: 2, kind: input, shape index: {}]   ;;  %s2818_s3 = inlined_call_operand.hbm [shape: f32[2,8,32], index: 3, kind: input, shape index: {}]   ;;  %s2819_s4 = inlined_call_operand.hbm [shape: f32[2,16,32], index: 4, kind: input, shape index: {}]   ;;  %s2820_s5 = inlined_call_operand.hbm [shape: bf16[32,32], index: 5, kind: input, shape index: {}]   ;;  %s2821_s6 = inlined_call_operand.hbm [shape: f32[1,32], index: 6, kind: input, shape index: {}]   ;;  %s2822_s7 = inlined_call_operand.hbm [shape: bf16[32,32], index: 7, kind: input, shape index: {}]   ;;  %s2823_s8 = inlined_call_operand.hbm [shape: f32[1,32], index: 8, kind: input, shape index: {}]   ;;  %s2824_s9 = inlined_call_operand.vmem [shape: bf16[32,32], index: 9, kind: input, shape index: {}]   ;;  %s2825_s10 = inlined_call_operand.vmem [shape: f32[1,32], index: 10, kind: input, shape index: {}]   ;;  %s2826_s11 = inlined_call_operand.hbm [shape: bf16[32,32], index: 11, kind: input, shape index: {}]   ;;  %s2827_s12 = inlined_call_operand.vmem [shape: f32[1,32], index: 12, kind: input, shape index: {}]   ;;  %s2828_s13 = inlined_call_operand.vmem [shape: f32[1,32], index: 13, kind: input, shape index: {}]   ;;  %s2829_s14 = inlined_call_operand.vmem [shape: f32[1,32], index: 14, kind: input, shape index: {}]   ;;  %s2830_s15 = inlined_call_operand.hbm [shape: bf16[32,64], index: 15, kind: input, shape index: {}]   ;;  %s2831_s16 = inlined_call_operand.vmem [shape: f32[1,64], index: 16, kind: input, shape index: {}]   ;;  %s2832_s17 = inlined_call_operand.vmem [shape: bf16[64,32], index: 17, kind: input, shape index: {}]   ;;  %s2833_s18 = inlined_call_operand.vmem [shape: f32[1,32], index: 18, kind: input, shape index: {}]   ;;  %s2834_s19 = inlined_call_operand.vmem [shape: f32[1,32], index: 19, kind: input, shape index: {}]   ;;  %s2835_s20 = inlined_call_operand.vmem [shape: f32[1,32], index: 20, kind: input, shape index: {}]   ;;  %s2836_s21 = inlined_call_operand.hbm [shape: f32[2,8,32], index: 21, kind: output, shape index: {}]  }
   0x1   :  { %2839 = sst [smem:[#allocation24_spill]] %s2815_s0 }
   0x2   :  { %2840 = sst [smem:[#allocation25_spill]] %s2816_s1 }
   0x3   :  { %2841 = sst [smem:[#allocation26_spill]] %s2817_s2 }
   0x4   :  { %2842 = sst [smem:[#allocation27_spill]] %s2818_s3 }
   0x5   :  { %2843 = sst [smem:[#allocation28_spill]] %s2819_s4 }
   0x6   :  { %2844 = sst [smem:[#allocation29_spill]] %s2820_s5 }
   0x7   :  { %26 = vsyncpa [#allocation3], 0 }
   0x8   :  { %27 = vsyncpa [#allocation6], 0 }
   0x9   :  { %28 = vsyncpa [#allocation9], 0 }
   0xa   :  { %29 = vsyncpa [#allocation12], 0 }
   0xb   :  { %30 = vsyncpa [#allocation15], 0 }
   0xc   :  { %31 = vsyncpa [#allocation4], 0  ;;  %s2351_s2 = smov [#allocation5]   ;;  %s2352_s26 = smov [#allocation8]  }
   0xd   :  { %s53_s25 = sshll.u32 %s2351_s2, 4  ;;  %s77_s27 = sshll.u32 %s2352_s26, 4  ;;  %s54_s25 = int_to_ptr.vmem [resolvable:$true] %s53_s25  ;;  %s78_s27 = int_to_ptr.vmem [resolvable:$true] %s77_s27 }
   0xe   :  { %s2147_s3 = scalar_lea.vmem %s54_s25, 256  ;;  %p2152_p1 = scmp.lt.s32.totalorder %s54_s25, %s54_s25 }
   0xf   :  { %p2148_p0 = scmp.ne.s32.totalorder %s54_s25, %s2147_s3  ;;  %p2153_p2 = scmp.lt.s32.totalorder %s2147_s3, %s2147_s3 }
  0x11   :  { %p2154_p3 = por %p2153_p2, %p2152_p1 }
  0x13   :  { %p2155_p4 = pnand %p2154_p3, %p2148_p0 }
  0x15   :  { %2158 = shalt.err (!%p2155_p4)
}
  0x16   :  { %s2353_s28 = smov 128   ;;  %s2354_s29 = smov 8  }
  0x17   :  { %s2845_s30 = sld [smem:[#allocation27_spill]]  ;;  %s2167_s5 = scalar_lea.vmem %s78_s27, 256 }
  0x18   :  { %p2168_p5 = scmp.ne.s32.totalorder %s78_s27, %s2167_s5  ;;  %p2172_p6 = scmp.lt.s32.totalorder %s78_s27, %s78_s27 }
  0x19   :  { %p2173_p7 = scmp.lt.s32.totalorder %s2167_s5, %s2167_s5 }
  0x1b   :  { %p2174_p8 = por %p2173_p7, %p2172_p6 }
  0x1d   :  { %59 = dma.hbm_to_vmem [thread:$0]  %s2845_s30, 256, %s54_s25, [#allocation6], %s2353_s28, %s2353_s28, %s2354_s29  }
  0x1e   :  { %p2175_p9 = pnand %p2174_p8, %p2168_p5 }
  0x20   :  { %2178 = shalt.err (!%p2175_p9)
}
  0x21   :  { %s2355_s22 = smov 64   ;;  %s2356_s23 = smov 4  }
  0x22   :  { %s2846_s2 = sld [smem:[#allocation29_spill]]  ;;  %s2357_s26 = smov [#allocation11]  }
  0x23   :  { %s99_s3 = sshll.u32 %s2357_s26, 4  ;;  %s2358_s0 = smov [#allocation14]   ;;  %s100_s3 = int_to_ptr.vmem [resolvable:$true] %s99_s3 }
  0x24   :  { %s125_s25 = sshll.u32 %s2358_s0, 4  ;;  %s2187_s4 = scalar_lea.vmem %s100_s3, 256  ;;  %s126_s25 = int_to_ptr.vmem [resolvable:$true] %s125_s25 }
  0x25   :  { %p2188_p10 = scmp.ne.s32.totalorder %s100_s3, %s2187_s4  ;;  %p2192_p11 = scmp.lt.s32.totalorder %s100_s3, %s100_s3 }
  0x26   :  { %p2193_p12 = scmp.lt.s32.totalorder %s2187_s4, %s2187_s4 }
  0x28   :  { %83 = dma.hbm_to_vmem [thread:$0]  %s2846_s2, 256, %s78_s27, [#allocation9], %s2355_s22, %s2355_s22, %s2356_s23  }
  0x29   :  { %p2194_p13 = por %p2193_p12, %p2192_p11 }
  0x2b   :  { %p2195_p0 = pnand %p2194_p13, %p2188_p10 }
  0x2d   :  { %2198 = shalt.err (!%p2195_p0)
}
  0x2e   :  { %105 = dma.hbm_to_vmem [thread:$0]  %s2822_s7, 256, %s100_s3, [#allocation12], %s2355_s22, %s2355_s22, %s2356_s23  }
  0x2f   :  { %s2207_s27 = scalar_lea.vmem %s126_s25, 256  ;;  %p2212_p2 = scmp.lt.s32.totalorder %s126_s25, %s126_s25 }
  0x30   :  { %p2208_p1 = scmp.ne.s32.totalorder %s126_s25, %s2207_s27  ;;  %p2213_p3 = scmp.lt.s32.totalorder %s2207_s27, %s2207_s27 }
  0x32   :  { %p2214_p4 = por %p2213_p3, %p2212_p2 }
  0x34   :  { %p2215_p5 = pnand %p2214_p4, %p2208_p1 }
  0x36   :  { %2218 = shalt.err (!%p2215_p5)
}
  0x37   :  { %131 = dma.hbm_to_vmem [thread:$0]  %s2826_s11, 256, %s126_s25, [#allocation15], %s2355_s22, %s2355_s22, %s2356_s23  }
  0x38   :  { %s2359_s2 = smov [#allocation2]   ;;  %s2360_s0 = smov [#allocation7]  }
  0x39   :  { %s41_s26 = sshll.u32 %s2359_s2, 4  ;;  %s65_s4 = sshll.u32 %s2360_s0, 4  ;;  %s42_s26 = int_to_ptr.vmem [resolvable:$true] %s41_s26  ;;  %s66_s4 = int_to_ptr.vmem [resolvable:$true] %s65_s4 }
  0x3a   :  { %s2227_s7 = scalar_lea.vmem %s42_s26, 512  ;;  %p2232_p7 = scmp.lt.s32.totalorder %s42_s26, %s42_s26 }
  0x3b   :  { %p2228_p6 = scmp.ne.s32.totalorder %s42_s26, %s2227_s7  ;;  %p2233_p8 = scmp.lt.s32.totalorder %s2227_s7, %s2227_s7 }
  0x3d   :  { %p2234_p9 = por %p2233_p8, %p2232_p7 }
  0x3f   :  { %p2235_p10 = pnand %p2234_p9, %p2228_p6 }
  0x41   :  { %2238 = shalt.err (!%p2235_p10)
}
  0x42   :  { %s2847_s5 = sld [smem:[#allocation26_spill]]  ;;  %s2247_s11 = scalar_lea.vmem %s66_s4, 512 }
  0x43   :  { %p2248_p11 = scmp.ne.s32.totalorder %s66_s4, %s2247_s11  ;;  %p2252_p12 = scmp.lt.s32.totalorder %s66_s4, %s66_s4 }
  0x44   :  { %p2253_p13 = scmp.lt.s32.totalorder %s2247_s11, %s2247_s11 }
  0x46   :  { %p2254_p0 = por %p2253_p13, %p2252_p12 }
  0x48   :  { %47 = dma.hbm_to_vmem [thread:$0]  %s2847_s5, 512, %s42_s26, [#allocation3], %s2353_s28, %s2353_s28, %s2354_s29  }
  0x49   :  { %p2255_p1 = pnand %p2254_p0, %p2248_p11 }
  0x4b   :  { %2258 = shalt.err (!%p2255_p1)
}
  0x4c   :  { %s2848_s1 = sld [smem:[#allocation28_spill]]  ;;  %s2361_s24 = smov [#allocation10]  }
  0x4d   :  { %s90_s2 = sshll.u32 %s2361_s24, 4  ;;  %s2362_s0 = smov [#allocation13]   ;;  %s91_s2 = int_to_ptr.vmem [resolvable:$true] %s90_s2 }
  0x4e   :  { %s112_s7 = sshll.u32 %s2362_s0, 4  ;;  %s2267_s26 = scalar_lea.vmem %s91_s2, 16  ;;  %s113_s7 = int_to_ptr.vmem [resolvable:$true] %s112_s7 }
  0x4f   :  { %p2268_p2 = scmp.ne.s32.totalorder %s91_s2, %s2267_s26  ;;  %s2271_s3 = scalar_lea.vmem %s91_s2, 32 }
  0x50   :  { %p2272_p3 = scmp.lt.s32.totalorder %s91_s2, %s91_s2  ;;  %p2273_p4 = scmp.lt.s32.totalorder %s2271_s3, %s2267_s26 }
  0x52   :  { %71 = dma.hbm_to_vmem [thread:$0]  %s2848_s1, 512, %s66_s4, [#allocation6], %s2353_s28, %s2353_s28, %s2354_s29  }
  0x53   :  { %p2274_p5 = por %p2273_p4, %p2272_p3 }
  0x55   :  { %p2275_p6 = pnand %p2274_p5, %p2268_p2 }
  0x57   :  { %2278 = shalt.err (!%p2275_p6)
}
  0x58   :  { %93 = dma.hbm_to_vmem [thread:$0]  %s2821_s6, 16, %s91_s2, [#allocation9]  }
  0x59   :  { %s2287_s11 = scalar_lea.vmem %s113_s7, 16  ;;  %s2291_s4 = scalar_lea.vmem %s113_s7, 32 }
  0x5a   :  { %p2288_p7 = scmp.ne.s32.totalorder %s113_s7, %s2287_s11  ;;  %p2292_p8 = scmp.lt.s32.totalorder %s113_s7, %s113_s7 }
  0x5b   :  { %p2293_p9 = scmp.lt.s32.totalorder %s2291_s4, %s2287_s11 }
  0x5d   :  { %p2294_p10 = por %p2293_p9, %p2292_p8 }
  0x5f   :  { %p2295_p11 = pnand %p2294_p10, %p2288_p7 }
  0x61   :  { %2298 = shalt.err (!%p2295_p11)
}
  0x62   :  { %115 = dma.hbm_to_vmem [thread:$0]  %s2823_s8, 16, %s113_s7, [#allocation12]  }
  0x63   :  { %s2363_s1 = smov [#allocation16]  }
  0x64   :  { %s143_s24 = sshll.u32 %s2363_s1, 4  ;;  %s144_s24 = int_to_ptr.vmem [resolvable:$true] %s143_s24 }
  0x65   :  { %s2307_s0 = scalar_lea.vmem %s144_s24, 256  ;;  %p2312_p13 = scmp.lt.s32.totalorder %s144_s24, %s144_s24 }
  0x66   :  { %p2308_p12 = scmp.ne.s32.totalorder %s144_s24, %s2307_s0  ;;  %p2313_p0 = scmp.lt.s32.totalorder %s2307_s0, %s2307_s0 }
  0x68   :  { %p2314_p1 = por %p2313_p0, %p2312_p13 }
  0x6a   :  { %p2315_p2 = pnand %p2314_p1, %p2308_p12 }
  0x6c   :  { %2318 = shalt.err (!%p2315_p2)
}
  0x6d   :  { %149 = dma.hbm_to_vmem [thread:$0]  %s2830_s15, 256, %s144_s24, [#allocation15], %s2355_s22, %s2355_s22, %s2356_s23  }
  0x6e   :  { %2339 = dma.done.wait [#allocation3], 512  }
  0x6f   :  { %2340 = vsyncadd [#allocation3], 4294966784 }
  0x70   :  { %2341 = dma.done.wait [#allocation6], 768  }
  0x71   :  { %2342 = vsyncadd [#allocation6], 4294966528 }
  0x72   :  { %2343 = dma.done.wait [#allocation9], 272  }
  0x73   :  { %2344 = vsyncadd [#allocation9], 4294967024 }
  0x74   :  { %2345 = dma.done.wait [#allocation12], 272  }
  0x75   :  { %2346 = vsyncadd [#allocation12], 4294967024 }
  0x76   :  { %2347 = dma.done.wait [#allocation15], 512  }
  0x77   :  { %2348 = vsyncadd [#allocation15], 4294966784  ;;  %v2364_v0 = vmov 0.0   ;;  %vm2365_vm0 = vmmov 0   ;;  %v2087_v1 = vld [vmem:[#allocation8 + $0x8] sm:$0xff]   ;;  %v2088_v2 = vld [vmem:[#allocation8] sm:$0xff]  }
  0x78   :  { %1904 = vmatprep.subr.bf16.mxu1 %v2364_v0  ;;  %1908 = vmatprep.mubr.msk.bf16.mxu1 %vm2365_vm0, %v2364_v0  ;;  %s2849_s22 = sld [smem:[#allocation24_spill]]  ;;  %v198_v5 = vld [vmem:[#allocation5] sm:$0xff]  ;;  %v199_v6 = vld [vmem:[#allocation5 + $0x8] sm:$0xff]  ;;  %vm238_vm1 = vcmask 261120   ;;  %v202_v14 = vld [vmem:[#allocation7] sm:$0xff]  ;;  %vm451_vm2 = vcmask 64512  }
  0x79   :  { %1905 = vmatpush3.bf16.msra.mxu1 %v2087_v1  ;;  %v2089_v9 = vld [vmem:[#allocation11 + $0x8] sm:$0xff]   ;;  %v2090_v10 = vld [vmem:[#allocation11] sm:$0xff]   ;;  %s2850_s30 = sld [smem:[#allocation25_spill]]  ;;  %v203_v15 = vld [vmem:[#allocation7 + $0x8] sm:$0xff]  ;;  %vm546_vm3 = vcmask 130048   ;;  %vm888_vm4 = vcmask 1043456  }
  0x7a   :  { %1906 = vmatprep.subr.bf16.mxu1 %v2364_v0  ;;  %v204_v20 = vld [vmem:[#allocation7 + $0x10] sm:$0xff]  ;;  %v205_v21 = vld [vmem:[#allocation7 + $0x18] sm:$0xff]  ;;  %v196_v32 = vld [vmem:[#allocation2 + $0x10] sm:$0xff]  ;;  %vm1682_vm5 = vcmask 523264   ;;  %s2369_s8 = smov [#allocation17]  }
  0x7b   :  { %v2091_v26 = vld [vmem:[%s2824_s9 + $0x8] sm:$0xff]   ;;  %v2092_v27 = vld [vmem:[%s2824_s9] sm:$0xff]   ;;  %v197_v33 = vld [vmem:[#allocation2 + $0x18] sm:$0xff]  ;;  %v212_v34 = vadd.f32 %v204_v20, %v196_v32  ;;  %s2366_s9 = smov 120   ;;  %s1780_s15 = sshll.u32 %s2369_s8, 4  ;;  %s1781_s15 = int_to_ptr.vmem [resolvable:$true] %s1780_s15 }
  0x7c   :  { %1920 = vmatprep.subr.bf16.mxu0 %v2091_v26  ;;  %v194_v28 = vld [vmem:[#allocation2] sm:$0xff]  ;;  %v195_v29 = vld [vmem:[#allocation2 + $0x8] sm:$0xff]  ;;  %v213_v35 = vadd.f32 %v205_v21, %v197_v33  ;;  %v1800_v43 = vld [vmem:[#allocation13] ss:$0 sm:$0xff]  ;;  %p2324_p4 = scmp.lt.s32.totalorder %s1781_s15, %s1781_s15 }
  0x7d   :  { %1907 = vmatpush3.bf16.msra.mxu1 %v2088_v2  ;;  %1921 = vmatpush3.bf16.msra.mxu0 %v2091_v26  ;;  %v210_v30 = vadd.f32 %v202_v14, %v194_v28  ;;  %v211_v31 = vadd.f32 %v203_v15, %v195_v29  ;;  %v1796_v54 = vld [vmem:[#allocation10] ss:$0 sm:$0xff] }
  0x7e   :  { %v188_v3 = vld [vmem:[%s2849_s22] sm:$0xff]  ;;  %v189_v4 = vld [vmem:[%s2849_s22 + $0x8] sm:$0xff]  ;;  %1912 = vmatprep.subr.bf16.mxu1 %v2089_v9  ;;  %1922 = vmatprep.subr.bf16.mxu0 %v2092_v27  ;;  %v364_v37 = vpack.c.bf16 %v213_v35, %v212_v34  ;;  %s2368_s22 = smov 104  }
  0x7f   :  { %v2538_v7 = vadd.f32 %v198_v5, %v188_v3  ;;  %v2540_v8 = vadd.f32 %v199_v6, %v189_v4  ;;  %v190_v11 = vld [vmem:[%s2850_s30] sm:$0xff]  ;;  %v191_v12 = vld [vmem:[%s2850_s30 + $0x8] sm:$0xff]  ;;  %v192_v16 = vld [vmem:[%s2850_s30 + $0x10] sm:$0xff]  ;;  %v363_v36 = vpack.c.bf16 %v211_v31, %v210_v30 }
  0x80   :  { %v206_v17 = vadd.f32 %v202_v14, %v190_v11  ;;  %v207_v18 = vadd.f32 %v203_v15, %v191_v12  ;;  %v193_v19 = vld [vmem:[%s2850_s30 + $0x18] sm:$0xff]  ;;  %v208_v23 = vadd.f32 %v204_v20, %v192_v16  ;;  %v1805_v61 = vld [vmem:[%s2825_s10] ss:$0 sm:$0xff]  ;;  %s2367_s10 = smov 112  }
  0x81   :  { %v214_v13 = vpack.c.bf16 %v2540_v8, %v2538_v7  ;;  %v209_v24 = vadd.f32 %v205_v21, %v193_v19  ;;  %1923 = vmatpush3.bf16.msra.mxu0 %v2092_v27  ;;  %1924 = vmatprep.mubr.msk.bf16.mxu0 %vm238_vm1, %v363_v36 }
  0x82   :  { %v283_v22 = vpack.c.bf16 %v207_v18, %v206_v17  ;;  %1934 = vmatprep.subr.bf16.mxu0 %v2364_v0 }
  0x83   :  { %1909 = vmatmul.mubr.msk.bf16.vlgmr.msra.gmra.mxu1 %vm238_vm1, %v214_v13  ;;  %v284_v25 = vpack.c.bf16 %v209_v24, %v208_v23 }
  0x84   :  { %1913 = vmatpush3.bf16.msra.mxu1 %v2089_v9  ;;  %1916 = vmatprep.mubr.msk.bf16.mxu1 %vm238_vm1, %v283_v22 }
  0x85   :  { %1914 = vmatprep.subr.bf16.mxu1 %v2090_v10  ;;  %1925 = vmatmul.mubr.msk.bf16.vlgmr.msra.gmra.mxu0 %vm238_vm1, %v364_v37 }
  0x86   :  { %1936 = vmatprep.mubr.msk.bf16.mxu0 %vm2365_vm0, %v2364_v0 }
  0x88   :  { %1915 = vmatpush3.bf16.msra.mxu1 %v2090_v10 }
  0x89   :  { %1928 = vmatprep.subr.bf16.mxu1 %v2364_v0 }
  0x8b   :  { %1917 = vmatmul.mubr.msk.bf16.vlgmr.msra.gmra.mxu1 %vm238_vm1, %v284_v25 }
  0x8c   :  { %1930 = vmatprep.mubr.msk.bf16.mxu1 %vm2365_vm0, %v2364_v0 }
 0x143   :  { %v276_v38 = vpop.f32.mrf.mxu1 }
 0x144   :  { %v277_v57 = vadd.f32 %v1796_v54, %v276_v38 }
 0x145   :  { %v1910_v39 = vpop.f32.mrf.mxu1  ;;  %v1926_v60 = vpop.f32.mrf.mxu0 }
 0x146   :  { %v2587_v59 = vpack.c.bf16 %v277_v57, %v277_v57  ;;  %v437_v63 = vadd.f32 %v1926_v60, %v1805_v61 }
 0x147   :  { %v279_v40 = vpop.f32.mrf.mxu1  ;;  %v428_v62 = vpop.f32.mrf.mxu0 }
 0x148   :  { %v280_v55 = vadd.f32 %v1796_v54, %v279_v40  ;;  %v429_v2 = vadd.f32 %v1805_v61, %v428_v62 }
 0x149   :  { %v1911_v41 = vpop.f32.mrf.mxu1  ;;  %v1927_v1 = vpop.f32.mrf.mxu0 }
 0x14a   :  { %v2585_v58 = vpack.c.bf16 %v280_v55, %v280_v55  ;;  %v440_v3 = vadd.f32 %v1927_v1, %v1805_v61 }
 0x14b   :  { %v1918_v42 = vpop.f32.mrf.mxu1  ;;  %v431_v4 = vpop.f32.mrf.mxu0 }
 0x14c   :  { %v357_v46 = vadd.f32 %v1918_v42, %v1800_v43  ;;  %v2600_v5 = vpack.c.bf16 %v440_v3, %v437_v63  ;;  %v432_v6 = vadd.f32 %v1805_v61, %v431_v4 }
 0x14d   :  { %v348_v44 = vpop.f32.mrf.mxu1 }
 0x14e   :  { %v349_v49 = vadd.f32 %v1800_v43, %v348_v44  ;;  %v2602_v9 = vpack.c.bf16 %v432_v6, %v429_v2 }
 0x14f   :  { %v1919_v45 = vpop.f32.mrf.mxu1 }
 0x150   :  { %v360_v47 = vadd.f32 %v1919_v45, %v1800_v43 }
 0x151   :  { %v351_v48 = vpop.f32.mrf.mxu1 }
 0x152   :  { %v2573_v50 = vpack.c.bf16 %v360_v47, %v357_v46  ;;  %v352_v51 = vadd.f32 %v1800_v43, %v351_v48 }
 0x154   :  { %v2575_v52 = vpack.c.bf16 %v352_v51, %v349_v49  ;;  %716 = vrot.lane.b32.xlu1 %v2573_v50, %s2366_s9  ;;  %v502_v53 = vsel %vm451_vm2, %v2573_v50, 0 }
 0x155   :  { %1935 = vmatpush3.bf16.xpose.msra.mxu0 %v502_v53 }
 0x156   :  { %v456_v56 = vsel %vm451_vm2, %v2575_v52, 0  ;;  %1946 = vmatprep.subr.bf16.mxu0 %v2364_v0 }
 0x157   :  { %1929 = vmatpush3.bf16.xpose.msra.mxu1 %v456_v56 }
 0x158   :  { %1940 = vmatprep.subr.bf16.mxu1 %v2364_v0 }
 0x15c   :  { %1937 = vmatmul.mubr.msk.bf16.vlgmr.msra.gmra.mxu0 %vm451_vm2, %v2585_v58 }
 0x15d   :  { %1948 = vmatprep.mubr.msk.bf16.mxu0 %vm2365_vm0, %v2364_v0  ;;  %1947 = vmatpush3.bf16.msra.mxu0 %v2600_v5 }
 0x15e   :  { %1931 = vmatmul.mubr.msk.bf16.vlgmr.msra.gmra.mxu1 %vm451_vm2, %v2587_v59  ;;  %1958 = vmatprep.subr.bf16.mxu0 %v2364_v0 }
 0x15f   :  { %1942 = vmatprep.mubr.msk.bf16.mxu1 %vm2365_vm0, %v2364_v0  ;;  %1941 = vmatpush3.bf16.msra.mxu1 %v2602_v9 }
 0x160   :  { %1952 = vmatprep.subr.bf16.mxu1 %v2364_v0 }
 0x1c6   :  { %v717_v32 = vpop.permute.xlu1 %716 }
 0x1c7   :  { %v722_v39 = vsel %vm451_vm2, %v717_v32, 0 }
 0x21c   :  { %v538_v10 = vpop.f32.mrf.mxu0 }
 0x21d   :  { %v545_v16 = vmul.f32 0.35355338, %v538_v10 }
 0x21e   :  { %v492_v11 = vpop.f32.mrf.mxu1  ;;  %v1938_v12 = vpop.f32.mrf.mxu0 }
 0x21f   :  { %v544_v13 = vmul.f32 0.35355338, %v492_v11  ;;  %v550_v21 = vsel %vm546_vm3, %v545_v16, -inf }
 0x220   :  { %v1932_v14 = vpop.f32.mrf.mxu1  ;;  %v541_v15 = vpop.f32.mrf.mxu0 }
 0x221   :  { %v547_v17 = vsel %vm546_vm3, %v544_v13, -inf }
 0x222   :  { %v1939_v18 = vpop.f32.mrf.mxu0  ;;  %548 = vmax.xlane.f32.xlu0 %v547_v17  ;;  %v495_v19 = vpop.f32.mrf.mxu1 }
 0x224   :  { %v1933_v20 = vpop.f32.mrf.mxu1 }
 0x226   :  { %551 = vmax.xlane.f32.xlu0 %v550_v21 }
 0x23c   :  { %664 = vrot.lane.b32.xlu0 %v2575_v52, %s2366_s9 }
 0x2ab   :  { %v549_v22 = vpop.xlane.xlu0 %548 }
 0x2ac   :  { %v553_v23 = vsub.f32 %v544_v13, %v549_v22 }
 0x2ae   :  { %v555_v26 = vmul.f32 1.442695, %v553_v23 }
 0x2af   :  { %v552_v24 = vpop.xlane.xlu0 %551 }
 0x2b0   :  { %v554_v25 = vsub.f32 %v545_v16, %v552_v24 }
 0x2b2   :  { %v557_v27 = vmul.f32 1.442695, %v554_v25 }
 0x2b3   :  { %v665_v41 = vpop.permute.xlu0 %664 }
 0x2b4   :  { %2099 = vpow2.f32 %v557_v27  ;;  %v670_v44 = vsel %vm451_vm2, %v665_v41, 0  ;;  %v443_v27 = vld [vmem:[#allocation14] sm:$0xf] }
 0x2b5   :  { %2101 = vpow2.f32 %v555_v26 }
 0x2c1   :  { %v2100_v28 = vpop.eup %2099 }
 0x2c2   :  { %v562_v29 = vsel %vm546_vm3, %v2100_v28, 0.0  ;;  %v2102_v30 = vpop.eup %2101 }
 0x2c3   :  { %563 = vadd.xlane.f32.xlu1 %v562_v29  ;;  %v559_v31 = vsel %vm546_vm3, %v2102_v30, 0.0 }
 0x2c7   :  { %560 = vadd.xlane.f32.xlu1 %v559_v31 }
 0x2d8   :  { %661 = vrot.lane.b32.xlu1 %v2587_v59, %s2366_s9 }
 0x2dc   :  { %713 = vrot.lane.b32.xlu1 %v2585_v58, %s2366_s9 }
 0x34c   :  { %v564_v33 = vpop.xlane.xlu1 %563 }
 0x34d   :  { %2103 = vrcp.f32 %v564_v33 }
 0x350   :  { %v561_v34 = vpop.xlane.xlu1 %560 }
 0x351   :  { %2105 = vrcp.f32 %v561_v34 }
 0x354   :  { %v662_v42 = vpop.permute.xlu1 %661 }
 0x358   :  { %v714_v45 = vpop.permute.xlu1 %713 }
 0x35a   :  { %v2104_v35 = vpop.eup %2103 }
 0x35b   :  { %v568_v36 = vmul.f32 %v2104_v35, %v2100_v28 }
 0x35d   :  { %v570_v37 = vpack.c.bf16 %v568_v36, %v568_v36 }
 0x35e   :  { %v2106_v38 = vpop.eup %2105 }
 0x35f   :  { %1949 = vmatmul.mubr.msk.bf16.vlgmr.msra.gmra.mxu0 %vm546_vm3, %v570_v37  ;;  %v567_v40 = vmul.f32 %v2106_v38, %v2102_v30  ;;  %v937_v30 = vsel %vm888_vm4, %v443_v27, 0  ;;  %v444_v38 = vld [vmem:[#allocation14 + $0x4] sm:$0xf] }
 0x360   :  { %1959 = vmatpush3.bf16.xpose.msra.mxu0 %v722_v39  ;;  %1960 = vmatprep.mubr.msk.bf16.mxu0 %vm2365_vm0, %v2364_v0  ;;  %v890_v39 = vsel %vm888_vm4, %v444_v38, 0 }
 0x361   :  { %v569_v43 = vpack.c.bf16 %v567_v40, %v567_v40  ;;  %1970 = vmatprep.subr.bf16.mxu0 %v2364_v0 }
 0x363   :  { %1943 = vmatmul.mubr.msk.bf16.vlgmr.msra.gmra.mxu1 %vm546_vm3, %v569_v43 }
 0x364   :  { %1953 = vmatpush3.bf16.xpose.msra.mxu1 %v670_v44  ;;  %1954 = vmatprep.mubr.msk.bf16.mxu1 %vm2365_vm0, %v2364_v0 }
 0x365   :  { %1964 = vmatprep.subr.bf16.mxu1 %v2364_v0 }
 0x367   :  { %1961 = vmatmul.mubr.msk.bf16.vlgmr.msra.gmra.mxu0 %vm451_vm2, %v714_v45 }
 0x368   :  { %1972 = vmatprep.mubr.msk.bf16.mxu0 %vm2365_vm0, %v2364_v0 }
 0x36b   :  { %1955 = vmatmul.mubr.msk.bf16.vlgmr.msra.gmra.mxu1 %vm451_vm2, %v662_v42 }
 0x36c   :  { %1966 = vmatprep.mubr.msk.bf16.mxu1 %vm2365_vm0, %v2364_v0 }
 0x41f   :  { %v2634_v46 = vpop.f32.mrf.mxu0 }
 0x421   :  { %v1950_v47 = vpop.f32.mrf.mxu0 }
 0x423   :  { %v2636_v48 = vpop.f32.mrf.mxu1  ;;  %v656_v49 = vpop.f32.mrf.mxu0 }
 0x424   :  { %v659_v51 = vpack.c.bf16 %v2634_v46, %v2636_v48 }
 0x425   :  { %v1944_v53 = vpop.f32.mrf.mxu1  ;;  %v1951_v54 = vpop.f32.mrf.mxu0 }
 0x427   :  { %v613_v55 = vpop.f32.mrf.mxu1  ;;  %v758_v56 = vpop.f32.mrf.mxu0 }
 0x428   :  { %v765_v57 = vmul.f32 0.35355338, %v758_v56 }
 0x429   :  { %v1945_v60 = vpop.f32.mrf.mxu1  ;;  %v1962_v61 = vpop.f32.mrf.mxu0 }
 0x42a   :  { %v769_v62 = vsel %vm546_vm3, %v765_v57, -inf }
 0x42b   :  { %770 = vmax.xlane.f32.xlu1 %v769_v62  ;;  %v706_v63 = vpop.f32.mrf.mxu1  ;;  %v761_v1 = vpop.f32.mrf.mxu0 }
 0x42c   :  { %v764_v2 = vmul.f32 0.35355338, %v706_v63 }
 0x42d   :  { %v1956_v3 = vpop.f32.mrf.mxu1  ;;  %v1963_v4 = vpop.f32.mrf.mxu0 }
 0x42e   :  { %v766_v6 = vsel %vm546_vm3, %v764_v2, -inf }
 0x42f   :  { %767 = vmax.xlane.f32.xlu0 %v766_v6  ;;  %v709_v10 = vpop.f32.mrf.mxu1 }
 0x431   :  { %v1957_v11 = vpop.f32.mrf.mxu1 }
 0x43c   :  { %838 = vrot.lane.b32.xlu1 %v2600_v5, %s2366_s9 }
 0x440   :  { %982 = vrot.lane.b32.xlu1 %v2575_v52, %s2367_s10 }
 0x444   :  { %1032 = vrot.lane.b32.xlu1 %v2573_v50, %s2367_s10 }
 0x448   :  { %1030 = vrot.lane.b32.xlu1 %v2585_v58, %s2367_s10 }
 0x4b4   :  { %v771_v12 = vpop.xlane.xlu1 %770 }
 0x4b5   :  { %v773_v13 = vsub.f32 %v765_v57, %v771_v12 }
 0x4b7   :  { %v776_v14 = vmul.f32 1.442695, %v773_v13 }
 0x4b8   :  { %v839_v15 = vpop.permute.xlu1 %838  ;;  %v768_v16 = vpop.xlane.xlu0 %767 }
 0x4b9   :  { %2107 = vpow2.f32 %v776_v14  ;;  %v772_v17 = vsub.f32 %v764_v2, %v768_v16  ;;  %1971 = vmatpush3.bf16.msra.mxu0 %v839_v15 }
 0x4ba   :  { %1982 = vmatprep.subr.bf16.mxu0 %v2364_v0 }
 0x4bb   :  { %v774_v18 = vmul.f32 1.442695, %v772_v17 }
 0x4bc   :  { %v983_v32 = vpop.permute.xlu1 %982 }
 0x4bd   :  { %2109 = vpow2.f32 %v774_v18  ;;  %v988_v47 = vsel %vm451_vm2, %v983_v32, 0 }
 0x4c0   :  { %v1033_v35 = vpop.permute.xlu1 %1032 }
 0x4c1   :  { %v1038_v36 = vsel %vm451_vm2, %v1033_v35, 0 }
 0x4c4   :  { %v1031_v37 = vpop.permute.xlu1 %1030 }
 0x4c6   :  { %v2108_v19 = vpop.eup %2107 }
 0x4c7   :  { %v781_v20 = vsel %vm546_vm3, %v2108_v19, 0.0 }
 0x4c8   :  { %782 = vadd.xlane.f32.xlu0 %v781_v20 }
 0x4ca   :  { %v2110_v21 = vpop.eup %2109 }
 0x4cb   :  { %v778_v22 = vsel %vm546_vm3, %v2110_v21, 0.0 }
 0x4cc   :  { %779 = vadd.xlane.f32.xlu0 %v778_v22 }
 0x4e2   :  { %791 = vrot.lane.b32.xlu0 %v2602_v9, %s2366_s9 }
 0x4e6   :  { %980 = vrot.lane.b32.xlu0 %v2587_v59, %s2367_s10 }
 0x551   :  { %v783_v23 = vpop.xlane.xlu0 %782 }
 0x552   :  { %2111 = vrcp.f32 %v783_v23 }
 0x555   :  { %v780_v24 = vpop.xlane.xlu0 %779 }
 0x556   :  { %2113 = vrcp.f32 %v780_v24 }
 0x559   :  { %v792_v25 = vpop.permute.xlu0 %791 }
 0x55a   :  { %1965 = vmatpush3.bf16.msra.mxu1 %v792_v25 }
 0x55b   :  { %1976 = vmatprep.subr.bf16.mxu1 %v2364_v0 }
 0x55d   :  { %v981_v55 = vpop.permute.xlu0 %980 }
 0x55f   :  { %v2112_v26 = vpop.eup %2111 }
 0x560   :  { %v787_v28 = vmul.f32 %v2112_v26, %v2108_v19 }
 0x562   :  { %v789_v29 = vpack.c.bf16 %v787_v28, %v787_v28 }
 0x563   :  { %v2114_v31 = vpop.eup %2113 }
 0x564   :  { %1973 = vmatmul.mubr.msk.bf16.vlgmr.msra.gmra.mxu0 %vm546_vm3, %v789_v29  ;;  %v786_v33 = vmul.f32 %v2114_v31, %v2110_v21 }
 0x565   :  { %1983 = vmatpush3.bf16.msra.mxu0 %v937_v30  ;;  %1984 = vmatprep.mubr.msk.bf16.mxu0 %vm2365_vm0, %v2364_v0 }
 0x566   :  { %v788_v34 = vpack.c.bf16 %v786_v33, %v786_v33  ;;  %1994 = vmatprep.subr.bf16.mxu0 %v2364_v0 }
 0x568   :  { %1967 = vmatmul.mubr.msk.bf16.vlgmr.msra.gmra.mxu1 %vm546_vm3, %v788_v34 }
 0x569   :  { %1978 = vmatprep.mubr.msk.bf16.mxu1 %vm2365_vm0, %v2364_v0  ;;  %1977 = vmatpush3.bf16.msra.mxu1 %v890_v39  ;;  %v445_v39 = vld [vmem:[#allocation14 + $0x8] sm:$0xf] }
 0x56a   :  { %1988 = vmatprep.subr.bf16.mxu1 %v2364_v0 }
 0x56c   :  { %1985 = vmatmul.mubr.msk.bf16.vlgmr.msra.gmra.mxu0 %vm451_vm2, %v659_v51 }
 0x56d   :  { %1995 = vmatpush3.bf16.xpose.msra.mxu0 %v1038_v36  ;;  %1996 = vmatprep.mubr.msk.bf16.mxu0 %vm2365_vm0, %v2364_v0 }
 0x56e   :  { %2006 = vmatprep.subr.bf16.mxu0 %v2364_v0 }
 0x574   :  { %1997 = vmatmul.mubr.msk.bf16.vlgmr.msra.gmra.mxu0 %vm451_vm2, %v1031_v37 }
 0x575   :  { %2008 = vmatprep.mubr.msk.bf16.mxu0 %vm2365_vm0, %v2364_v0 }
 0x624   :  { %v878_v40 = vpop.f32.mrf.mxu0 }
 0x626   :  { %v1974_v41 = vpop.f32.mrf.mxu0 }
 0x628   :  { %v831_v42 = vpop.f32.mrf.mxu1  ;;  %v881_v43 = vpop.f32.mrf.mxu0 }
 0x629   :  { %v884_v44 = vpack.c.bf16 %v878_v40, %v831_v42  ;;  %v1203_v40 = vsel %vm888_vm4, %v445_v39, 0 }
 0x62a   :  { %v1968_v45 = vpop.f32.mrf.mxu1  ;;  %v1975_v46 = vpop.f32.mrf.mxu0 }
 0x62b   :  { %1979 = vmatmul.mubr.msk.bf16.vlgmr.msra.gmra.mxu1 %vm451_vm2, %v884_v44 }
 0x62c   :  { %1989 = vmatpush3.bf16.xpose.msra.mxu1 %v988_v47  ;;  %v834_v48 = vpop.f32.mrf.mxu1  ;;  %v2681_v49 = vpop.f32.mrf.mxu0  ;;  %1990 = vmatprep.mubr.msk.bf16.mxu1 %vm2365_vm0, %v2364_v0 }
 0x62d   :  { %2000 = vmatprep.subr.bf16.mxu1 %v2364_v0 }
 0x62e   :  { %v1969_v51 = vpop.f32.mrf.mxu1  ;;  %v1986_v53 = vpop.f32.mrf.mxu0 }
 0x630   :  { %v2686_v54 = vpop.f32.mrf.mxu0 }
 0x632   :  { %v1987_v56 = vpop.f32.mrf.mxu0 }
 0x633   :  { %1991 = vmatmul.mubr.msk.bf16.vlgmr.msra.gmra.mxu1 %vm451_vm2, %v981_v55 }
 0x634   :  { %v1074_v57 = vpop.f32.mrf.mxu0  ;;  %2002 = vmatprep.mubr.msk.bf16.mxu1 %vm2365_vm0, %v2364_v0 }
 0x635   :  { %v1081_v60 = vmul.f32 0.35355338, %v1074_v57 }
 0x636   :  { %v1998_v61 = vpop.f32.mrf.mxu0 }
 0x637   :  { %v1085_v62 = vsel %vm546_vm3, %v1081_v60, -inf }
 0x638   :  { %1086 = vmax.xlane.f32.xlu1 %v1085_v62  ;;  %v1077_v63 = vpop.f32.mrf.mxu0 }
 0x63a   :  { %v1999_v1 = vpop.f32.mrf.mxu0 }
 0x649   :  { %1152 = vrot.lane.b32.xlu1 %v2600_v5, %s2367_s10 }
 0x64d   :  { %1250 = vrot.lane.b32.xlu1 %v2575_v52, %s2368_s22 }
 0x651   :  { %1300 = vrot.lane.b32.xlu1 %v2573_v50, %s2368_s22 }
 0x655   :  { %1298 = vrot.lane.b32.xlu1 %v2585_v58, %s2368_s22 }
 0x6c1   :  { %v1087_v2 = vpop.xlane.xlu1 %1086 }
 0x6c2   :  { %v1089_v4 = vsub.f32 %v1081_v60, %v1087_v2 }
 0x6c4   :  { %v1092_v6 = vmul.f32 1.442695, %v1089_v4 }
 0x6c5   :  { %v1153_v3 = vpop.permute.xlu1 %1152 }
 0x6c6   :  { %2007 = vmatpush3.bf16.msra.mxu0 %v1153_v3  ;;  %2115 = vpow2.f32 %v1092_v6 }
 0x6c7   :  { %2018 = vmatprep.subr.bf16.mxu0 %v2364_v0 }
 0x6c9   :  { %v1251_v27 = vpop.permute.xlu1 %1250 }
 0x6ca   :  { %v1256_v29 = vsel %vm451_vm2, %v1251_v27, 0 }
 0x6cd   :  { %v1301_v47 = vpop.permute.xlu1 %1300 }
 0x6ce   :  { %v1306_v55 = vsel %vm451_vm2, %v1301_v47, 0 }
 0x6d1   :  { %v1299_v60 = vpop.permute.xlu1 %1298 }
 0x6d3   :  { %v2116_v58 = vpop.eup %2115 }
 0x6d4   :  { %v1097_v18 = vsel %vm546_vm3, %v2116_v58, 0.0 }
 0x6eb   :  { %v2701_v10 = vpop.f32.mrf.mxu1 }
 0x6ec   :  { %v974_v3 = vadd.f32 %v2681_v49, %v2701_v10 }
 0x6ed   :  { %v1980_v11 = vpop.f32.mrf.mxu1 }
 0x6ef   :  { %v2703_v12 = vpop.f32.mrf.mxu1 }
 0x6f1   :  { %v1981_v52 = vpop.f32.mrf.mxu1 }
 0x6f2   :  { %v977_v52 = vadd.f32 %v2686_v54, %v2703_v12 }
 0x6f3   :  { %v1024_v13 = vpop.f32.mrf.mxu1 }
 0x6f4   :  { %v1080_v14 = vmul.f32 0.35355338, %v1024_v13 }
 0x6f5   :  { %v1992_v50 = vpop.f32.mrf.mxu1 }
 0x6f6   :  { %v1082_v15 = vsel %vm546_vm3, %v1080_v14, -inf }
 0x6f7   :  { %1083 = vmax.xlane.f32.xlu0 %v1082_v15  ;;  %v1027_v16 = vpop.f32.mrf.mxu1 }
 0x6f9   :  { %v1993_v17 = vpop.f32.mrf.mxu1 }
 0x6fb   :  { %1098 = vadd.xlane.f32.xlu0 %v1097_v18 }
 0x780   :  { %v1084_v19 = vpop.xlane.xlu0 %1083 }
 0x781   :  { %v1088_v20 = vsub.f32 %v1080_v14, %v1084_v19 }
 0x783   :  { %v1090_v21 = vmul.f32 1.442695, %v1088_v20 }
 0x784   :  { %v1099_v22 = vpop.xlane.xlu0 %1098 }
 0x785   :  { %2117 = vpow2.f32 %v1090_v21 }
 0x786   :  { %2119 = vrcp.f32 %v1099_v22 }
 0x792   :  { %v2118_v23 = vpop.eup %2117 }
 0x793   :  { %v2120_v24 = vpop.eup %2119  ;;  %v1094_v25 = vsel %vm546_vm3, %v2118_v23, 0.0 }
 0x794   :  { %1095 = vadd.xlane.f32.xlu0 %v1094_v25  ;;  %v1103_v26 = vmul.f32 %v2120_v24, %v2116_v58 }
 0x796   :  { %v1105_v28 = vpack.c.bf16 %v1103_v26, %v1103_v26 }
 0x798   :  { %2009 = vmatmul.mubr.msk.bf16.vlgmr.msra.gmra.mxu0 %vm546_vm3, %v1105_v28 }
 0x799   :  { %2019 = vmatpush3.bf16.xpose.msra.mxu0 %v1256_v29  ;;  %2020 = vmatprep.mubr.msk.bf16.mxu0 %vm2365_vm0, %v2364_v0 }
 0x79a   :  { %2030 = vmatprep.subr.bf16.mxu0 %v2364_v0 }
 0x7aa   :  { %1106 = vrot.lane.b32.xlu0 %v2602_v9, %s2367_s10  ;;  %s2319_s10 = scalar_lea.vmem %s1781_s15, 256 }
 0x7ab   :  { %p2320_p3 = scmp.ne.s32.totalorder %s1781_s15, %s2319_s10  ;;  %p2325_p5 = scmp.lt.s32.totalorder %s2319_s10, %s2319_s10 }
 0x7ad   :  { %p2326_p6 = por %p2325_p5, %p2324_p4 }
 0x7ae   :  { %1248 = vrot.lane.b32.xlu0 %v2587_v59, %s2368_s22 }
 0x7af   :  { %p2327_p7 = pnand %p2326_p6, %p2320_p3 }
 0x81d   :  { %v1096_v30 = vpop.xlane.xlu0 %1095 }
 0x81e   :  { %2121 = vrcp.f32 %v1096_v30 }
 0x821   :  { %v1107_v31 = vpop.permute.xlu0 %1106 }
 0x822   :  { %2001 = vmatpush3.bf16.msra.mxu1 %v1107_v31 }
 0x823   :  { %2012 = vmatprep.subr.bf16.mxu1 %v2364_v0 }
 0x825   :  { %v1249_v32 = vpop.permute.xlu0 %1248 }
 0x826   :  { %2021 = vmatmul.mubr.msk.bf16.vlgmr.msra.gmra.mxu0 %vm451_vm2, %v1249_v32 }
 0x827   :  { %2032 = vmatprep.mubr.msk.bf16.mxu0 %vm2365_vm0, %v2364_v0 }
 0x82b   :  { %v2122_v33 = vpop.eup %2121 }
 0x82c   :  { %v1102_v34 = vmul.f32 %v2122_v33, %v2118_v23 }
 0x82e   :  { %v1104_v35 = vpack.c.bf16 %v1102_v34, %v1102_v34 }
 0x830   :  { %2003 = vmatmul.mubr.msk.bf16.vlgmr.msra.gmra.mxu1 %vm546_vm3, %v1104_v35 }
 0x831   :  { %2014 = vmatprep.mubr.msk.bf16.mxu1 %vm2365_vm0, %v2364_v0  ;;  %2013 = vmatpush3.bf16.msra.mxu1 %v1203_v40  ;;  %v1830_v40 = vld [vmem:[%s2827_s12] ss:$0 sm:$0xff] }
 0x832   :  { %2024 = vmatprep.subr.bf16.mxu1 %v2364_v0 }
 0x858   :  { %v1192_v59 = vpop.f32.mrf.mxu0 }
 0x85a   :  { %v2010_v36 = vpop.f32.mrf.mxu0 }
 0x85c   :  { %v1195_v37 = vpop.f32.mrf.mxu0 }
 0x85e   :  { %v2011_v38 = vpop.f32.mrf.mxu0 }
 0x8e6   :  { %v1292_v41 = vpop.f32.mrf.mxu0 }
 0x8e7   :  { %v1348_v42 = vmul.f32 0.35355338, %v1292_v41 }
 0x8e8   :  { %v2022_v43 = vpop.f32.mrf.mxu0 }
 0x8e9   :  { %v1350_v44 = vsel %vm546_vm3, %v1348_v42, -inf }
 0x8ea   :  { %1351 = vmax.xlane.f32.xlu0 %v1350_v44  ;;  %v1295_v45 = vpop.f32.mrf.mxu0 }
 0x8ec   :  { %v2023_v46 = vpop.f32.mrf.mxu0 }
 0x8f0   :  { %v1146_v48 = vpop.f32.mrf.mxu1 }
 0x8f1   :  { %v1198_v51 = vpack.c.bf16 %v1192_v59, %v1146_v48 }
 0x8f2   :  { %v2004_v53 = vpop.f32.mrf.mxu1 }
 0x8f3   :  { %2015 = vmatmul.mubr.msk.bf16.vlgmr.msra.gmra.mxu1 %vm451_vm2, %v1198_v51 }
 0x8f4   :  { %2025 = vmatpush3.bf16.xpose.msra.mxu1 %v1306_v55  ;;  %v1149_v56 = vpop.f32.mrf.mxu1  ;;  %2026 = vmatprep.mubr.msk.bf16.mxu1 %vm2365_vm0, %v2364_v0 }
 0x8f5   :  { %2036 = vmatprep.subr.bf16.mxu1 %v2364_v0 }
 0x8f6   :  { %v2005_v57 = vpop.f32.mrf.mxu1 }
 0x8fb   :  { %2027 = vmatmul.mubr.msk.bf16.vlgmr.msra.gmra.mxu1 %vm451_vm2, %v1299_v60 }
 0x8fc   :  { %2038 = vmatprep.mubr.msk.bf16.mxu1 %vm2365_vm0, %v2364_v0 }
 0x973   :  { %v1352_v61 = vpop.xlane.xlu0 %1351 }
 0x974   :  { %v1356_v62 = vsub.f32 %v1348_v42, %v1352_v61 }
 0x976   :  { %v1358_v63 = vmul.f32 1.442695, %v1356_v62 }
 0x978   :  { %2123 = vpow2.f32 %v1358_v63 }
 0x985   :  { %v2124_v1 = vpop.eup %2123 }
 0x986   :  { %v1362_v2 = vsel %vm546_vm3, %v2124_v1, 0.0 }
 0x987   :  { %1363 = vadd.xlane.f32.xlu0 %v1362_v2 }
 0x9b3   :  { %v1239_v4 = vpop.f32.mrf.mxu1 }
 0x9b4   :  { %v1246_v6 = vadd.f32 %v1239_v4, %v974_v3  ;;  %v2093_v4 = vld [vmem:[#allocation16 + $0x8] sm:$0xff]  }
 0x9b5   :  { %v2016_v11 = vpop.f32.mrf.mxu1 }
 0x9b7   :  { %v1242_v13 = vpop.f32.mrf.mxu1 }
 0x9b8   :  { %v1247_v14 = vadd.f32 %v1242_v13, %v977_v52 }
 0x9b9   :  { %v2017_v50 = vpop.f32.mrf.mxu1 }
 0x9bb   :  { %v1342_v15 = vpop.f32.mrf.mxu1 }
 0x9bc   :  { %v1349_v58 = vmul.f32 0.35355338, %v1342_v15 }
 0x9bd   :  { %v2028_v16 = vpop.f32.mrf.mxu1 }
 0x9be   :  { %v1353_v17 = vsel %vm546_vm3, %v1349_v58, -inf }
 0x9bf   :  { %1354 = vmax.xlane.f32.xlu1 %v1353_v17  ;;  %v1345_v18 = vpop.f32.mrf.mxu1  ;;  %v1831_v17 = vld [vmem:[%s2828_s13] ss:$0 sm:$0xff] }
 0x9c1   :  { %v2029_v19 = vpop.f32.mrf.mxu1 }
 0x9d0   :  { %1420 = vrot.lane.b32.xlu1 %v2600_v5, %s2368_s22 }
 0xa10   :  { %v1364_v22 = vpop.xlane.xlu0 %1363 }
 0xa48   :  { %v1355_v49 = vpop.xlane.xlu1 %1354 }
 0xa49   :  { %v1357_v10 = vsub.f32 %v1349_v58, %v1355_v49 }
 0xa4b   :  { %v1360_v20 = vmul.f32 1.442695, %v1357_v10  ;;  %v1832_v10 = vld [vmem:[%s2829_s14] ss:$0 sm:$0xff] }
 0xa4c   :  { %v1421_v21 = vpop.permute.xlu1 %1420 }
 0xa4d   :  { %2125 = vpow2.f32 %v1360_v20  ;;  %2037 = vmatpush3.bf16.msra.mxu1 %v1421_v21 }
 0xa4e   :  { %2048 = vmatprep.subr.bf16.mxu1 %v2364_v0  ;;  %2127 = vrcp.f32 %v1364_v22  ;;  %v2096_v22 = vld [vmem:[%s2832_s17 + $0x10] sm:$0xff]  }
 0xa5a   :  { %v2126_v54 = vpop.eup %2125 }
 0xa5b   :  { %v1365_v12 = vsel %vm546_vm3, %v2126_v54, 0.0  ;;  %v2128_v23 = vpop.eup %2127 }
 0xa5c   :  { %1366 = vadd.xlane.f32.xlu0 %v1365_v12  ;;  %v1370_v5 = vmul.f32 %v2128_v23, %v2124_v1  ;;  %v2097_v23 = vld [vmem:[%s2832_s17 + $0x8] sm:$0xff]  }
 0xa5e   :  { %v1372_v26 = vpack.c.bf16 %v1370_v5, %v1370_v5  ;;  %v1833_v5 = vld [vmem:[%s2831_s16] ss:$0 sm:$0xff] }
 0xa72   :  { %1374 = vrot.lane.b32.xlu0 %v2602_v9, %s2368_s22  ;;  %v446_v9 = vld [vmem:[#allocation14 + $0xc] sm:$0xf] }
 0xa73   :  { %v1471_v30 = vsel %vm888_vm4, %v446_v9, 0 }
 0xae5   :  { %v1367_v24 = vpop.xlane.xlu0 %1366 }
 0xae6   :  { %2129 = vrcp.f32 %v1367_v24  ;;  %v2098_v24 = vld [vmem:[%s2832_s17] sm:$0xff]  }
 0xae9   :  { %v1375_v25 = vpop.permute.xlu0 %1374 }
 0xaea   :  { %2031 = vmatpush3.bf16.msra.mxu0 %v1375_v25 }
 0xaeb   :  { %2042 = vmatprep.subr.bf16.mxu0 %v2364_v0 }
 0xaed   :  { %2033 = vmatmul.mubr.msk.bf16.vlgmr.msra.gmra.mxu0 %vm546_vm3, %v1372_v26 }
 0xaee   :  { %2044 = vmatprep.mubr.msk.bf16.mxu0 %vm2365_vm0, %v2364_v0  ;;  %2043 = vmatpush3.bf16.msra.mxu0 %v1471_v30 }
 0xaef   :  { %2056 = vmatprep.subr.bf16.mxu0 %v2364_v0 }
 0xaf3   :  { %v2130_v27 = vpop.eup %2129 }
 0xaf4   :  { %v1371_v28 = vmul.f32 %v2130_v27, %v2126_v54 }
 0xaf6   :  { %v1373_v29 = vpack.c.bf16 %v1371_v28, %v1371_v28 }
 0xaf8   :  { %2039 = vmatmul.mubr.msk.bf16.vlgmr.msra.gmra.mxu1 %vm546_vm3, %v1373_v29 }
 0xaf9   :  { %2052 = vmatprep.mubr.msk.bf16.mxu1 %vm2365_vm0, %v2364_v0  ;;  %2049 = vmatpush3.bf16.msra.mxu1 %v2093_v4 }
 0xafa   :  { %2050 = vmatprep.subr.bf16.mxu1 %v2364_v0 }
 0xbad   :  { %v1414_v31 = vpop.f32.mrf.mxu0 }
 0xbaf   :  { %v2034_v32 = vpop.f32.mrf.mxu0 }
 0xbb1   :  { %v1417_v33 = vpop.f32.mrf.mxu0 }
 0xbb3   :  { %v2035_v34 = vpop.f32.mrf.mxu0 }
 0xbb8   :  { %v1460_v35 = vpop.f32.mrf.mxu1 }
 0xbb9   :  { %v1466_v59 = vpack.c.bf16 %v1460_v35, %v1414_v31 }
 0xbba   :  { %v2040_v36 = vpop.f32.mrf.mxu1 }
 0xbbb   :  { %2045 = vmatmul.mubr.msk.bf16.vlgmr.msra.gmra.mxu0 %vm451_vm2, %v1466_v59 }
 0xbbc   :  { %v1463_v37 = vpop.f32.mrf.mxu1  ;;  %2064 = vmatprep.mubr.msk.bf16.mxu0 %vm2365_vm0, %v2364_v0 }
 0xbbe   :  { %v2041_v38 = vpop.f32.mrf.mxu1 }
 0xc7b   :  { %v1507_v39 = vpop.f32.mrf.mxu0 }
 0xc7c   :  { %v1514_v41 = vadd.f32 %v1507_v39, %v1246_v6  ;;  %v2095_v6 = vld [vmem:[%s2832_s17 + $0x18] sm:$0xff]  }
 0xc7d   :  { %v2046_v42 = vpop.f32.mrf.mxu0  ;;  %2057 = vmatpush3.bf16.msra.mxu0 %v2095_v6 }
 0xc7e   :  { %v1523_v43 = vadd.f32 %v1830_v40, %v1514_v41  ;;  %2058 = vmatprep.subr.bf16.mxu0 %v2364_v0 }
 0xc7f   :  { %v1510_v44 = vpop.f32.mrf.mxu0 }
 0xc80   :  { %v1515_v45 = vadd.f32 %v1510_v44, %v1247_v14  ;;  %v1525_v46 = vadd.f32 %v1523_v43, %v2538_v7 }
 0xc81   :  { %v2047_v47 = vpop.f32.mrf.mxu0  ;;  %2059 = vmatpush3.bf16.msra.mxu0 %v2096_v22 }
 0xc82   :  { %v1524_v48 = vadd.f32 %v1830_v40, %v1515_v45  ;;  %v1529_v51 = vsel %vm238_vm1, %v1525_v46, 0.0  ;;  %2060 = vmatprep.subr.bf16.mxu0 %v2364_v0 }
 0xc83   :  { %1530 = vadd.xlane.f32.xlu1 %v1529_v51 }
 0xc84   :  { %v1526_v53 = vadd.f32 %v1524_v48, %v2540_v8  ;;  %v2094_v8 = vld [vmem:[#allocation16] sm:$0xff]  }
 0xc85   :  { %2051 = vmatpush3.bf16.msra.mxu1 %v2094_v8  ;;  %2061 = vmatpush3.bf16.msra.mxu0 %v2097_v23 }
 0xc86   :  { %v1532_v55 = vsel %vm238_vm1, %v1526_v53, 0.0  ;;  %2062 = vmatprep.subr.bf16.mxu0 %v2364_v0  ;;  %v1837_v0 = vld [vmem:[%s2833_s18] ss:$0 sm:$0xff] }
 0xc87   :  { %1533 = vadd.xlane.f32.xlu0 %v1532_v55 }
 0xc89   :  { %2063 = vmatpush3.bf16.msra.mxu0 %v2098_v24 }
 0xd0c   :  { %v1531_v56 = vpop.xlane.xlu1 %1530 }
 0xd0d   :  { %v1536_v57 = vmul.f32 0.03125, %v1531_v56 }
 0xd0f   :  { %v1538_v60 = vsub.f32 %v1525_v46, %v1536_v57 }
 0xd10   :  { %v1534_v61 = vpop.xlane.xlu0 %1533 }
 0xd11   :  { %v1537_v62 = vmul.f32 0.03125, %v1534_v61  ;;  %v1540_v63 = vmul.f32 %v1538_v60, %v1538_v60 }
 0xd13   :  { %v1539_v1 = vsub.f32 %v1526_v53, %v1537_v62  ;;  %v1542_v2 = vsel %vm238_vm1, %v1540_v63, 0.0 }
 0xd14   :  { %1543 = vadd.xlane.f32.xlu0 %v1542_v2  ;;  %v1843_v2 = vld [vmem:[%s2834_s19] ss:$0 sm:$0xff] }
 0xd15   :  { %v1541_v7 = vmul.f32 %v1539_v1, %v1539_v1 }
 0xd17   :  { %v1545_v3 = vsel %vm238_vm1, %v1541_v7, 0.0 }
 0xd18   :  { %1546 = vadd.xlane.f32.xlu1 %v1545_v3  ;;  %v1844_v3 = vld [vmem:[%s2835_s20] ss:$0 sm:$0xff] }
 0xd9d   :  { %v1544_v11 = vpop.xlane.xlu0 %1543 }
 0xd9e   :  { %v1548_v52 = vmul.f32 0.03125, %v1544_v11 }
 0xda0   :  { %v1550_v13 = vadd.f32 1e-05, %v1548_v52 }
 0xda1   :  { %v1547_v14 = vpop.xlane.xlu1 %1546 }
 0xda2   :  { %2131 = vrsqrt.f32 %v1550_v13  ;;  %v1549_v50 = vmul.f32 0.03125, %v1547_v14 }
 0xda4   :  { %v1551_v15 = vadd.f32 1e-05, %v1549_v50 }
 0xda6   :  { %2133 = vrsqrt.f32 %v1551_v15 }
 0xdaf   :  { %v2132_v58 = vpop.eup %2131 }
 0xdb0   :  { %v1554_v16 = vmul.f32 %v2132_v58, %v1538_v60 }
 0xdb2   :  { %v1562_v49 = vmul.f32 %v1831_v17, %v1554_v16 }
 0xdb3   :  { %v2134_v18 = vpop.eup %2133 }
 0xdb4   :  { %v1555_v19 = vmul.f32 %v2134_v18, %v1539_v1  ;;  %v1570_v21 = vadd.f32 %v1832_v10, %v1562_v49 }
 0xdb6   :  { %v1563_v20 = vmul.f32 %v1831_v17, %v1555_v19 }
 0xdb8   :  { %v1571_v54 = vadd.f32 %v1832_v10, %v1563_v20 }
 0xdba   :  { %v1572_v12 = vpack.c.bf16 %v1571_v54, %v1570_v21 }
 0xdbc   :  { %2053 = vmatmul.mubr.msk.bf16.vlgmr.msra.gmra.mxu1 %vm238_vm1, %v1572_v12 }
 0xe7c   :  { %v1633_v25 = vpop.f32.mrf.mxu1 }
 0xe7d   :  { %v1634_v27 = vadd.f32 %v1833_v5, %v1633_v25 }
 0xe7e   :  { %v2054_v26 = vpop.f32.mrf.mxu1 }
 0xe7f   :  { %v1640_v30 = vmax.f32 %v1634_v27, 0.0 }
 0xe80   :  { %v1636_v28 = vpop.f32.mrf.mxu1 }
 0xe81   :  { %v1637_v29 = vadd.f32 %v1833_v5, %v1636_v28 }
 0xe82   :  { %v2055_v9 = vpop.f32.mrf.mxu1 }
 0xe83   :  { %v1641_v31 = vmax.f32 %v1637_v29, 0.0 }
 0xe85   :  { %v1642_v32 = vpack.c.bf16 %v1641_v31, %v1640_v30 }
 0xe87   :  { %2065 = vmatmul.mubr.msk.bf16.vlgmr.msra.gmra.mxu0 %vm1682_vm5, %v1642_v32 }
 0xf47   :  { %v1720_v33 = vpop.f32.mrf.mxu0 }
 0xf48   :  { %v1721_v34 = vadd.f32 %v1837_v0, %v1720_v33 }
 0xf49   :  { %v2066_v35 = vpop.f32.mrf.mxu0 }
 0xf4a   :  { %v1727_v59 = vadd.f32 %v1721_v34, %v1570_v21 }
 0xf4b   :  { %v1723_v36 = vpop.f32.mrf.mxu0 }
 0xf4c   :  { %v1724_v37 = vadd.f32 %v1837_v0, %v1723_v36  ;;  %v1731_v38 = vsel %vm238_vm1, %v1727_v59, 0.0 }
 0xf4d   :  { %1732 = vadd.xlane.f32.xlu0 %v1731_v38  ;;  %v2067_v39 = vpop.f32.mrf.mxu0 }
 0xf4e   :  { %v1728_v40 = vadd.f32 %v1724_v37, %v1571_v54 }
 0xf50   :  { %v1734_v41 = vsel %vm238_vm1, %v1728_v40, 0.0 }
 0xf51   :  { %1735 = vadd.xlane.f32.xlu1 %v1734_v41 }
 0xfd6   :  { %v1733_v42 = vpop.xlane.xlu0 %1732 }
 0xfd7   :  { %v1737_v43 = vmul.f32 0.03125, %v1733_v42 }
 0xfd9   :  { %v1739_v44 = vsub.f32 %v1727_v59, %v1737_v43 }
 0xfda   :  { %v1736_v45 = vpop.xlane.xlu1 %1735 }
 0xfdb   :  { %v1738_v46 = vmul.f32 0.03125, %v1736_v45  ;;  %v1741_v47 = vmul.f32 %v1739_v44, %v1739_v44 }
 0xfdd   :  { %v1740_v48 = vsub.f32 %v1728_v40, %v1738_v46  ;;  %v1743_v51 = vsel %vm238_vm1, %v1741_v47, 0.0 }
 0xfde   :  { %1744 = vadd.xlane.f32.xlu0 %v1743_v51 }
 0xfdf   :  { %v1742_v53 = vmul.f32 %v1740_v48, %v1740_v48 }
 0xfe1   :  { %v1746_v55 = vsel %vm238_vm1, %v1742_v53, 0.0 }
 0xfe2   :  { %1747 = vadd.xlane.f32.xlu1 %v1746_v55 }
0x1067   :  { %v1745_v56 = vpop.xlane.xlu0 %1744 }
0x1068   :  { %v1749_v57 = vmul.f32 0.03125, %v1745_v56 }
0x106a   :  { %v1751_v60 = vadd.f32 1e-05, %v1749_v57 }
0x106b   :  { %v1748_v61 = vpop.xlane.xlu1 %1747 }
0x106c   :  { %2135 = vrsqrt.f32 %v1751_v60  ;;  %v1750_v62 = vmul.f32 0.03125, %v1748_v61 }
0x106e   :  { %v1752_v63 = vadd.f32 1e-05, %v1750_v62 }
0x1070   :  { %2137 = vrsqrt.f32 %v1752_v63 }
0x1079   :  { %v2136_v1 = vpop.eup %2135 }
0x107a   :  { %v1755_v7 = vmul.f32 %v2136_v1, %v1739_v44 }
0x107c   :  { %v1763_v4 = vmul.f32 %v1843_v2, %v1755_v7 }
0x107d   :  { %v2138_v8 = vpop.eup %2137 }
0x107e   :  { %v1756_v6 = vmul.f32 %v2138_v8, %v1740_v48  ;;  %v1771_v11 = vadd.f32 %v1844_v3, %v1763_v4 }
0x1080   :  { %v1764_v52 = vmul.f32 %v1843_v2, %v1756_v6  ;;  %1773 = vst.msk [vmem:[#allocation17] sm:$0xff] %vm238_vm1, %v1771_v11 }
0x1082   :  { %v1772_v13 = vadd.f32 %v1844_v3, %v1764_v52 }
0x1084   :  { %1774 = vst.msk [vmem:[#allocation17 + $0x8] sm:$0xff] %vm238_vm1, %v1772_v13 }
0x1085   :  { %2330 = shalt.err (!%p2327_p7)
}
0x1086   :  { %1786 = dma.vmem_to_hbm [thread:$0]  %s1781_s15, 256, %s2836_s21, [#allocation4], %s2353_s28, %s2353_s28, %s2354_s29  }
0x1087   :  { %2349 = dma.done.wait [#allocation4], 256  }
0x1088   :  { %2350 = vsyncadd [#allocation4], 4294967040 }
0x1089   :  { %1790 = vsyncpa [#allocation3], 1 }
0x108a   :  { %1791 = vsyncpa [#allocation6], 1 }
0x108b   :  { %1792 = vsyncpa [#allocation9], 1 }
0x108c   :  { %1793 = vsyncpa [#allocation12], 1 }
0x108d   :  { %1794 = vsyncpa [#allocation15], 1 }
0x108e   :  { %1795 = vsyncpa [#allocation4], 1 }

</bundles_post_ra>
